<compile_context>
chip_gen: v5e
topology: v5e:2x2
jax: 0.10.0
libtpu: 0.0.40
codegen_flags: <defaults>
</compile_context>

<pallas_src>
import math

import numpy as np
import jax
import jax.numpy as jnp
from jax.experimental import pallas as pl
from jax.experimental.pallas import tpu as pltpu

LN_EPS = 1e-5                         # PyTorch nn.LayerNorm default
_HIGHEST = jax.lax.Precision.HIGHEST  # full-f32 MXU matmuls (matches reference)
NUM_LAYERS = 7


def _round_up(x, m):
    return ((x + m - 1) // m) * m


def _layer_dims(input_size, hidden_size):
    H = hidden_size
    return [input_size, H, H, H, H, H // 2, H // 4, 1]


def init_ensemble_params(key, num_models, input_size, hidden_size):
    """Per-model parameters (PyTorch-default-style uniform for Linear,
    gamma=1 / beta=0 for LayerNorm), stacked over a leading model axis.
    Weights are stored as (in, out) (transposed vs torch)."""
    dims = _layer_dims(input_size, hidden_size)
    params = []
    for i in range(NUM_LAYERS):
        din, dout = dims[i], dims[i + 1]
        key, kw, kb = jax.random.split(key, 3)
        bound = 1.0 / math.sqrt(din)
        W = jax.random.uniform(kw, (num_models, din, dout), jnp.float32,
                               -bound, bound)
        b = jax.random.uniform(kb, (num_models, dout), jnp.float32,
                               -bound, bound)
        params += [W, b]
        if i < NUM_LAYERS - 1:  # LayerNorm after all but the last Linear
            params.append(jnp.ones((num_models, dout), jnp.float32))   # gamma
            params.append(jnp.zeros((num_models, dout), jnp.float32))  # beta
    return params


def pack_ensemble_params_np(params, num_models, input_size, hidden_size):
    """Host-side (numpy) lane-packing of the whole ensemble.  Done ONCE at
    init time, never on the per-call path.

    Returns:
      w0     : (Pin, P)  layer-0 weights (shared input lanes -> all models)
      w_rest : (6, P, P) block-diagonal per-layer weights (zero padded)
      vec    : (21, P)   rows 0..6 biases, 7..13 gammas, 14..20 betas
      Pin, P : padded input / packed lane widths (multiples of 128)
    """
    M = num_models
    dims = _layer_dims(input_size, hidden_size)
    # The in-kernel XOR segment trick needs power-of-two LayerNorm widths.
    for l in range(NUM_LAYERS - 1):
        g = dims[l + 1]
        assert g >= 1 and (g & (g - 1)) == 0, \
            "hidden_size must be a power of two (>= 4)"
        # TODO(synk): non-power-of-two hidden sizes would need host-built
        # segment matrices (as in the earlier version) instead of the XOR trick.

    Pin = _round_up(input_size, 128)
    P = _round_up(M * hidden_size, 128)
    # NOTE: for M*hidden_size >= 256 on v6e/v7x, rounding P to 256 would fill
    # the 256x256 MXU better; 128 is native for v5e and for this demo shape.

    params = [np.asarray(jax.device_get(p)) for p in params]

    w0 = np.zeros((Pin, P), np.float32)
    w_rest = np.zeros((NUM_LAYERS - 1, P, P), np.float32)
    vec = np.zeros((3 * NUM_LAYERS, P), np.float32)

    idx = 0
    for l in range(NUM_LAYERS):
        din, dout = dims[l], dims[l + 1]
        W, b = params[idx], params[idx + 1]
        idx += 2
        for m in range(M):
            c0 = m * dout
            if l == 0:
                # Every model reads the shared input in lanes [0:din).
                w0[:din, c0:c0 + dout] = W[m]
            else:
                r0 = m * din
                w_rest[l - 1, r0:r0 + din, c0:c0 + dout] = W[m]
            vec[l, c0:c0 + dout] = b[m]
        if l < NUM_LAYERS - 1:
            g_, be_ = params[idx], params[idx + 1]
            idx += 2
            for m in range(M):
                c0 = m * dout
                vec[NUM_LAYERS + l, c0:c0 + dout] = g_[m]
                vec[2 * NUM_LAYERS + l, c0:c0 + dout] = be_[m]
    return w0, w_rest, vec, Pin, P


def _make_kernel(num_models, dims, P):
    inv_m = 1.0 / num_models

    def layernorm_relu(h, l, gamma, beta):
        g = dims[l + 1]  # LayerNorm width for this layer (power of two)
        # Block-diagonal segment-mean matrix built in-register (zero HBM bytes):
        # lanes i and j lie in the same aligned g-wide segment iff (i ^ j) < g.
        row = jax.lax.broadcasted_iota(jnp.int32, (P, P), 0)
        col = jax.lax.broadcasted_iota(jnp.int32, (P, P), 1)
        seg = jnp.where((row ^ col) < g, 1.0 / g, 0.0)
        # One fused matmul for mean and second moment: [h ; h*h] @ seg.
        hh = jnp.concatenate([h, h * h], axis=0)               # (2*TB, P)
        st = jnp.dot(hh, seg, preferred_element_type=jnp.float32,
                     precision=_HIGHEST)
        n = h.shape[0]
        mu, ex2 = st[:n], st[n:]
        var = jnp.maximum(ex2 - mu * mu, 0.0)                   # clamp cancellation
        scale = jax.lax.rsqrt(var + LN_EPS) * gamma             # fold gamma in
        return jnp.maximum((h - mu) * scale + beta, 0.0)

    def kernel(x_ref, w0_ref, wr_ref, vec_ref, out_ref):
        # Layer 0: shared input lanes -> all models' first hidden layer.
        h = jnp.dot(x_ref[...], w0_ref[...],
                    preferred_element_type=jnp.float32,
                    precision=_HIGHEST) + vec_ref[0:1, :]
        h = layernorm_relu(h, 0, vec_ref[NUM_LAYERS:NUM_LAYERS + 1, :],
                           vec_ref[2 * NUM_LAYERS:2 * NUM_LAYERS + 1, :])
        for l in range(1, NUM_LAYERS):
            h = jnp.dot(h, wr_ref[l - 1],
                        preferred_element_type=jnp.float32,
                        precision=_HIGHEST) + vec_ref[l:l + 1, :]
            if l < NUM_LAYERS - 1:
                gm = vec_ref[NUM_LAYERS + l:NUM_LAYERS + l + 1, :]
                bt = vec_ref[2 * NUM_LAYERS + l:2 * NUM_LAYERS + l + 1, :]
                h = layernorm_relu(h, l, gm, bt)
        # After the last layer, lane m holds model m's scalar output; all other
        # lanes are exactly zero, so the ensemble mean is a full-lane sum / M.
        out_ref[...] = jnp.sum(h, axis=-1, keepdims=True) * inv_m

    return kernel


def make_ensemble_forward(num_models, input_size, hidden_size,
                          max_batch_tile=256):
    """Returns a jitted forward(x, w0, w_rest, vec) -> (B, 1)."""
    dims = _layer_dims(input_size, hidden_size)
    Pin = _round_up(input_size, 128)
    P = _round_up(num_models * hidden_size, 128)
    kernel = _make_kernel(num_models, dims, P)

    @jax.jit
    def fwd(x, w0, w_rest, vec):
        B = x.shape[0]
        TB = min(max_batch_tile, _round_up(B, 8))      # batch tile (sublane mult)
        B_pad = _round_up(B, TB)
        x_pad = jnp.zeros((B_pad, Pin), jnp.float32)
        x_pad = x_pad.at[:B, :input_size].set(x.astype(jnp.float32))
        n_tiles = B_pad // TB

        # VMEM budget: resident params (double-buffer-conservative) + batch
        # blocks + in-kernel temporaries (seg matrix, stacked stats, h).
        param_bytes = (Pin * P + (NUM_LAYERS - 1) * P * P
                       + 3 * NUM_LAYERS * P) * 4
        block_bytes = TB * (Pin + 1) * 4
        scratch_bytes = (2 * P * P + 12 * TB * P) * 4
        vmem_limit = min(128 * 1024 * 1024,
                         2 * (param_bytes + block_bytes) + scratch_bytes
                         + 32 * 1024 * 1024)

        out = pl.pallas_call(
            kernel,
            out_shape=jax.ShapeDtypeStruct((B_pad, 1), jnp.float32),
            grid=(n_tiles,),
            in_specs=[
                pl.BlockSpec((TB, Pin), lambda i: (i, 0)),              # x tile
                pl.BlockSpec((Pin, P), lambda i: (0, 0)),               # resident
                pl.BlockSpec((NUM_LAYERS - 1, P, P), lambda i: (0, 0, 0)),
                pl.BlockSpec((3 * NUM_LAYERS, P), lambda i: (0, 0)),    # resident
            ],
            out_specs=pl.BlockSpec((TB, 1), lambda i: (i, 0)),
            compiler_params=pltpu.CompilerParams(
                dimension_semantics=("parallel",),   # v7x: split tiles over TCs
                vmem_limit_bytes=int(vmem_limit)),
        )(x_pad, w0, w_rest, vec)
        return out[:B]

    return fwd


def ensemble_reference(x, params, num_models):
    """Pure-JAX per-model reference with identical semantics."""
    outs = []
    for m in range(num_models):
        h = x.astype(jnp.float32)
        idx = 0
        for layer in range(NUM_LAYERS):
            W, b = params[idx][m], params[idx + 1][m]
            idx += 2
            h = jnp.dot(h, W, precision=_HIGHEST) + b
            if layer < NUM_LAYERS - 1:
                g, be = params[idx][m], params[idx + 1][m]
                idx += 2
                mu = jnp.mean(h, axis=-1, keepdims=True)
                var = jnp.mean(jnp.square(h - mu), axis=-1, keepdims=True)
                h = (h - mu) * jax.lax.rsqrt(var + LN_EPS) * g + be
                h = jnp.maximum(h, 0.0)
        outs.append(h)
    return sum(outs) / len(outs)


if __name__ == "__main__":
    # Small shapes consistent with the module: x is (batch, input_size).
    batch = 8
    input_size = 32
    hidden_size = 32
    num_models = 3

    key = jax.random.PRNGKey(0)
    kx, kp = jax.random.split(key)
    x = jax.random.normal(kx, (batch, input_size), jnp.float32)
    params = init_ensemble_params(kp, num_models, input_size, hidden_size)

    # Host-side packing: done ONCE, not on the per-call path.
    w0_np, wr_np, vec_np, Pin, P = pack_ensemble_params_np(
        params, num_models, input_size, hidden_size)
    w0 = jnp.asarray(w0_np)
    w_rest = jnp.asarray(wr_np)
    vec = jnp.asarray(vec_np)

    fwd = make_ensemble_forward(num_models, input_size, hidden_size)
    out = jax.block_until_ready(fwd(x, w0, w_rest, vec))

    ref = ensemble_reference(x, params, num_models)
    assert out.shape == (batch, 1)
    assert jnp.allclose(out, ref, atol=2e-4, rtol=2e-4), (out, ref)

    print("KERNEL_OK")
</pallas_src>

<mosaic_0001>
module attributes {stable_mosaic.version = 11 : i64} {
  func.func @kernel(%arg0: i32, %arg1: memref<8x128xf32, #tpu.memory_space<vmem>>, %arg2: memref<128x128xf32, #tpu.memory_space<vmem>>, %arg3: memref<6x128x128xf32, #tpu.memory_space<vmem>>, %arg4: memref<21x128xf32, #tpu.memory_space<vmem>>, %arg5: memref<8x1xf32, #tpu.memory_space<vmem>>) attributes {dimension_semantics = [#tpu.dimension_semantics<parallel>], iteration_bounds = array<i64: 1>, scalar_prefetch = 0 : i64, scratch_operands = 0 : i64, tpu.core_type = #tpu.core_type<tc>, window_params = [{transform_indices = @transform_0, window_bounds = array<i64: 8, 128>}, {pipeline_mode = #tpu.pipeline_mode<synchronous>, transform_indices = @transform_1, window_bounds = array<i64: 128, 128>}, {pipeline_mode = #tpu.pipeline_mode<synchronous>, transform_indices = @transform_2, window_bounds = array<i64: 6, 128, 128>}, {pipeline_mode = #tpu.pipeline_mode<synchronous>, transform_indices = @transform_3, window_bounds = array<i64: 21, 128>}, {transform_indices = @transform_4, window_bounds = array<i64: 8, 1>}]} {
    %c0 = arith.constant 0 : index
    %c0_0 = arith.constant 0 : index
    %0 = vector.load %arg1[%c0, %c0_0] : memref<8x128xf32, #tpu.memory_space<vmem>>, vector<8x128xf32>
    %c0_1 = arith.constant 0 : index
    %c0_2 = arith.constant 0 : index
    %1 = vector.load %arg2[%c0_1, %c0_2] : memref<128x128xf32, #tpu.memory_space<vmem>>, vector<128x128xf32>
    %cst = arith.constant dense<0.000000e+00> : vector<8x128xf32>
    %2 = tpu.matmul %0, %1, %cst {dimension_numbers = #tpu.dot_dimension_numbers<[1], [0], [0], [1], [0, 0, 1, 1], [], []>, precision = #tpu.contract_precision<fp32>} : vector<8x128xf32>, vector<128x128xf32>, vector<8x128xf32> -> vector<8x128xf32>
    %c0_3 = arith.constant 0 : index
    %c0_4 = arith.constant 0 : index
    %3 = vector.load %arg4[%c0_3, %c0_4] : memref<21x128xf32, #tpu.memory_space<vmem>>, vector<1x128xf32>
    %4 = vector.broadcast %3 : vector<1x128xf32> to vector<8x128xf32>
    %5 = arith.addf %2, %4 : vector<8x128xf32>
    %c7 = arith.constant 7 : index
    %c0_5 = arith.constant 0 : index
    %6 = vector.load %arg4[%c7, %c0_5] : memref<21x128xf32, #tpu.memory_space<vmem>>, vector<1x128xf32>
    %c14 = arith.constant 14 : index
    %c0_6 = arith.constant 0 : index
    %7 = vector.load %arg4[%c14, %c0_6] : memref<21x128xf32, #tpu.memory_space<vmem>>, vector<1x128xf32>
    %8 = tpu.iota {dimensions = array<i32: 0>} : vector<128x128xi32>
    %9 = tpu.iota {dimensions = array<i32: 1>} : vector<128x128xi32>
    %10 = arith.xori %8, %9 : vector<128x128xi32>
    %c32_i32 = arith.constant 32 : i32
    %11 = vector.broadcast %c32_i32 : i32 to vector<128x128xi32>
    %12 = arith.cmpi slt, %10, %11 : vector<128x128xi32>
    %cst_7 = arith.constant 3.125000e-02 : f32
    %cst_8 = arith.constant 0.000000e+00 : f32
    %13 = vector.broadcast %cst_7 : f32 to vector<128x128xf32>
    %14 = vector.broadcast %cst_8 : f32 to vector<128x128xf32>
    %15 = arith.select %12, %13, %14 : vector<128x128xi1>, vector<128x128xf32>
    %16 = arith.mulf %5, %5 : vector<8x128xf32>
    %17 = tpu.concatenate %5, %16 in 0 : vector<8x128xf32>, vector<8x128xf32> -> vector<16x128xf32>
    %cst_9 = arith.constant dense<0.000000e+00> : vector<16x128xf32>
    %18 = tpu.matmul %17, %15, %cst_9 {dimension_numbers = #tpu.dot_dimension_numbers<[1], [0], [0], [1], [0, 0, 1, 1], [], []>, precision = #tpu.contract_precision<fp32>} : vector<16x128xf32>, vector<128x128xf32>, vector<16x128xf32> -> vector<16x128xf32>
    %19 = vector.extract_strided_slice %18 {offsets = [0, 0], sizes = [8, 128], strides = [1, 1]} : vector<16x128xf32> to vector<8x128xf32>
    %20 = vector.extract_strided_slice %18 {offsets = [8, 0], sizes = [8, 128], strides = [1, 1]} : vector<16x128xf32> to vector<8x128xf32>
    %21 = arith.mulf %19, %19 : vector<8x128xf32>
    %22 = arith.subf %20, %21 : vector<8x128xf32>
    %cst_10 = arith.constant 0.000000e+00 : f32
    %23 = vector.broadcast %cst_10 : f32 to vector<8x128xf32>
    %24 = arith.maximumf %22, %23 : vector<8x128xf32>
    %cst_11 = arith.constant 9.99999974E-6 : f32
    %25 = vector.broadcast %cst_11 : f32 to vector<8x128xf32>
    %26 = arith.addf %24, %25 : vector<8x128xf32>
    %27 = math.rsqrt %26 : vector<8x128xf32>
    %28 = vector.broadcast %6 : vector<1x128xf32> to vector<8x128xf32>
    %29 = arith.mulf %27, %28 : vector<8x128xf32>
    %30 = arith.subf %5, %19 : vector<8x128xf32>
    %31 = arith.mulf %30, %29 : vector<8x128xf32>
    %32 = vector.broadcast %7 : vector<1x128xf32> to vector<8x128xf32>
    %33 = arith.addf %31, %32 : vector<8x128xf32>
    %cst_12 = arith.constant 0.000000e+00 : f32
    %34 = vector.broadcast %cst_12 : f32 to vector<8x128xf32>
    %35 = arith.maximumf %33, %34 : vector<8x128xf32>
    %c0_13 = arith.constant 0 : index
    %c0_14 = arith.constant 0 : index
    %c0_15 = arith.constant 0 : index
    %36 = vector.load %arg3[%c0_13, %c0_14, %c0_15] : memref<6x128x128xf32, #tpu.memory_space<vmem>>, vector<1x128x128xf32>
    %37 = vector.shape_cast %36 : vector<1x128x128xf32> to vector<128x128xf32>
    %cst_16 = arith.constant dense<0.000000e+00> : vector<8x128xf32>
    %38 = tpu.matmul %35, %37, %cst_16 {dimension_numbers = #tpu.dot_dimension_numbers<[1], [0], [0], [1], [0, 0, 1, 1], [], []>, precision = #tpu.contract_precision<fp32>} : vector<8x128xf32>, vector<128x128xf32>, vector<8x128xf32> -> vector<8x128xf32>
    %c1 = arith.constant 1 : index
    %c0_17 = arith.constant 0 : index
    %39 = vector.load %arg4[%c1, %c0_17] : memref<21x128xf32, #tpu.memory_space<vmem>>, vector<1x128xf32>
    %40 = vector.broadcast %39 : vector<1x128xf32> to vector<8x128xf32>
    %41 = arith.addf %38, %40 : vector<8x128xf32>
    %c8 = arith.constant 8 : index
    %c0_18 = arith.constant 0 : index
    %42 = vector.load %arg4[%c8, %c0_18] : memref<21x128xf32, #tpu.memory_space<vmem>>, vector<1x128xf32>
    %c15 = arith.constant 15 : index
    %c0_19 = arith.constant 0 : index
    %43 = vector.load %arg4[%c15, %c0_19] : memref<21x128xf32, #tpu.memory_space<vmem>>, vector<1x128xf32>
    %44 = tpu.iota {dimensions = array<i32: 0>} : vector<128x128xi32>
    %45 = tpu.iota {dimensions = array<i32: 1>} : vector<128x128xi32>
    %46 = arith.xori %44, %45 : vector<128x128xi32>
    %c32_i32_20 = arith.constant 32 : i32
    %47 = vector.broadcast %c32_i32_20 : i32 to vector<128x128xi32>
    %48 = arith.cmpi slt, %46, %47 : vector<128x128xi32>
    %cst_21 = arith.constant 3.125000e-02 : f32
    %cst_22 = arith.constant 0.000000e+00 : f32
    %49 = vector.broadcast %cst_21 : f32 to vector<128x128xf32>
    %50 = vector.broadcast %cst_22 : f32 to vector<128x128xf32>
    %51 = arith.select %48, %49, %50 : vector<128x128xi1>, vector<128x128xf32>
    %52 = arith.mulf %41, %41 : vector<8x128xf32>
    %53 = tpu.concatenate %41, %52 in 0 : vector<8x128xf32>, vector<8x128xf32> -> vector<16x128xf32>
    %cst_23 = arith.constant dense<0.000000e+00> : vector<16x128xf32>
    %54 = tpu.matmul %53, %51, %cst_23 {dimension_numbers = #tpu.dot_dimension_numbers<[1], [0], [0], [1], [0, 0, 1, 1], [], []>, precision = #tpu.contract_precision<fp32>} : vector<16x128xf32>, vector<128x128xf32>, vector<16x128xf32> -> vector<16x128xf32>
    %55 = vector.extract_strided_slice %54 {offsets = [0, 0], sizes = [8, 128], strides = [1, 1]} : vector<16x128xf32> to vector<8x128xf32>
    %56 = vector.extract_strided_slice %54 {offsets = [8, 0], sizes = [8, 128], strides = [1, 1]} : vector<16x128xf32> to vector<8x128xf32>
    %57 = arith.mulf %55, %55 : vector<8x128xf32>
    %58 = arith.subf %56, %57 : vector<8x128xf32>
    %cst_24 = arith.constant 0.000000e+00 : f32
    %59 = vector.broadcast %cst_24 : f32 to vector<8x128xf32>
    %60 = arith.maximumf %58, %59 : vector<8x128xf32>
    %cst_25 = arith.constant 9.99999974E-6 : f32
    %61 = vector.broadcast %cst_25 : f32 to vector<8x128xf32>
    %62 = arith.addf %60, %61 : vector<8x128xf32>
    %63 = math.rsqrt %62 : vector<8x128xf32>
    %64 = vector.broadcast %42 : vector<1x128xf32> to vector<8x128xf32>
    %65 = arith.mulf %63, %64 : vector<8x128xf32>
    %66 = arith.subf %41, %55 : vector<8x128xf32>
    %67 = arith.mulf %66, %65 : vector<8x128xf32>
    %68 = vector.broadcast %43 : vector<1x128xf32> to vector<8x128xf32>
    %69 = arith.addf %67, %68 : vector<8x128xf32>
    %cst_26 = arith.constant 0.000000e+00 : f32
    %70 = vector.broadcast %cst_26 : f32 to vector<8x128xf32>
    %71 = arith.maximumf %69, %70 : vector<8x128xf32>
    %c1_27 = arith.constant 1 : index
    %c0_28 = arith.constant 0 : index
    %c0_29 = arith.constant 0 : index
    %72 = vector.load %arg3[%c1_27, %c0_28, %c0_29] : memref<6x128x128xf32, #tpu.memory_space<vmem>>, vector<1x128x128xf32>
    %73 = vector.shape_cast %72 : vector<1x128x128xf32> to vector<128x128xf32>
    %cst_30 = arith.constant dense<0.000000e+00> : vector<8x128xf32>
    %74 = tpu.matmul %71, %73, %cst_30 {dimension_numbers = #tpu.dot_dimension_numbers<[1], [0], [0], [1], [0, 0, 1, 1], [], []>, precision = #tpu.contract_precision<fp32>} : vector<8x128xf32>, vector<128x128xf32>, vector<8x128xf32> -> vector<8x128xf32>
    %c2 = arith.constant 2 : index
    %c0_31 = arith.constant 0 : index
    %75 = vector.load %arg4[%c2, %c0_31] : memref<21x128xf32, #tpu.memory_space<vmem>>, vector<1x128xf32>
    %76 = vector.broadcast %75 : vector<1x128xf32> to vector<8x128xf32>
    %77 = arith.addf %74, %76 : vector<8x128xf32>
    %c9 = arith.constant 9 : index
    %c0_32 = arith.constant 0 : index
    %78 = vector.load %arg4[%c9, %c0_32] : memref<21x128xf32, #tpu.memory_space<vmem>>, vector<1x128xf32>
    %c16 = arith.constant 16 : index
    %c0_33 = arith.constant 0 : index
    %79 = vector.load %arg4[%c16, %c0_33] : memref<21x128xf32, #tpu.memory_space<vmem>>, vector<1x128xf32>
    %80 = tpu.iota {dimensions = array<i32: 0>} : vector<128x128xi32>
    %81 = tpu.iota {dimensions = array<i32: 1>} : vector<128x128xi32>
    %82 = arith.xori %80, %81 : vector<128x128xi32>
    %c32_i32_34 = arith.constant 32 : i32
    %83 = vector.broadcast %c32_i32_34 : i32 to vector<128x128xi32>
    %84 = arith.cmpi slt, %82, %83 : vector<128x128xi32>
    %cst_35 = arith.constant 3.125000e-02 : f32
    %cst_36 = arith.constant 0.000000e+00 : f32
    %85 = vector.broadcast %cst_35 : f32 to vector<128x128xf32>
    %86 = vector.broadcast %cst_36 : f32 to vector<128x128xf32>
    %87 = arith.select %84, %85, %86 : vector<128x128xi1>, vector<128x128xf32>
    %88 = arith.mulf %77, %77 : vector<8x128xf32>
    %89 = tpu.concatenate %77, %88 in 0 : vector<8x128xf32>, vector<8x128xf32> -> vector<16x128xf32>
    %cst_37 = arith.constant dense<0.000000e+00> : vector<16x128xf32>
    %90 = tpu.matmul %89, %87, %cst_37 {dimension_numbers = #tpu.dot_dimension_numbers<[1], [0], [0], [1], [0, 0, 1, 1], [], []>, precision = #tpu.contract_precision<fp32>} : vector<16x128xf32>, vector<128x128xf32>, vector<16x128xf32> -> vector<16x128xf32>
    %91 = vector.extract_strided_slice %90 {offsets = [0, 0], sizes = [8, 128], strides = [1, 1]} : vector<16x128xf32> to vector<8x128xf32>
    %92 = vector.extract_strided_slice %90 {offsets = [8, 0], sizes = [8, 128], strides = [1, 1]} : vector<16x128xf32> to vector<8x128xf32>
    %93 = arith.mulf %91, %91 : vector<8x128xf32>
    %94 = arith.subf %92, %93 : vector<8x128xf32>
    %cst_38 = arith.constant 0.000000e+00 : f32
    %95 = vector.broadcast %cst_38 : f32 to vector<8x128xf32>
    %96 = arith.maximumf %94, %95 : vector<8x128xf32>
    %cst_39 = arith.constant 9.99999974E-6 : f32
    %97 = vector.broadcast %cst_39 : f32 to vector<8x128xf32>
    %98 = arith.addf %96, %97 : vector<8x128xf32>
    %99 = math.rsqrt %98 : vector<8x128xf32>
    %100 = vector.broadcast %78 : vector<1x128xf32> to vector<8x128xf32>
    %101 = arith.mulf %99, %100 : vector<8x128xf32>
    %102 = arith.subf %77, %91 : vector<8x128xf32>
    %103 = arith.mulf %102, %101 : vector<8x128xf32>
    %104 = vector.broadcast %79 : vector<1x128xf32> to vector<8x128xf32>
    %105 = arith.addf %103, %104 : vector<8x128xf32>
    %cst_40 = arith.constant 0.000000e+00 : f32
    %106 = vector.broadcast %cst_40 : f32 to vector<8x128xf32>
    %107 = arith.maximumf %105, %106 : vector<8x128xf32>
    %c2_41 = arith.constant 2 : index
    %c0_42 = arith.constant 0 : index
    %c0_43 = arith.constant 0 : index
    %108 = vector.load %arg3[%c2_41, %c0_42, %c0_43] : memref<6x128x128xf32, #tpu.memory_space<vmem>>, vector<1x128x128xf32>
    %109 = vector.shape_cast %108 : vector<1x128x128xf32> to vector<128x128xf32>
    %cst_44 = arith.constant dense<0.000000e+00> : vector<8x128xf32>
    %110 = tpu.matmul %107, %109, %cst_44 {dimension_numbers = #tpu.dot_dimension_numbers<[1], [0], [0], [1], [0, 0, 1, 1], [], []>, precision = #tpu.contract_precision<fp32>} : vector<8x128xf32>, vector<128x128xf32>, vector<8x128xf32> -> vector<8x128xf32>
    %c3 = arith.constant 3 : index
    %c0_45 = arith.constant 0 : index
    %111 = vector.load %arg4[%c3, %c0_45] : memref<21x128xf32, #tpu.memory_space<vmem>>, vector<1x128xf32>
    %112 = vector.broadcast %111 : vector<1x128xf32> to vector<8x128xf32>
    %113 = arith.addf %110, %112 : vector<8x128xf32>
    %c10 = arith.constant 10 : index
    %c0_46 = arith.constant 0 : index
    %114 = vector.load %arg4[%c10, %c0_46] : memref<21x128xf32, #tpu.memory_space<vmem>>, vector<1x128xf32>
    %c17 = arith.constant 17 : index
    %c0_47 = arith.constant 0 : index
    %115 = vector.load %arg4[%c17, %c0_47] : memref<21x128xf32, #tpu.memory_space<vmem>>, vector<1x128xf32>
    %116 = tpu.iota {dimensions = array<i32: 0>} : vector<128x128xi32>
    %117 = tpu.iota {dimensions = array<i32: 1>} : vector<128x128xi32>
    %118 = arith.xori %116, %117 : vector<128x128xi32>
    %c32_i32_48 = arith.constant 32 : i32
    %119 = vector.broadcast %c32_i32_48 : i32 to vector<128x128xi32>
    %120 = arith.cmpi slt, %118, %119 : vector<128x128xi32>
    %cst_49 = arith.constant 3.125000e-02 : f32
    %cst_50 = arith.constant 0.000000e+00 : f32
    %121 = vector.broadcast %cst_49 : f32 to vector<128x128xf32>
    %122 = vector.broadcast %cst_50 : f32 to vector<128x128xf32>
    %123 = arith.select %120, %121, %122 : vector<128x128xi1>, vector<128x128xf32>
    %124 = arith.mulf %113, %113 : vector<8x128xf32>
    %125 = tpu.concatenate %113, %124 in 0 : vector<8x128xf32>, vector<8x128xf32> -> vector<16x128xf32>
    %cst_51 = arith.constant dense<0.000000e+00> : vector<16x128xf32>
    %126 = tpu.matmul %125, %123, %cst_51 {dimension_numbers = #tpu.dot_dimension_numbers<[1], [0], [0], [1], [0, 0, 1, 1], [], []>, precision = #tpu.contract_precision<fp32>} : vector<16x128xf32>, vector<128x128xf32>, vector<16x128xf32> -> vector<16x128xf32>
    %127 = vector.extract_strided_slice %126 {offsets = [0, 0], sizes = [8, 128], strides = [1, 1]} : vector<16x128xf32> to vector<8x128xf32>
    %128 = vector.extract_strided_slice %126 {offsets = [8, 0], sizes = [8, 128], strides = [1, 1]} : vector<16x128xf32> to vector<8x128xf32>
    %129 = arith.mulf %127, %127 : vector<8x128xf32>
    %130 = arith.subf %128, %129 : vector<8x128xf32>
    %cst_52 = arith.constant 0.000000e+00 : f32
    %131 = vector.broadcast %cst_52 : f32 to vector<8x128xf32>
    %132 = arith.maximumf %130, %131 : vector<8x128xf32>
    %cst_53 = arith.constant 9.99999974E-6 : f32
    %133 = vector.broadcast %cst_53 : f32 to vector<8x128xf32>
    %134 = arith.addf %132, %133 : vector<8x128xf32>
    %135 = math.rsqrt %134 : vector<8x128xf32>
    %136 = vector.broadcast %114 : vector<1x128xf32> to vector<8x128xf32>
    %137 = arith.mulf %135, %136 : vector<8x128xf32>
    %138 = arith.subf %113, %127 : vector<8x128xf32>
    %139 = arith.mulf %138, %137 : vector<8x128xf32>
    %140 = vector.broadcast %115 : vector<1x128xf32> to vector<8x128xf32>
    %141 = arith.addf %139, %140 : vector<8x128xf32>
    %cst_54 = arith.constant 0.000000e+00 : f32
    %142 = vector.broadcast %cst_54 : f32 to vector<8x128xf32>
    %143 = arith.maximumf %141, %142 : vector<8x128xf32>
    %c3_55 = arith.constant 3 : index
    %c0_56 = arith.constant 0 : index
    %c0_57 = arith.constant 0 : index
    %144 = vector.load %arg3[%c3_55, %c0_56, %c0_57] : memref<6x128x128xf32, #tpu.memory_space<vmem>>, vector<1x128x128xf32>
    %145 = vector.shape_cast %144 : vector<1x128x128xf32> to vector<128x128xf32>
    %cst_58 = arith.constant dense<0.000000e+00> : vector<8x128xf32>
    %146 = tpu.matmul %143, %145, %cst_58 {dimension_numbers = #tpu.dot_dimension_numbers<[1], [0], [0], [1], [0, 0, 1, 1], [], []>, precision = #tpu.contract_precision<fp32>} : vector<8x128xf32>, vector<128x128xf32>, vector<8x128xf32> -> vector<8x128xf32>
    %c4 = arith.constant 4 : index
    %c0_59 = arith.constant 0 : index
    %147 = vector.load %arg4[%c4, %c0_59] : memref<21x128xf32, #tpu.memory_space<vmem>>, vector<1x128xf32>
    %148 = vector.broadcast %147 : vector<1x128xf32> to vector<8x128xf32>
    %149 = arith.addf %146, %148 : vector<8x128xf32>
    %c11 = arith.constant 11 : index
    %c0_60 = arith.constant 0 : index
    %150 = vector.load %arg4[%c11, %c0_60] : memref<21x128xf32, #tpu.memory_space<vmem>>, vector<1x128xf32>
    %c18 = arith.constant 18 : index
    %c0_61 = arith.constant 0 : index
    %151 = vector.load %arg4[%c18, %c0_61] : memref<21x128xf32, #tpu.memory_space<vmem>>, vector<1x128xf32>
    %152 = tpu.iota {dimensions = array<i32: 0>} : vector<128x128xi32>
    %153 = tpu.iota {dimensions = array<i32: 1>} : vector<128x128xi32>
    %154 = arith.xori %152, %153 : vector<128x128xi32>
    %c16_i32 = arith.constant 16 : i32
    %155 = vector.broadcast %c16_i32 : i32 to vector<128x128xi32>
    %156 = arith.cmpi slt, %154, %155 : vector<128x128xi32>
    %cst_62 = arith.constant 6.250000e-02 : f32
    %cst_63 = arith.constant 0.000000e+00 : f32
    %157 = vector.broadcast %cst_62 : f32 to vector<128x128xf32>
    %158 = vector.broadcast %cst_63 : f32 to vector<128x128xf32>
    %159 = arith.select %156, %157, %158 : vector<128x128xi1>, vector<128x128xf32>
    %160 = arith.mulf %149, %149 : vector<8x128xf32>
    %161 = tpu.concatenate %149, %160 in 0 : vector<8x128xf32>, vector<8x128xf32> -> vector<16x128xf32>
    %cst_64 = arith.constant dense<0.000000e+00> : vector<16x128xf32>
    %162 = tpu.matmul %161, %159, %cst_64 {dimension_numbers = #tpu.dot_dimension_numbers<[1], [0], [0], [1], [0, 0, 1, 1], [], []>, precision = #tpu.contract_precision<fp32>} : vector<16x128xf32>, vector<128x128xf32>, vector<16x128xf32> -> vector<16x128xf32>
    %163 = vector.extract_strided_slice %162 {offsets = [0, 0], sizes = [8, 128], strides = [1, 1]} : vector<16x128xf32> to vector<8x128xf32>
    %164 = vector.extract_strided_slice %162 {offsets = [8, 0], sizes = [8, 128], strides = [1, 1]} : vector<16x128xf32> to vector<8x128xf32>
    %165 = arith.mulf %163, %163 : vector<8x128xf32>
    %166 = arith.subf %164, %165 : vector<8x128xf32>
    %cst_65 = arith.constant 0.000000e+00 : f32
    %167 = vector.broadcast %cst_65 : f32 to vector<8x128xf32>
    %168 = arith.maximumf %166, %167 : vector<8x128xf32>
    %cst_66 = arith.constant 9.99999974E-6 : f32
    %169 = vector.broadcast %cst_66 : f32 to vector<8x128xf32>
    %170 = arith.addf %168, %169 : vector<8x128xf32>
    %171 = math.rsqrt %170 : vector<8x128xf32>
    %172 = vector.broadcast %150 : vector<1x128xf32> to vector<8x128xf32>
    %173 = arith.mulf %171, %172 : vector<8x128xf32>
    %174 = arith.subf %149, %163 : vector<8x128xf32>
    %175 = arith.mulf %174, %173 : vector<8x128xf32>
    %176 = vector.broadcast %151 : vector<1x128xf32> to vector<8x128xf32>
    %177 = arith.addf %175, %176 : vector<8x128xf32>
    %cst_67 = arith.constant 0.000000e+00 : f32
    %178 = vector.broadcast %cst_67 : f32 to vector<8x128xf32>
    %179 = arith.maximumf %177, %178 : vector<8x128xf32>
    %c4_68 = arith.constant 4 : index
    %c0_69 = arith.constant 0 : index
    %c0_70 = arith.constant 0 : index
    %180 = vector.load %arg3[%c4_68, %c0_69, %c0_70] : memref<6x128x128xf32, #tpu.memory_space<vmem>>, vector<1x128x128xf32>
    %181 = vector.shape_cast %180 : vector<1x128x128xf32> to vector<128x128xf32>
    %cst_71 = arith.constant dense<0.000000e+00> : vector<8x128xf32>
    %182 = tpu.matmul %179, %181, %cst_71 {dimension_numbers = #tpu.dot_dimension_numbers<[1], [0], [0], [1], [0, 0, 1, 1], [], []>, precision = #tpu.contract_precision<fp32>} : vector<8x128xf32>, vector<128x128xf32>, vector<8x128xf32> -> vector<8x128xf32>
    %c5 = arith.constant 5 : index
    %c0_72 = arith.constant 0 : index
    %183 = vector.load %arg4[%c5, %c0_72] : memref<21x128xf32, #tpu.memory_space<vmem>>, vector<1x128xf32>
    %184 = vector.broadcast %183 : vector<1x128xf32> to vector<8x128xf32>
    %185 = arith.addf %182, %184 : vector<8x128xf32>
    %c12 = arith.constant 12 : index
    %c0_73 = arith.constant 0 : index
    %186 = vector.load %arg4[%c12, %c0_73] : memref<21x128xf32, #tpu.memory_space<vmem>>, vector<1x128xf32>
    %c19 = arith.constant 19 : index
    %c0_74 = arith.constant 0 : index
    %187 = vector.load %arg4[%c19, %c0_74] : memref<21x128xf32, #tpu.memory_space<vmem>>, vector<1x128xf32>
    %188 = tpu.iota {dimensions = array<i32: 0>} : vector<128x128xi32>
    %189 = tpu.iota {dimensions = array<i32: 1>} : vector<128x128xi32>
    %190 = arith.xori %188, %189 : vector<128x128xi32>
    %c8_i32 = arith.constant 8 : i32
    %191 = vector.broadcast %c8_i32 : i32 to vector<128x128xi32>
    %192 = arith.cmpi slt, %190, %191 : vector<128x128xi32>
    %cst_75 = arith.constant 1.250000e-01 : f32
    %cst_76 = arith.constant 0.000000e+00 : f32
    %193 = vector.broadcast %cst_75 : f32 to vector<128x128xf32>
    %194 = vector.broadcast %cst_76 : f32 to vector<128x128xf32>
    %195 = arith.select %192, %193, %194 : vector<128x128xi1>, vector<128x128xf32>
    %196 = arith.mulf %185, %185 : vector<8x128xf32>
    %197 = tpu.concatenate %185, %196 in 0 : vector<8x128xf32>, vector<8x128xf32> -> vector<16x128xf32>
    %cst_77 = arith.constant dense<0.000000e+00> : vector<16x128xf32>
    %198 = tpu.matmul %197, %195, %cst_77 {dimension_numbers = #tpu.dot_dimension_numbers<[1], [0], [0], [1], [0, 0, 1, 1], [], []>, precision = #tpu.contract_precision<fp32>} : vector<16x128xf32>, vector<128x128xf32>, vector<16x128xf32> -> vector<16x128xf32>
    %199 = vector.extract_strided_slice %198 {offsets = [0, 0], sizes = [8, 128], strides = [1, 1]} : vector<16x128xf32> to vector<8x128xf32>
    %200 = vector.extract_strided_slice %198 {offsets = [8, 0], sizes = [8, 128], strides = [1, 1]} : vector<16x128xf32> to vector<8x128xf32>
    %201 = arith.mulf %199, %199 : vector<8x128xf32>
    %202 = arith.subf %200, %201 : vector<8x128xf32>
    %cst_78 = arith.constant 0.000000e+00 : f32
    %203 = vector.broadcast %cst_78 : f32 to vector<8x128xf32>
    %204 = arith.maximumf %202, %203 : vector<8x128xf32>
    %cst_79 = arith.constant 9.99999974E-6 : f32
    %205 = vector.broadcast %cst_79 : f32 to vector<8x128xf32>
    %206 = arith.addf %204, %205 : vector<8x128xf32>
    %207 = math.rsqrt %206 : vector<8x128xf32>
    %208 = vector.broadcast %186 : vector<1x128xf32> to vector<8x128xf32>
    %209 = arith.mulf %207, %208 : vector<8x128xf32>
    %210 = arith.subf %185, %199 : vector<8x128xf32>
    %211 = arith.mulf %210, %209 : vector<8x128xf32>
    %212 = vector.broadcast %187 : vector<1x128xf32> to vector<8x128xf32>
    %213 = arith.addf %211, %212 : vector<8x128xf32>
    %cst_80 = arith.constant 0.000000e+00 : f32
    %214 = vector.broadcast %cst_80 : f32 to vector<8x128xf32>
    %215 = arith.maximumf %213, %214 : vector<8x128xf32>
    %c5_81 = arith.constant 5 : index
    %c0_82 = arith.constant 0 : index
    %c0_83 = arith.constant 0 : index
    %216 = vector.load %arg3[%c5_81, %c0_82, %c0_83] : memref<6x128x128xf32, #tpu.memory_space<vmem>>, vector<1x128x128xf32>
    %217 = vector.shape_cast %216 : vector<1x128x128xf32> to vector<128x128xf32>
    %cst_84 = arith.constant dense<0.000000e+00> : vector<8x128xf32>
    %218 = tpu.matmul %215, %217, %cst_84 {dimension_numbers = #tpu.dot_dimension_numbers<[1], [0], [0], [1], [0, 0, 1, 1], [], []>, precision = #tpu.contract_precision<fp32>} : vector<8x128xf32>, vector<128x128xf32>, vector<8x128xf32> -> vector<8x128xf32>
    %c6 = arith.constant 6 : index
    %c0_85 = arith.constant 0 : index
    %219 = vector.load %arg4[%c6, %c0_85] : memref<21x128xf32, #tpu.memory_space<vmem>>, vector<1x128xf32>
    %220 = vector.broadcast %219 : vector<1x128xf32> to vector<8x128xf32>
    %221 = arith.addf %218, %220 : vector<8x128xf32>
    %cst_86 = arith.constant dense<0.000000e+00> : vector<8xf32>
    %222 = vector.multi_reduction <add>, %221, %cst_86 [1] : vector<8x128xf32> to vector<8xf32>
    %223 = vector.shape_cast %222 : vector<8xf32> to vector<8x1xf32>
    %cst_87 = arith.constant 0.333333343 : f32
    %224 = vector.broadcast %cst_87 : f32 to vector<8x1xf32>
    %225 = arith.mulf %223, %224 : vector<8x1xf32>
    %c0_88 = arith.constant 0 : index
    %c0_89 = arith.constant 0 : index
    %226 = vector.load %arg5[%c0_88, %c0_89] : memref<8x1xf32, #tpu.memory_space<vmem>>, vector<8x1xf32>
    tpu.vector_store %arg5[%c0_88, %c0_89], %225 {strides = array<i32>} : memref<8x1xf32, #tpu.memory_space<vmem>>, vector<8x1xf32>,
    return
  }
  func.func @transform_0(%arg0: i32) -> (i32, i32) {
    %c0_i32 = arith.constant 0 : i32
    %c0_i32_0 = arith.constant 0 : i32
    return %arg0, %c0_i32 : i32, i32
  }
  func.func @transform_1(%arg0: i32) -> (i32, i32) {
    %c0_i32 = arith.constant 0 : i32
    %c0_i32_0 = arith.constant 0 : i32
    %c0_i32_1 = arith.constant 0 : i32
    return %c0_i32, %c0_i32_0 : i32, i32
  }
  func.func @transform_2(%arg0: i32) -> (i32, i32, i32) {
    %c0_i32 = arith.constant 0 : i32
    %c0_i32_0 = arith.constant 0 : i32
    %c0_i32_1 = arith.constant 0 : i32
    %c0_i32_2 = arith.constant 0 : i32
    return %c0_i32, %c0_i32_0, %c0_i32_1 : i32, i32, i32
  }
  func.func @transform_3(%arg0: i32) -> (i32, i32) {
    %c0_i32 = arith.constant 0 : i32
    %c0_i32_0 = arith.constant 0 : i32
    %c0_i32_1 = arith.constant 0 : i32
    return %c0_i32, %c0_i32_0 : i32, i32
  }
  func.func @transform_4(%arg0: i32) -> (i32, i32) {
    %c0_i32 = arith.constant 0 : i32
    %c0_i32_0 = arith.constant 0 : i32
    return %arg0, %c0_i32 : i32, i32
  }
}

</mosaic_0001>

<bundles_post_ra>
// kernel: fwd.1
= control target key start
LH: loop header
LB: loop body
LE: loop exit
PB: predicated region body
PF: predicated region fallthrough
CT: control target
= control target key end

     0   :  { %9 = vsyncpa [#allocation3], 0  ;;  %s8385_s0 = inlined_call_operand.vmem [shape: f32[8,128], index: 0, kind: input, shape index: {}]   ;;  %s8386_s1 = inlined_call_operand.hbm [shape: f32[128,128], index: 1, kind: input, shape index: {}]   ;;  %s8387_s2 = inlined_call_operand.hbm [shape: f32[6,128,128], index: 2, kind: input, shape index: {}]   ;;  %s8388_s3 = inlined_call_operand.vmem [shape: f32[21,128], index: 3, kind: input, shape index: {}]   ;;  %s8389_s4 = inlined_call_operand.vmem [shape: f32[8,1], index: 4, kind: output, shape index: {}]  }
   0x1   :  { %s17_s17 = sshll.u32 %s8386_s1, 4  ;;  %s18_s17 = int_to_ptr.hbm [resolvable:$true] %s17_s17 }
   0x2   :  { %10 = vsyncpa [#allocation5], 0  ;;  %s4889_s18 = smov [#allocation2]   ;;  %s30_s22 = sshll.u32 %s8387_s2, 4  ;;  %s31_s22 = int_to_ptr.hbm [resolvable:$true] %s30_s22 }
   0x3   :  { %s19_s19 = sshll.u32 %s4889_s18, 4  ;;  %s4890_s23 = smov 128   ;;  %s20_s19 = int_to_ptr.vmem [resolvable:$true] %s19_s19 }
   0x4   :  { %s4891_s24 = smov 8   ;;  %s4892_s25 = smov [#allocation4]  }
   0x5   :  { %25 = dma.hbm_to_vmem [thread:$0]  %s18_s17, 2048, %s20_s19, [#allocation3], %s4890_s23, %s4890_s23, %s4891_s24  }
   0x6   :  { %s32_s26 = sshll.u32 %s4892_s25, 4  ;;  %s33_s26 = int_to_ptr.vmem [resolvable:$true] %s32_s26 }
   0x7   :  { %38 = dma.hbm_to_vmem [thread:$0]  %s31_s22, 12288, %s33_s26, [#allocation5], %s4890_s23, %s4890_s23, %s4891_s24  }
   0x8   :  { %4885 = dma.done.wait [#allocation3], 2048  }
   0x9   :  { %4886 = vsyncadd [#allocation3], 4294965248 }
   0xa   :  { %4887 = dma.done.wait [#allocation5], 12288  }
   0xb   :  { %4888 = vsyncadd [#allocation5], 4294955008  ;;  %v65_v0 = vld [vmem:[#allocation2 + $0x78] sm:$0xff]  ;;  %v64_v1 = vld [vmem:[#allocation2 + $0x70] sm:$0xff] }
   0xc   :  { %v63_v2 = vld [vmem:[#allocation2 + $0x68] sm:$0xff]  ;;  %v4928_v3 = vand.u32 4294901760, %v65_v0  ;;  %v4930_v4 = vand.u32 4294901760, %v64_v1  ;;  %v62_v6 = vld [vmem:[#allocation2 + $0x60] sm:$0xff]  ;;  %v61_v7 = vld [vmem:[#allocation2 + $0x58] sm:$0xff] }
   0xd   :  { %v4932_v5 = vand.u32 4294901760, %v63_v2  ;;  %v60_v8 = vld [vmem:[#allocation2 + $0x50] sm:$0xff]  ;;  %v4934_v9 = vand.u32 4294901760, %v62_v6  ;;  %v4936_v10 = vand.u32 4294901760, %v61_v7  ;;  %v59_v12 = vld [vmem:[#allocation2 + $0x48] sm:$0xff]  ;;  %v58_v13 = vld [vmem:[#allocation2 + $0x40] sm:$0xff] }
   0xe   :  { %v4938_v11 = vand.u32 4294901760, %v60_v8  ;;  %69 = vmatpush.msra.mxu0 %v4928_v3  ;;  %v4942_v14 = vsub.f32 %v65_v0, %v4928_v3  ;;  %v4945_v15 = vsub.f32 %v64_v1, %v4930_v4  ;;  %v4950_v17 = vand.u32 4294901760, %v59_v12  ;;  %265 = vmatpush.msra.mxu3 %v4928_v3  ;;  %v57_v21 = vld [vmem:[#allocation2 + $0x38] sm:$0xff]  ;;  %v56_v29 = vld [vmem:[#allocation2 + $0x30] sm:$0xff]  ;;  %v55_v34 = vld [vmem:[#allocation2 + $0x28] sm:$0xff] }
   0xf   :  { %v4948_v16 = vsub.f32 %v63_v2, %v4932_v5  ;;  %v4954_v18 = vsub.f32 %v62_v6, %v4934_v9  ;;  %v4957_v19 = vsub.f32 %v61_v7, %v4936_v10  ;;  %v4959_v20 = vand.u32 4294901760, %v58_v13  ;;  %v54_v42 = vld [vmem:[#allocation2 + $0x20] sm:$0xff]  ;;  %v53_v47 = vld [vmem:[#allocation2 + $0x18] sm:$0xff]  ;;  %v52_v49 = vld [vmem:[#allocation2 + $0x10] sm:$0xff] }
  0x10   :  { %71 = vmatpush.msra.mxu0 %v4930_v4  ;;  %v111_v22 = vand.u32 4294901760, %v4942_v14  ;;  %v117_v23 = vand.u32 4294901760, %v4945_v15  ;;  %v4966_v25 = vsub.f32 %v60_v8, %v4938_v11  ;;  %212 = vmatpush.msra.mxu2 %v4942_v14  ;;  %v4972_v28 = vsub.f32 %v59_v12, %v4950_v17  ;;  %v51_v61 = vld [vmem:[#allocation2 + $0x8] sm:$0xff]  ;;  %v50_v2 = vld [vmem:[#allocation2] sm:$0xff] }
  0x11   :  { %v123_v24 = vand.u32 4294901760, %v4948_v16  ;;  %v129_v26 = vand.u32 4294901760, %v4954_v18  ;;  %v135_v27 = vand.u32 4294901760, %v4957_v19  ;;  %267 = vmatpush.msra.mxu3 %v4930_v4  ;;  %v4985_v33 = vand.u32 4294901760, %v57_v21 }
  0x12   :  { %v112_v30 = vsub.f32 %v4942_v14, %v111_v22  ;;  %73 = vmatpush.msra.mxu0 %v4932_v5  ;;  %v118_v31 = vsub.f32 %v4945_v15, %v117_v23  ;;  %215 = vmatpush.msra.mxu2 %v4945_v15  ;;  %v4989_v35 = vsub.f32 %v58_v13, %v4959_v20  ;;  %v141_v39 = vand.u32 4294901760, %v4966_v25 }
  0x13   :  { %v124_v32 = vsub.f32 %v4948_v16, %v123_v24  ;;  %269 = vmatpush.msra.mxu3 %v4932_v5  ;;  %v130_v38 = vsub.f32 %v4954_v18, %v129_v26  ;;  %v136_v40 = vsub.f32 %v4957_v19, %v135_v27  ;;  %v147_v41 = vand.u32 4294901760, %v4972_v28 }
  0x14   :  { %v113_v36 = vand.u32 4294901760, %v112_v30  ;;  %v119_v37 = vand.u32 4294901760, %v118_v31  ;;  %75 = vmatpush.msra.mxu0 %v4934_v9  ;;  %218 = vmatpush.msra.mxu2 %v4948_v16  ;;  %v5004_v44 = vand.u32 4294901760, %v56_v29  ;;  %v5007_v45 = vsub.f32 %v57_v21, %v4985_v33 }
  0x15   :  { %271 = vmatpush.msra.mxu3 %v4934_v9  ;;  %v125_v43 = vand.u32 4294901760, %v124_v32  ;;  %v5009_v46 = vand.u32 4294901760, %v55_v34  ;;  %v153_v48 = vand.u32 4294901760, %v4989_v35  ;;  %v131_v50 = vand.u32 4294901760, %v130_v38 }
  0x16   :  { %114 = vmatpush.msra.mxu1 %v113_v36  ;;  %77 = vmatpush.msra.mxu0 %v4936_v10  ;;  %v142_v51 = vsub.f32 %v4966_v25, %v141_v39  ;;  %v5019_v52 = vsub.f32 %v56_v29, %v5004_v44  ;;  %v5021_v53 = vand.u32 4294901760, %v54_v42  ;;  %v5023_v54 = vand.u32 4294901760, %v53_v47  ;;  %v49_v29 = vld [vmem:[%s8385_s0] sm:$0xff] }
  0x17   :  { %221 = vmatpush.msra.mxu2 %v4954_v18  ;;  %273 = vmatpush.msra.mxu3 %v4936_v10  ;;  %v137_v55 = vand.u32 4294901760, %v136_v40  ;;  %v148_v56 = vsub.f32 %v4972_v28, %v147_v41  ;;  %v159_v57 = vand.u32 4294901760, %v5007_v45  ;;  %v5033_v58 = vsub.f32 %v55_v34, %v5009_v46 }
  0x18   :  { %120 = vmatpush.msra.mxu1 %v119_v37  ;;  %79 = vmatpush.msra.mxu0 %v4938_v11  ;;  %v154_v59 = vsub.f32 %v4989_v35, %v153_v48  ;;  %v5038_v60 = vand.u32 4294901760, %v52_v49  ;;  %v143_v62 = vand.u32 4294901760, %v142_v51  ;;  %v165_v63 = vand.u32 4294901760, %v5019_v52 }
  0x19   :  { %224 = vmatpush.msra.mxu2 %v4957_v19  ;;  %275 = vmatpush.msra.mxu3 %v4938_v11  ;;  %v5045_v0 = vsub.f32 %v54_v42, %v5021_v53  ;;  %v5048_v1 = vsub.f32 %v53_v47, %v5023_v54  ;;  %v149_v6 = vand.u32 4294901760, %v148_v56  ;;  %v160_v7 = vsub.f32 %v5007_v45, %v159_v57 }
  0x1a   :  { %126 = vmatpush.msra.mxu1 %v125_v43  ;;  %81 = vmatpush.msra.mxu0 %v4950_v17  ;;  %v171_v8 = vand.u32 4294901760, %v5033_v58  ;;  %v5057_v12 = vand.u32 4294901760, %v51_v61  ;;  %v155_v13 = vand.u32 4294901760, %v154_v59  ;;  %v5060_v21 = vsub.f32 %v52_v49, %v5038_v60 }
  0x1b   :  { %227 = vmatpush.msra.mxu2 %v4966_v25  ;;  %277 = vmatpush.msra.mxu3 %v4950_v17  ;;  %v166_v30 = vsub.f32 %v5019_v52, %v165_v63  ;;  %v177_v31 = vand.u32 4294901760, %v5045_v0  ;;  %v5072_v32 = vand.u32 4294901760, %v50_v2  ;;  %v5074_v34 = vand.u32 4294901760, %v49_v29 }
  0x1c   :  { %132 = vmatpush.msra.mxu1 %v131_v50  ;;  %83 = vmatpush.msra.mxu0 %v4959_v20  ;;  %v183_v36 = vand.u32 4294901760, %v5048_v1  ;;  %v161_v37 = vand.u32 4294901760, %v160_v7  ;;  %v172_v38 = vsub.f32 %v5033_v58, %v171_v8  ;;  %v5084_v40 = vsub.f32 %v51_v61, %v5057_v12 }
  0x1d   :  { %230 = vmatpush.msra.mxu2 %v4972_v28  ;;  %279 = vmatpush.msra.mxu3 %v4959_v20  ;;  %v101_v42 = vsub.f32 %v49_v29, %v5074_v34  ;;  %v167_v43 = vand.u32 4294901760, %v166_v30  ;;  %v178_v47 = vsub.f32 %v5045_v0, %v177_v31  ;;  %v189_v49 = vand.u32 4294901760, %v5060_v21 }
  0x1e   :  { %138 = vmatpush.msra.mxu1 %v137_v55  ;;  %85 = vmatpush.msra.mxu0 %v4985_v33  ;;  %v5095_v50 = vsub.f32 %v50_v2, %v5072_v32  ;;  %v173_v51 = vand.u32 4294901760, %v172_v38  ;;  %v184_v55 = vsub.f32 %v5048_v1, %v183_v36  ;;  %v195_v56 = vand.u32 4294901760, %v5084_v40 }
  0x1f   :  { %233 = vmatpush.msra.mxu2 %v4989_v35  ;;  %281 = vmatpush.msra.mxu3 %v4985_v33  ;;  %v102_v59 = vand.u32 4294901760, %v101_v42  ;;  %v179_v61 = vand.u32 4294901760, %v178_v47  ;;  %v411_v14 = vlaneseq }
  0x20   :  { %144 = vmatpush.msra.mxu1 %v143_v62  ;;  %87 = vmatpush.msra.mxu0 %v5004_v44  ;;  %v190_v62 = vsub.f32 %v5060_v21, %v189_v49  ;;  %v201_v2 = vand.u32 4294901760, %v5095_v50  ;;  %v196_v7 = vsub.f32 %v5084_v40, %v195_v56 }
  0x21   :  { %236 = vmatpush.msra.mxu2 %v5007_v45  ;;  %283 = vmatpush.msra.mxu3 %v5004_v44  ;;  %v5138_v15 = vshrl.u32 %v411_v14, 7 }
  0x22   :  { %150 = vmatpush.msra.mxu1 %v149_v6  ;;  %89 = vmatpush.msra.mxu0 %v5009_v46  ;;  %v185_v6 = vand.u32 4294901760, %v184_v55  ;;  %v191_v29 = vand.u32 4294901760, %v190_v62  ;;  %v202_v30 = vsub.f32 %v5095_v50, %v201_v2 }
  0x23   :  { %239 = vmatpush.msra.mxu2 %v5019_v52  ;;  %285 = vmatpush.msra.mxu3 %v5009_v46  ;;  %v427_v16 = vadd.s32 120, %v5138_v15  ;;  %v426_v18 = vadd.s32 112, %v5138_v15  ;;  %v424_v19 = vadd.s32 96, %v5138_v15  ;;  %v420_v25 = vadd.s32 64, %v5138_v15 }
  0x24   :  { %156 = vmatpush.msra.mxu1 %v155_v13  ;;  %91 = vmatpush.msra.mxu0 %v5021_v53  ;;  %v103_v13 = vsub.f32 %v101_v42, %v102_v59  ;;  %v419_v47 = vadd.s32 56, %v5138_v15 }
  0x25   :  { %242 = vmatpush.msra.mxu2 %v5033_v58  ;;  %287 = vmatpush.msra.mxu3 %v5021_v53 }
  0x26   :  { %162 = vmatpush.msra.mxu1 %v161_v37  ;;  %93 = vmatpush.msra.mxu0 %v5023_v54  ;;  %v197_v37 = vand.u32 4294901760, %v196_v7  ;;  %v104_v38 = vand.u32 4294901760, %v103_v13 }
  0x27   :  { %245 = vmatpush.msra.mxu2 %v5045_v0  ;;  %289 = vmatpush.msra.mxu3 %v5023_v54 }
  0x28   :  { %168 = vmatpush.msra.mxu1 %v167_v43  ;;  %95 = vmatpush.msra.mxu0 %v5038_v60  ;;  %v203_v43 = vand.u32 4294901760, %v202_v30 }
  0x29   :  { %248 = vmatpush.msra.mxu2 %v5048_v1  ;;  %291 = vmatpush.msra.mxu3 %v5038_v60  ;;  %v418_v1 = vadd.s32 48, %v5138_v15 }
  0x2a   :  { %174 = vmatpush.msra.mxu1 %v173_v51  ;;  %97 = vmatpush.msra.mxu0 %v5057_v12 }
  0x2b   :  { %251 = vmatpush.msra.mxu2 %v5060_v21  ;;  %293 = vmatpush.msra.mxu3 %v5057_v12 }
  0x2c   :  { %180 = vmatpush.msra.mxu1 %v179_v61  ;;  %99 = vmatpush.msra.mxu0 %v5072_v32  ;;  %v8422_v61 = vmov 0.03125  }
  0x2d   :  { %254 = vmatpush.msra.mxu2 %v5084_v40  ;;  %295 = vmatpush.msra.mxu3 %v5072_v32 }
  0x2e   :  { %306 = vmatpush.msrb.mxu0 %v111_v22  ;;  %186 = vmatpush.msra.mxu1 %v185_v6  ;;  %v5140_v22 = vand.u32 127, %v411_v14 }
  0x2f   :  { %257 = vmatpush.msra.mxu2 %v5095_v50  ;;  %299 = vmatmul.f32.vlgmr.msra.gmra.mxu3 %v102_v59 }
  0x30   :  { %310 = vmatpush.msrb.mxu0 %v117_v23  ;;  %192 = vmatpush.msra.mxu1 %v191_v29  ;;  %v423_v23 = vadd.s32 88, %v5138_v15  ;;  %v5218_v62 = vxor.u32 %v5140_v22, %v420_v25 }
  0x31   :  { %260 = vmatmul.f32.vlgmr.msra.gmra.mxu2 %v101_v42  ;;  %105 = vmatmul.f32.vlgmr.msra.gmra.mxu0 %v104_v38 }
  0x32   :  { %314 = vmatpush.msrb.mxu0 %v123_v24  ;;  %198 = vmatpush.msra.mxu1 %v197_v37  ;;  %v421_v24 = vadd.s32 72, %v5138_v15  ;;  %v5172_v28 = vxor.u32 %v5140_v22, %v423_v23  ;;  %vm454_vm7 = vcmp.lt.s32.totalorder %v5218_v62, 32 }
  0x34   :  { %318 = vmatpush.msrb.mxu0 %v129_v26  ;;  %204 = vmatpush.msra.mxu1 %v203_v43  ;;  %v5157_v26 = vxor.u32 %v5140_v22, %v427_v16  ;;  %v5178_v42 = vxor.u32 %v5140_v22, %v421_v24  ;;  %vm457_vm4 = vcmp.lt.s32.totalorder %v5172_v28, 32 }
  0x35   :  { %206 = vmatmul.f32.vlgmr.msra.gmra.mxu1 %v5074_v34 }
  0x36   :  { %373 = vmatpush.msrb.mxu1 %v4928_v3  ;;  %322 = vmatpush.msrb.mxu0 %v135_v27  ;;  %v425_v3 = vadd.s32 104, %v5138_v15  ;;  %v5160_v27 = vxor.u32 %v5140_v22, %v426_v18  ;;  %vm461_vm0 = vcmp.lt.s32.totalorder %v5157_v26, 32  ;;  %vm455_vm6 = vcmp.lt.s32.totalorder %v5178_v42, 32 }
  0x37   :  { %4510 = vmatpush.msk.msrb.mxu2 %vm461_vm0, %v8422_v61 }
  0x38   :  { %375 = vmatpush.msrb.mxu1 %v4930_v4  ;;  %326 = vmatpush.msrb.mxu0 %v141_v39  ;;  %v422_v4 = vadd.s32 80, %v5138_v15  ;;  %v5163_v39 = vxor.u32 %v5140_v22, %v425_v3  ;;  %vm460_vm1 = vcmp.lt.s32.totalorder %v5160_v27, 32 }
  0x39   :  { %4511 = vmatpush.msk.msrb.mxu2 %vm460_vm1, %v8422_v61 }
  0x3a   :  { %377 = vmatpush.msrb.mxu1 %v4932_v5  ;;  %330 = vmatpush.msrb.mxu0 %v147_v41  ;;  %v5166_v5 = vxor.u32 %v5140_v22, %v424_v19  ;;  %v5175_v41 = vxor.u32 %v5140_v22, %v422_v4  ;;  %vm459_vm2 = vcmp.lt.s32.totalorder %v5163_v39, 32  ;;  %v416_v4 = vadd.s32 32, %v5138_v15 }
  0x3b   :  { %4512 = vmatpush.msk.msrb.mxu2 %vm459_vm2, %v8422_v61 }
  0x3c   :  { %379 = vmatpush.msrb.mxu1 %v4934_v9  ;;  %334 = vmatpush.msrb.mxu0 %v153_v48  ;;  %vm458_vm3 = vcmp.lt.s32.totalorder %v5166_v5, 32  ;;  %v8390_v9 = vmov 0.0   ;;  %vm456_vm5 = vcmp.lt.s32.totalorder %v5175_v41, 32 }
  0x3d   :  { %v477_v35 = vsel %vm461_vm0, 0.03125, %v8390_v9  ;;  %v476_v48 = vsel %vm460_vm1, 0.03125, %v8390_v9  ;;  %v475_v51 = vsel %vm459_vm2, 0.03125, %v8390_v9  ;;  %v472_v13 = vsel %vm456_vm5, 0.03125, %v8390_v9  ;;  %4513 = vmatpush.msk.msrb.mxu2 %vm458_vm3, %v8422_v61 }
  0x3e   :  { %381 = vmatpush.msrb.mxu1 %v4936_v10  ;;  %338 = vmatpush.msrb.mxu0 %v159_v57  ;;  %v474_v10 = vsel %vm458_vm3, 0.03125, %v8390_v9  ;;  %v5200_v55 = vsub.f32 %v477_v35, %v477_v35  ;;  %v5202_v45 = vsub.f32 %v476_v48, %v476_v48  ;;  %v5204_v57 = vsub.f32 %v475_v51, %v475_v51 }
  0x3f   :  { %v5206_v59 = vsub.f32 %v474_v10, %v474_v10  ;;  %v471_v29 = vsel %vm455_vm6, 0.03125, %v8390_v9  ;;  %v5264_v38 = vsub.f32 %v472_v13, %v472_v13  ;;  %v470_v14 = vsel %vm454_vm7, 0.03125, %v8390_v9  ;;  %4514 = vmatpush.msk.msrb.mxu2 %vm457_vm4, %v8422_v61 }
  0x40   :  { %8567 = vst [vmem:[#allocation8_spill] sm:$0xff] %v5200_v55  ;;  %383 = vmatpush.msrb.mxu1 %v4938_v11  ;;  %342 = vmatpush.msrb.mxu0 %v165_v63  ;;  %v5221_v6 = vand.u32 4294901760, %v5200_v55  ;;  %v5224_v7 = vand.u32 4294901760, %v5202_v45  ;;  %v5227_v11 = vand.u32 4294901760, %v5204_v57  ;;  %v473_v63 = vsel %vm457_vm4, 0.03125, %v8390_v9 }
  0x41   :  { %8568 = vst [vmem:[#allocation9_spill] sm:$0xff] %v5202_v45  ;;  %v5230_v52 = vand.u32 4294901760, %v5206_v59  ;;  %v5262_v37 = vsub.f32 %v473_v63, %v473_v63  ;;  %v5266_v43 = vsub.f32 %v471_v29, %v471_v29  ;;  %v5294_v23 = vsub.f32 %v470_v14, %v470_v14  ;;  %4515 = vmatpush.msk.msrb.mxu2 %vm456_vm5, %v8422_v61 }
  0x42   :  { %8569 = vst [vmem:[#allocation10_spill] sm:$0xff] %v5204_v57  ;;  %385 = vmatpush.msrb.mxu1 %v4950_v17  ;;  %346 = vmatpush.msrb.mxu0 %v171_v8  ;;  %v514_v17 = vsub.f32 %v5200_v55, %v5221_v6  ;;  %v519_v58 = vsub.f32 %v5202_v45, %v5224_v7  ;;  %v415_v29 = vadd.s32 24, %v5138_v15 }
  0x43   :  { %8570 = vst [vmem:[#allocation11_spill] sm:$0xff] %v5206_v59  ;;  %v524_v8 = vsub.f32 %v5204_v57, %v5227_v11  ;;  %v529_v30 = vsub.f32 %v5206_v59, %v5230_v52  ;;  %v5286_v0 = vand.u32 4294901760, %v5262_v37  ;;  %v5292_v19 = vand.u32 4294901760, %v5266_v43  ;;  %4516 = vmatpush.msk.msrb.mxu2 %vm455_vm6, %v8422_v61 }
  0x44   :  { %8571 = vst [vmem:[#allocation12_spill] sm:$0xff] %v5221_v6  ;;  %387 = vmatpush.msrb.mxu1 %v4959_v20  ;;  %350 = vmatpush.msrb.mxu0 %v177_v31  ;;  %v5271_v16 = vand.u32 4294901760, %v514_v17  ;;  %v5273_v18 = vand.u32 4294901760, %v519_v58  ;;  %v5289_v31 = vand.u32 4294901760, %v5264_v38  ;;  %v5316_v35 = vand.u32 4294901760, %v5294_v23 }
  0x45   :  { %8572 = vst [vmem:[#allocation13_spill] sm:$0xff] %v5224_v7  ;;  %v5275_v3 = vand.u32 4294901760, %v524_v8  ;;  %v5277_v20 = vand.u32 4294901760, %v529_v30  ;;  %v534_v24 = vsub.f32 %v5262_v37, %v5286_v0  ;;  %v414_v8 = vadd.s32 16, %v5138_v15  ;;  %4517 = vmatpush.msk.msrb.mxu2 %vm454_vm7, %v8422_v61 }
  0x46   :  { %8573 = vst [vmem:[#allocation14_spill] sm:$0xff] %v5227_v11  ;;  %389 = vmatpush.msrb.mxu1 %v4985_v33  ;;  %354 = vmatpush.msrb.mxu0 %v183_v36  ;;  %v5301_v33 = vxor.u32 %v5140_v22, %v419_v47  ;;  %v417_v36 = vadd.s32 40, %v5138_v15  ;;  %v539_v25 = vsub.f32 %v5264_v38, %v5289_v31  ;;  %v413_v30 = vadd.s32 8, %v5138_v15 }
  0x47   :  { %8574 = vst [vmem:[#allocation15_spill] sm:$0xff] %v5230_v52  ;;  %516 = vmatpush.msrb.mxu3 %v5271_v16  ;;  %v544_v47 = vsub.f32 %v5266_v43, %v5292_v19  ;;  %v5335_v48 = vand.u32 4294901760, %v534_v24 }
  0x48   :  { %8575 = vst [vmem:[#allocation16_spill] sm:$0xff] %v5262_v37  ;;  %391 = vmatpush.msrb.mxu1 %v5004_v44  ;;  %358 = vmatpush.msrb.mxu0 %v189_v49  ;;  %vm453_vm8 = vcmp.lt.s32.totalorder %v5301_v33, 32  ;;  %v5324_v44 = vxor.u32 %v5140_v22, %v418_v1  ;;  %v5327_v21 = vxor.u32 %v5140_v22, %v417_v36  ;;  %v5337_v51 = vand.u32 4294901760, %v539_v25 }
  0x49   :  { %8576 = vst [vmem:[#allocation17_spill] sm:$0xff] %v5264_v38  ;;  %521 = vmatpush.msrb.mxu3 %v5273_v18  ;;  %v5330_v49 = vxor.u32 %v5140_v22, %v416_v4  ;;  %v5339_v10 = vand.u32 4294901760, %v544_v47  ;;  %v469_v63 = vsel %vm453_vm8, 0.03125, %v8390_v9  ;;  %v5398_v36 = vxor.u32 %v5140_v22, %v5138_v15  ;;  %4518 = vmatpush.msk.msrb.mxu2 %vm453_vm8, %v8422_v61 }
  0x4a   :  { %8577 = vst [vmem:[#allocation18_spill] sm:$0xff] %v5266_v43  ;;  %393 = vmatpush.msrb.mxu1 %v5009_v46  ;;  %362 = vmatpush.msrb.mxu0 %v195_v56  ;;  %vm452_vm9 = vcmp.lt.s32.totalorder %v5324_v44, 32  ;;  %vm451_vm10 = vcmp.lt.s32.totalorder %v5327_v21, 32  ;;  %v549_v46 = vsub.f32 %v5294_v23, %v5316_v35  ;;  %v5356_v40 = vsub.f32 %v469_v63, %v469_v63 }
  0x4b   :  { %8578 = vst [vmem:[#allocation19_spill] sm:$0xff] %v5286_v0  ;;  %526 = vmatpush.msrb.mxu3 %v5275_v3  ;;  %vm450_vm11 = vcmp.lt.s32.totalorder %v5330_v49, 32  ;;  %v468_v56 = vsel %vm452_vm9, 0.03125, %v8390_v9  ;;  %v467_v13 = vsel %vm451_vm10, 0.03125, %v8390_v9  ;;  %v5408_v25 = vxor.u32 %v5140_v22, %v414_v8  ;;  %4519 = vmatpush.msk.msrb.mxu2 %vm452_vm9, %v8422_v61 }
  0x4c   :  { %8579 = vst [vmem:[#allocation20_spill] sm:$0xff] %v5289_v31  ;;  %395 = vmatpush.msrb.mxu1 %v5021_v53  ;;  %366 = vmatpush.msrb.mxu0 %v201_v2  ;;  %v5366_v53 = vsub.f32 %v468_v56, %v468_v56  ;;  %v5368_v50 = vsub.f32 %v467_v13, %v467_v13  ;;  %v466_v2 = vsel %vm450_vm11, 0.03125, %v8390_v9  ;;  %v5376_v17 = vand.u32 4294901760, %v5356_v40 }
  0x4d   :  { %8580 = vst [vmem:[#allocation21_spill] sm:$0xff] %v5292_v19  ;;  %368 = vmatmul.f32.vlgmr.msrb.gmra.mxu0 %v5074_v34  ;;  %531 = vmatpush.msrb.mxu3 %v5277_v20  ;;  %v5379_v58 = vsub.f32 %v466_v2, %v466_v2  ;;  %v5411_v47 = vxor.u32 %v5140_v22, %v413_v30  ;;  %v5414_v15 = vand.u32 4294901760, %v549_v46  ;;  %vm446_vm13 = vcmp.lt.s32.totalorder %v5398_v36, 32 }
  0x4e   :  { %8581 = vst [vmem:[#allocation22_spill] sm:$0xff] %v5294_v23  ;;  %397 = vmatpush.msrb.mxu1 %v5023_v54  ;;  %602 = vmatpush.msra.mxu0 %v5200_v55  ;;  %v5385_v14 = vand.u32 4294901760, %v5366_v53  ;;  %v5388_v1 = vand.u32 4294901760, %v5368_v50  ;;  %v5394_v54 = vxor.u32 %v5140_v22, %v415_v29  ;;  %v554_v4 = vsub.f32 %v5356_v40, %v5376_v17 }
  0x4f   :  { %8582 = vst [vmem:[#allocation23_spill] sm:$0xff] %v5316_v35  ;;  %536 = vmatpush.msrb.mxu3 %v5335_v48  ;;  %v5405_v24 = vand.u32 4294901760, %v5379_v58  ;;  %vm8492_vm14 = vcmp.lt.s32.totalorder %v5408_v25, 32  ;;  %vm8493_vm15 = vcmp.lt.s32.totalorder %v5411_v47, 32  ;;  %v462_v29 = vsel %vm446_vm13, 0.03125, %v8390_v9  ;;  %4520 = vmatpush.msk.msrb.mxu2 %vm451_vm10, %v8422_v61 }
  0x50   :  { %8583 = vst [vmem:[#allocation24_spill] sm:$0xff] %v5330_v49  ;;  %399 = vmatpush.msrb.mxu1 %v5038_v60  ;;  %604 = vmatpush.msra.mxu0 %v5202_v45  ;;  %v559_v60 = vsub.f32 %v5366_v53, %v5385_v14  ;;  %vm8494_vm12 = vcmp.lt.s32.totalorder %v5394_v54, 32  ;;  %v5430_v63 = vand.u32 4294901760, %v554_v4  ;;  %v564_v46 = vsub.f32 %v5368_v50, %v5388_v1 }
  0x51   :  { %8584 = vst [vmem:[#allocation25_spill] sm:$0xff] %v5356_v40  ;;  %541 = vmatpush.msrb.mxu3 %v5337_v51  ;;  %v465_v22 = vsel %vm8494_vm12, 0.03125, %v8390_v9  ;;  %v569_v13 = vsub.f32 %v5379_v58, %v5405_v24  ;;  %v463_v30 = vsel %vm8493_vm15, 0.03125, %v8390_v9  ;;  %v5462_v4 = vsub.f32 %v462_v29, %v462_v29  ;;  %4521 = vmatpush.msk.msrb.mxu2 %vm450_vm11, %v8422_v61 }
  0x52   :  { %8585 = vst [vmem:[#allocation26_spill] sm:$0xff] %v5366_v53  ;;  %401 = vmatpush.msrb.mxu1 %v5057_v12  ;;  %606 = vmatpush.msra.mxu0 %v5204_v57  ;;  %v5434_v56 = vsub.f32 %v465_v22, %v465_v22  ;;  %v464_v12 = vsel %vm8492_vm14, 0.03125, %v8390_v9  ;;  %v5454_v8 = vand.u32 4294901760, %v559_v60  ;;  %v5471_v60 = vsub.f32 %v463_v30, %v463_v30 }
  0x53   :  { %8586 = vst [vmem:[#allocation27_spill] sm:$0xff] %v5368_v50  ;;  %546 = vmatpush.msrb.mxu3 %v5339_v10  ;;  %v5446_v2 = vsub.f32 %v464_v12, %v464_v12  ;;  %v5474_v22 = vand.u32 4294901760, %v564_v46  ;;  %v5489_v46 = vand.u32 4294901760, %v569_v13  ;;  %v5497_v9 = vand.u32 4294901760, %v5462_v4  ;;  %4522 = vmatpush.msk.msrb.mxu2 %vm8494_vm12, %v8422_v61 }
  0x54   :  { %8587 = vst [vmem:[#allocation28_spill] sm:$0xff] %v5376_v17  ;;  %403 = vmatpush.msrb.mxu1 %v5072_v32  ;;  %608 = vmatpush.msra.mxu0 %v5206_v59  ;;  %v5457_v32 = vand.u32 4294901760, %v5434_v56  ;;  %v5486_v29 = vand.u32 4294901760, %v5471_v60 }
  0x55   :  { %8588 = vst [vmem:[#allocation29_spill] sm:$0xff] %v5379_v58  ;;  %405 = vmatmul.f32.vlgmr.msrb.gmra.mxu1 %v5074_v34  ;;  %551 = vmatpush.msrb.mxu3 %v5414_v15  ;;  %v5469_v34 = vand.u32 4294901760, %v5446_v2 }
  0x56   :  { %8589 = vst [vmem:[#allocation30_spill] sm:$0xff] %v5385_v14  ;;  %4526 = vmatpush.msk.msra.mxu1 %vm461_vm0, %v8422_v61  ;;  %610 = vmatpush.msra.mxu0 %v5262_v37  ;;  %v574_v12 = vsub.f32 %v5434_v56, %v5457_v32 }
  0x57   :  { %8590 = vst [vmem:[#allocation31_spill] sm:$0xff] %v5388_v1  ;;  %556 = vmatpush.msrb.mxu3 %v5430_v63  ;;  %v579_v30 = vsub.f32 %v5446_v2, %v5469_v34  ;;  %4523 = vmatpush.msk.msrb.mxu2 %vm8492_vm14, %v8422_v61 }
  0x58   :  { %8591 = vst [vmem:[#allocation32_spill] sm:$0xff] %v5394_v54  ;;  %4527 = vmatpush.msk.msra.mxu1 %vm460_vm1, %v8422_v61  ;;  %612 = vmatpush.msra.mxu0 %v5264_v38  ;;  %v5504_v13 = vand.u32 4294901760, %v574_v12  ;;  %v584_v38 = vsub.f32 %v5471_v60, %v5486_v29  ;;  %v589_v12 = vsub.f32 %v5462_v4, %v5497_v9 }
  0x59   :  { %8592 = vst [vmem:[#allocation33_spill] sm:$0xff] %v5398_v36  ;;  %561 = vmatpush.msrb.mxu3 %v5454_v8  ;;  %4524 = vmatpush.msk.msrb.mxu2 %vm8493_vm15, %v8422_v61 }
  0x5a   :  { %8593 = vst [vmem:[#allocation34_spill] sm:$0xff] %v5405_v24  ;;  %4528 = vmatpush.msk.msra.mxu1 %vm459_vm2, %v8422_v61  ;;  %614 = vmatpush.msra.mxu0 %v5266_v43  ;;  %v5516_v43 = vand.u32 4294901760, %v579_v30  ;;  %v5538_v30 = vand.u32 4294901760, %v589_v12 }
  0x5b   :  { %8594 = vst [vmem:[#allocation35_spill] sm:$0xff] %v5408_v25  ;;  %566 = vmatpush.msrb.mxu3 %v5474_v22  ;;  %4525 = vmatpush.msk.msrb.mxu2 %vm446_vm13, %v8422_v61 }
  0x5c   :  { %8595 = vst [vmem:[#allocation36_spill] sm:$0xff] %v5411_v47  ;;  %4529 = vmatpush.msk.msra.mxu1 %vm458_vm3, %v8422_v61  ;;  %616 = vmatpush.msra.mxu0 %v5294_v23  ;;  %v5528_v23 = vand.u32 4294901760, %v584_v38  ;;  %v4806_v38 = vld [vmem:[%s8388_s3] ss:$0 sm:$0xff]  ;;  %v778_v47 = vld [vmem:[#allocation4 + $0x10] sm:$0xff] }
  0x5d   :  { %8596 = vst [vmem:[#allocation37_spill] sm:$0xff] %v5434_v56  ;;  %571 = vmatpush.msrb.mxu3 %v5489_v46  ;;  %675 = vmatpush.msra.mxu2 %v5221_v6  ;;  %v5797_v25 = vand.u32 4294901760, %v778_v47 }
  0x5e   :  { %8597 = vst [vmem:[#allocation38_spill] sm:$0xff] %v5446_v2  ;;  %4530 = vmatpush.msk.msra.mxu1 %vm457_vm4, %v8422_v61  ;;  %618 = vmatpush.msra.mxu0 %v5356_v40  ;;  %v786_v40 = vld [vmem:[#allocation4 + $0x50] sm:$0xff] }
  0x5f   :  { %8598 = vst [vmem:[#allocation39_spill] sm:$0xff] %v5457_v32  ;;  %576 = vmatpush.msrb.mxu3 %v5504_v13  ;;  %678 = vmatpush.msra.mxu2 %v5224_v7 }
  0x60   :  { %8599 = vst [vmem:[#allocation40_spill] sm:$0xff] %v5462_v4  ;;  %4531 = vmatpush.msk.msra.mxu1 %vm456_vm5, %v8422_v61  ;;  %620 = vmatpush.msra.mxu0 %v5366_v53 }
  0x61   :  { %8600 = vst [vmem:[#allocation41_spill] sm:$0xff] %v5469_v34  ;;  %581 = vmatpush.msrb.mxu3 %v5516_v43  ;;  %681 = vmatpush.msra.mxu2 %v5227_v11 }
  0x62   :  { %8601 = vst [vmem:[#allocation42_spill] sm:$0xff] %v5471_v60  ;;  %4532 = vmatpush.msk.msra.mxu1 %vm455_vm6, %v8422_v61  ;;  %622 = vmatpush.msra.mxu0 %v5368_v50 }
  0x63   :  { %8602 = vst [vmem:[#allocation43_spill] sm:$0xff] %v5486_v29  ;;  %586 = vmatpush.msrb.mxu3 %v5528_v23  ;;  %684 = vmatpush.msra.mxu2 %v5230_v52  ;;  %v782_v52 = vld [vmem:[#allocation4 + $0x30] sm:$0xff] }
  0x64   :  { %8603 = vst [vmem:[#allocation44_spill] sm:$0xff] %v5497_v9  ;;  %4533 = vmatpush.msk.msra.mxu1 %vm454_vm7, %v8422_v61  ;;  %624 = vmatpush.msra.mxu0 %v5379_v58  ;;  %v5751_v11 = vand.u32 4294901760, %v782_v52 }
  0x65   :  { %8604 = vst [vmem:[#allocation45_spill] sm:$0xff] %v5516_v43  ;;  %591 = vmatpush.msrb.mxu3 %v5538_v30  ;;  %687 = vmatpush.msra.mxu2 %v5286_v0  ;;  %v783_v0 = vld [vmem:[#allocation4 + $0x38] sm:$0xff] }
  0x66   :  { %8605 = vst [vmem:[#allocation46_spill] sm:$0xff] %v5528_v23  ;;  %4534 = vmatpush.msk.msra.mxu1 %vm453_vm8, %v8422_v61  ;;  %626 = vmatpush.msra.mxu0 %v5434_v56  ;;  %v5738_v57 = vand.u32 4294901760, %v783_v0 }
  0x67   :  { %8606 = vst [vmem:[#allocation47_spill] sm:$0xff] %v5538_v30  ;;  %4542 = vmatpush.msk.msra.mxu3 %vm461_vm0, %v8422_v61  ;;  %690 = vmatpush.msra.mxu2 %v5289_v31 }
  0x68   :  { %4535 = vmatpush.msk.msra.mxu1 %vm452_vm9, %v8422_v61  ;;  %628 = vmatpush.msra.mxu0 %v5446_v2  ;;  %8611 = vst [vmem:[#allocation52_spill] sm:$0xff] %v5797_v25 }
  0x69   :  { %4543 = vmatpush.msk.msra.mxu3 %vm460_vm1, %v8422_v61  ;;  %693 = vmatpush.msra.mxu2 %v5292_v19  ;;  %v785_v19 = vld [vmem:[#allocation4 + $0x48] sm:$0xff] }
  0x6a   :  { %4536 = vmatpush.msk.msra.mxu1 %vm451_vm10, %v8422_v61  ;;  %630 = vmatpush.msra.mxu0 %v5471_v60  ;;  %v5714_v31 = vand.u32 4294901760, %v785_v19 }
  0x6b   :  { %4544 = vmatpush.msk.msra.mxu3 %vm459_vm2, %v8422_v61  ;;  %696 = vmatpush.msra.mxu2 %v5316_v35  ;;  %v5700_v35 = vand.u32 4294901760, %v786_v40 }
  0x6c   :  { %4537 = vmatpush.msk.msra.mxu1 %vm450_vm11, %v8422_v61  ;;  %632 = vmatpush.msra.mxu0 %v5462_v4 }
  0x6d   :  { %4545 = vmatpush.msk.msra.mxu3 %vm458_vm3, %v8422_v61  ;;  %699 = vmatpush.msra.mxu2 %v5376_v17 }
  0x6e   :  { %4538 = vmatpush.msk.msra.mxu1 %vm8494_vm12, %v8422_v61 }
  0x6f   :  { %4546 = vmatpush.msk.msra.mxu3 %vm457_vm4, %v8422_v61  ;;  %702 = vmatpush.msra.mxu2 %v5385_v14 }
  0x70   :  { %4539 = vmatpush.msk.msra.mxu1 %vm8492_vm14, %v8422_v61 }
  0x71   :  { %4547 = vmatpush.msk.msra.mxu3 %vm456_vm5, %v8422_v61  ;;  %705 = vmatpush.msra.mxu2 %v5388_v1 }
  0x72   :  { %4540 = vmatpush.msk.msra.mxu1 %vm8493_vm15, %v8422_v61 }
  0x73   :  { %4548 = vmatpush.msk.msra.mxu3 %vm455_vm6, %v8422_v61  ;;  %708 = vmatpush.msra.mxu2 %v5405_v24 }
  0x74   :  { %4541 = vmatpush.msk.msra.mxu1 %vm446_vm13, %v8422_v61 }
  0x75   :  { %4549 = vmatpush.msk.msra.mxu3 %vm454_vm7, %v8422_v61  ;;  %711 = vmatpush.msra.mxu2 %v5457_v32 }
  0x77   :  { %4550 = vmatpush.msk.msra.mxu3 %vm453_vm8, %v8422_v61  ;;  %714 = vmatpush.msra.mxu2 %v5469_v34 }
  0x79   :  { %4551 = vmatpush.msk.msra.mxu3 %vm452_vm9, %v8422_v61  ;;  %717 = vmatpush.msra.mxu2 %v5486_v29 }
  0x7b   :  { %4552 = vmatpush.msk.msra.mxu3 %vm451_vm10, %v8422_v61  ;;  %720 = vmatpush.msra.mxu2 %v5497_v9 }
  0x7d   :  { %4553 = vmatpush.msk.msra.mxu3 %vm450_vm11, %v8422_v61 }
  0x7f   :  { %4554 = vmatpush.msk.msra.mxu3 %vm8494_vm12, %v8422_v61 }
  0x81   :  { %4555 = vmatpush.msk.msra.mxu3 %vm8492_vm14, %v8422_v61 }
  0x83   :  { %4556 = vmatpush.msk.msra.mxu3 %vm8493_vm15, %v8422_v61 }
  0x85   :  { %4557 = vmatpush.msk.msra.mxu3 %vm446_vm13, %v8422_v61 }
  0xae   :  { %v106_v12 = vpop.f32.mrf.mxu0 }
  0xaf   :  { %v107_v4 = vadd.f32 %v4806_v38, %v106_v12  ;;  %v789_v12 = vld [vmem:[#allocation4 + $0x68] sm:$0xff] }
  0xb2   :  { %v207_v60 = vpop.f32.mrf.mxu1  ;;  %v300_v56 = vpop.f32.mrf.mxu3 }
  0xb3   :  { %v208_v29 = vadd.f32 %v207_v60, %v107_v4 }
  0xb4   :  { %v261_v2 = vpop.f32.mrf.mxu2 }
  0xb5   :  { %v262_v34 = vadd.f32 %v261_v2, %v208_v29  ;;  %v790_v29 = vld [vmem:[#allocation4 + $0x70] sm:$0xff] }
  0xb7   :  { %v301_v9 = vadd.f32 %v300_v56, %v262_v34 }
  0xca   :  { %v369_v32 = vpop.f32.mrf.mxu0 }
  0xcb   :  { %v370_v58 = vadd.f32 %v369_v32, %v301_v9 }
  0xd2   :  { %v406_v24 = vpop.f32.mrf.mxu1 }
  0xd3   :  { %v5648_v50 = vadd.f32 %v406_v24, %v370_v58  ;;  %v791_v24 = vld [vmem:[#allocation4 + $0x78] sm:$0xff] }
  0xd4   :  { %v5654_v32 = vand.u32 4294901760, %v791_v24 }
  0xd5   :  { %8607 = vst [vmem:[#allocation48_spill] sm:$0xff] %v5648_v50  ;;  %v495_v1 = vand.u32 4294901760, %v5648_v50  ;;  %v478_v61 = vmul.f32 %v5648_v50, %v5648_v50 }
  0xd6   :  { %795 = vmatpush.msrb.mxu0 %v5654_v32 }
  0xd7   :  { %593 = vmatmul.f32.vlgmr.msrb.gmra.mxu3 %v495_v1  ;;  %v496_v53 = vsub.f32 %v5648_v50, %v495_v1  ;;  %v503_v38 = vand.u32 4294901760, %v478_v61 }
  0xd8   :  { %991 = vmatpush.msrb.mxu3 %v5654_v32 }
  0xd9   :  { %635 = vmatmul.f32.vlgmr.msra.gmra.mxu0 %v496_v53  ;;  %v497_v4 = vand.u32 4294901760, %v496_v53  ;;  %v504_v60 = vsub.f32 %v478_v61, %v503_v38  ;;  %v5657_v61 = vsub.f32 %v791_v24, %v5654_v32 }
  0xdb   :  { %663 = vmatmul.f32.vlgmr.msra.gmra.mxu1 %v497_v4  ;;  %v498_v2 = vsub.f32 %v496_v53, %v497_v4  ;;  %v505_v34 = vand.u32 4294901760, %v504_v60  ;;  %v5659_v53 = vand.u32 4294901760, %v790_v29  ;;  %v8426_v4 = vand.u32 4294901760, %v5657_v61 }
  0xdd   :  { %v499_v56 = vand.u32 4294901760, %v498_v2  ;;  %v506_v9 = vsub.f32 %v504_v60, %v505_v34  ;;  %797 = vmatpush.msrb.mxu0 %v5659_v53  ;;  %993 = vmatpush.msrb.mxu3 %v5659_v53  ;;  %v838_v2 = vsub.f32 %v5657_v61, %v8426_v4 }
  0xdf   :  { %500 = vmatmul.f32.vlgmr.msrb.gmra.mxu2 %v499_v56  ;;  %597 = vmatmul.f32.gmra.mxu3 %v503_v38  ;;  %v507_v58 = vand.u32 4294901760, %v506_v9  ;;  %v839_v24 = vand.u32 4294901760, %v838_v2 }
  0xe0   :  { %938 = vmatpush.msrb.mxu2 %v5657_v61 }
  0xe1   :  { %640 = vmatmul.f32.gmra.mxu0 %v504_v60  ;;  %v788_v60 = vld [vmem:[#allocation4 + $0x60] sm:$0xff]  ;;  %840 = vmatpush.msrb.mxu1 %v839_v24 }
  0xe2   :  { %v5679_v9 = vand.u32 4294901760, %v788_v60 }
  0xe3   :  { %669 = vmatmul.f32.gmra.mxu1 %v505_v34 }
  0xe4   :  { %v5689_v14 = vsub.f32 %v788_v60, %v5679_v9 }
  0xe6   :  { %v8445_v17 = vand.u32 4294901760, %v5689_v14 }
  0xe7   :  { %508 = vmatmul.f32.gmra.mxu2 %v507_v58  ;;  %747 = vmatmul.f32.vlgmr.msra.gmra.mxu3 %v495_v1  ;;  %v787_v58 = vld [vmem:[#allocation4 + $0x58] sm:$0xff] }
  0xef   :  { %722 = vmatmul.f32.vlgmr.msra.gmra.mxu2 %v495_v1  ;;  %751 = vmatmul.f32.gmra.mxu3 %v503_v38  ;;  %v5665_v1 = vsub.f32 %v790_v29, %v5659_v53 }
  0xf1   :  { %v8431_v56 = vand.u32 4294901760, %v5665_v1  ;;  %941 = vmatpush.msrb.mxu2 %v5665_v1 }
  0xf3   :  { %v844_v29 = vsub.f32 %v5665_v1, %v8431_v56 }
  0xf5   :  { %v845_v2 = vand.u32 4294901760, %v844_v29  ;;  %v856_v29 = vsub.f32 %v5689_v14, %v8445_v17 }
  0xf7   :  { %726 = vmatmul.f32.gmra.mxu2 %v503_v38  ;;  %v5667_v38 = vand.u32 4294901760, %v789_v12  ;;  %846 = vmatpush.msrb.mxu1 %v845_v2  ;;  %v857_v59 = vand.u32 4294901760, %v856_v29  ;;  %v5721_v2 = vsub.f32 %v785_v19, %v5714_v31 }
  0xf9   :  { %v5677_v34 = vsub.f32 %v789_v12, %v5667_v38  ;;  %799 = vmatpush.msrb.mxu0 %v5667_v38  ;;  %995 = vmatpush.msrb.mxu3 %v5667_v38  ;;  %v5693_v12 = vand.u32 4294901760, %v787_v58  ;;  %v8460_v19 = vand.u32 4294901760, %v5721_v2 }
  0xfb   :  { %v8438_v4 = vand.u32 4294901760, %v5677_v34  ;;  %801 = vmatpush.msrb.mxu0 %v5679_v9  ;;  %944 = vmatpush.msrb.mxu2 %v5677_v34  ;;  %v5704_v60 = vsub.f32 %v787_v58, %v5693_v12  ;;  %v784_v58 = vld [vmem:[#allocation4 + $0x40] sm:$0xff] }
  0xfc   :  { %997 = vmatpush.msrb.mxu3 %v5679_v9  ;;  %v5723_v17 = vand.u32 4294901760, %v784_v58 }
  0xfd   :  { %v850_v56 = vsub.f32 %v5677_v34, %v8438_v4  ;;  %947 = vmatpush.msrb.mxu2 %v5689_v14  ;;  %803 = vmatpush.msrb.mxu0 %v5693_v12  ;;  %v5712_v4 = vsub.f32 %v786_v40, %v5700_v35  ;;  %v8450_v37 = vand.u32 4294901760, %v5704_v60 }
  0xfe   :  { %999 = vmatpush.msrb.mxu3 %v5693_v12  ;;  %v5736_v29 = vsub.f32 %v784_v58, %v5723_v17  ;;  %v5748_v58 = vsub.f32 %v783_v0, %v5738_v57  ;;  %v780_v0 = vld [vmem:[#allocation4 + $0x20] sm:$0xff] }
  0xff   :  { %v851_v24 = vand.u32 4294901760, %v850_v56  ;;  %805 = vmatpush.msrb.mxu0 %v5700_v35  ;;  %950 = vmatpush.msrb.mxu2 %v5704_v60  ;;  %v8453_v56 = vand.u32 4294901760, %v5712_v4  ;;  %v862_v40 = vsub.f32 %v5704_v60, %v8450_v37  ;;  %v5772_v50 = vand.u32 4294901760, %v780_v0 }
 0x100   :  { %1001 = vmatpush.msrb.mxu3 %v5700_v35  ;;  %v8463_v45 = vand.u32 4294901760, %v5736_v29 }
 0x101   :  { %852 = vmatpush.msrb.mxu1 %v851_v24  ;;  %807 = vmatpush.msrb.mxu0 %v5714_v31  ;;  %v868_v24 = vsub.f32 %v5712_v4, %v8453_v56  ;;  %v863_v37 = vand.u32 4294901760, %v862_v40  ;;  %v874_v56 = vsub.f32 %v5721_v2, %v8460_v19  ;;  %v781_v40 = vld [vmem:[#allocation4 + $0x28] sm:$0xff]  ;;  %v8469_v19 = vand.u32 4294901760, %v5748_v58  ;;  %8609 = vst [vmem:[#allocation50_spill] sm:$0xff] %v5772_v50 }
 0x102   :  { %953 = vmatpush.msrb.mxu2 %v5712_v4  ;;  %1003 = vmatpush.msrb.mxu3 %v5714_v31  ;;  %v5758_v7 = vand.u32 4294901760, %v781_v40 }
 0x103   :  { %858 = vmatpush.msrb.mxu1 %v857_v59  ;;  %809 = vmatpush.msrb.mxu0 %v5723_v17  ;;  %v869_v59 = vand.u32 4294901760, %v868_v24  ;;  %v875_v55 = vand.u32 4294901760, %v874_v56  ;;  %v880_v24 = vsub.f32 %v5736_v29, %v8463_v45  ;;  %v886_v45 = vsub.f32 %v5748_v58, %v8469_v19 }
 0x104   :  { %956 = vmatpush.msrb.mxu2 %v5721_v2  ;;  %1005 = vmatpush.msrb.mxu3 %v5723_v17  ;;  %8608 = vst [vmem:[#allocation49_spill] sm:$0xff] %v5758_v7  ;;  %v5770_v6 = vsub.f32 %v781_v40, %v5758_v7  ;;  %v5780_v19 = vsub.f32 %v780_v0, %v5772_v50 }
 0x105   :  { %864 = vmatpush.msrb.mxu1 %v863_v37  ;;  %811 = vmatpush.msrb.mxu0 %v5738_v57  ;;  %v5763_v37 = vsub.f32 %v782_v52, %v5751_v11  ;;  %v881_v56 = vand.u32 4294901760, %v880_v24  ;;  %v887_v24 = vand.u32 4294901760, %v886_v45 }
 0x106   :  { %959 = vmatpush.msrb.mxu2 %v5736_v29  ;;  %1007 = vmatpush.msrb.mxu3 %v5738_v57  ;;  %v8479_v36 = vand.u32 4294901760, %v5770_v6  ;;  %v8483_v0 = vand.u32 4294901760, %v5780_v19 }
 0x107   :  { %870 = vmatpush.msrb.mxu1 %v869_v59  ;;  %813 = vmatpush.msrb.mxu0 %v5751_v11  ;;  %v8476_v52 = vand.u32 4294901760, %v5763_v37  ;;  %v779_v59 = vld [vmem:[#allocation4 + $0x18] sm:$0xff] }
 0x108   :  { %962 = vmatpush.msrb.mxu2 %v5748_v58  ;;  %1009 = vmatpush.msrb.mxu3 %v5751_v11  ;;  %v5782_v40 = vand.u32 4294901760, %v779_v59  ;;  %v898_v45 = vsub.f32 %v5770_v6, %v8479_v36  ;;  %v904_v36 = vsub.f32 %v5780_v19, %v8483_v0 }
 0x109   :  { %876 = vmatpush.msrb.mxu1 %v875_v55  ;;  %815 = vmatpush.msrb.mxu0 %v5758_v7  ;;  %v892_v55 = vsub.f32 %v5763_v37, %v8476_v52  ;;  %v777_v52 = vld [vmem:[#allocation4 + $0x8] sm:$0xff] }
 0x10a   :  { %8610 = vst [vmem:[#allocation51_spill] sm:$0xff] %v5782_v40  ;;  %965 = vmatpush.msrb.mxu2 %v5763_v37  ;;  %1011 = vmatpush.msrb.mxu3 %v5758_v7  ;;  %v5795_v30 = vsub.f32 %v779_v59, %v5782_v40  ;;  %v899_v23 = vand.u32 4294901760, %v898_v45  ;;  %v5807_v59 = vsub.f32 %v778_v47, %v5797_v25  ;;  %v905_v45 = vand.u32 4294901760, %v904_v36 }
 0x10b   :  { %882 = vmatpush.msrb.mxu1 %v881_v56  ;;  %817 = vmatpush.msrb.mxu0 %v5772_v50  ;;  %v893_v56 = vand.u32 4294901760, %v892_v55  ;;  %v776_v55 = vld [vmem:[#allocation4] sm:$0xff] }
 0x10c   :  { %968 = vmatpush.msrb.mxu2 %v5770_v6  ;;  %1013 = vmatpush.msrb.mxu3 %v5772_v50  ;;  %v8487_v54 = vand.u32 4294901760, %v5795_v30  ;;  %v8491_v43 = vand.u32 4294901760, %v5807_v59  ;;  %v5818_v47 = vand.u32 4294901760, %v776_v55 }
 0x10d   :  { %888 = vmatpush.msrb.mxu1 %v887_v24  ;;  %819 = vmatpush.msrb.mxu0 %v5782_v40  ;;  %v5811_v24 = vand.u32 4294901760, %v777_v52 }
 0x10e   :  { %971 = vmatpush.msrb.mxu2 %v5780_v19  ;;  %1015 = vmatpush.msrb.mxu3 %v5782_v40  ;;  %v910_v0 = vsub.f32 %v5795_v30, %v8487_v54  ;;  %v916_v36 = vsub.f32 %v5807_v59, %v8491_v43  ;;  %v5830_v54 = vsub.f32 %v776_v55, %v5818_v47 }
 0x10f   :  { %894 = vmatpush.msrb.mxu1 %v893_v56  ;;  %821 = vmatpush.msrb.mxu0 %v5797_v25  ;;  %v5823_v56 = vsub.f32 %v777_v52, %v5811_v24 }
 0x110   :  { %974 = vmatpush.msrb.mxu2 %v5795_v30  ;;  %1017 = vmatpush.msrb.mxu3 %v5797_v25  ;;  %v911_v40 = vand.u32 4294901760, %v910_v0  ;;  %v917_v52 = vand.u32 4294901760, %v916_v36  ;;  %v927_v0 = vand.u32 4294901760, %v5830_v54  ;;  %v8612_v25 = vand.u32 4294901760, %v5657_v61 }
 0x111   :  { %900 = vmatpush.msrb.mxu1 %v899_v23  ;;  %823 = vmatpush.msrb.mxu0 %v5811_v24  ;;  %v8490_v23 = vand.u32 4294901760, %v5823_v56  ;;  %v8613_v36 = vand.u32 4294901760, %v5665_v1  ;;  %v8616_v1 = vand.u32 4294901760, %v5689_v14  ;;  %v8618_v14 = vand.u32 4294901760, %v5712_v4 }
 0x112   :  { %977 = vmatpush.msrb.mxu2 %v5807_v59  ;;  %1019 = vmatpush.msrb.mxu3 %v5811_v24 }
 0x113   :  { %906 = vmatpush.msrb.mxu1 %v905_v45  ;;  %825 = vmatpush.msrb.mxu0 %v5818_v47  ;;  %v922_v55 = vsub.f32 %v5823_v56, %v8490_v23  ;;  %v928_v45 = vsub.f32 %v5830_v54, %v927_v0  ;;  %v8615_v23 = vmov 0.03125  }
 0x114   :  { %980 = vmatpush.msrb.mxu2 %v5823_v56  ;;  %1021 = vmatpush.msrb.mxu3 %v5818_v47 }
 0x115   :  { %1032 = vmatpush.msra.mxu0 %v8612_v25  ;;  %912 = vmatpush.msrb.mxu1 %v911_v40  ;;  %v923_v25 = vand.u32 4294901760, %v922_v55  ;;  %v929_v61 = vand.u32 4294901760, %v928_v45  ;;  %v8614_v40 = vand.u32 4294901760, %v5677_v34  ;;  %v8617_v45 = vand.u32 4294901760, %v5704_v60 }
 0x116   :  { %983 = vmatpush.msrb.mxu2 %v5830_v54  ;;  %1175 = vmatpush.msra.mxu3 %v5271_v16 }
 0x117   :  { %1036 = vmatpush.msra.mxu0 %v8613_v36  ;;  %918 = vmatpush.msrb.mxu1 %v917_v52 }
 0x118   :  { %4558 = vmatpush.msk.msra.mxu2 %vm461_vm0, %v8615_v23  ;;  %1180 = vmatpush.msra.mxu3 %v5273_v18 }
 0x119   :  { %1040 = vmatpush.msra.mxu0 %v8614_v40  ;;  %924 = vmatpush.msrb.mxu1 %v923_v25  ;;  %v8622_v25 = vand.u32 4294901760, %v5763_v37 }
 0x11a   :  { %4559 = vmatpush.msk.msra.mxu2 %vm460_vm1, %v8615_v23  ;;  %1185 = vmatpush.msra.mxu3 %v5275_v3 }
 0x11b   :  { %1044 = vmatpush.msra.mxu0 %v8616_v1  ;;  %930 = vmatpush.msrb.mxu1 %v929_v61  ;;  %v8624_v61 = vand.u32 4294901760, %v5780_v19 }
 0x11c   :  { %1190 = vmatpush.msra.mxu3 %v5277_v20  ;;  %4560 = vmatpush.msk.msra.mxu2 %vm459_vm2, %v8615_v23 }
 0x11d   :  { %1099 = vmatpush.msra.mxu1 %v5654_v32  ;;  %1048 = vmatpush.msra.mxu0 %v8617_v45  ;;  %v8630_v45 = vld [vmem:[#allocation32_spill] sm:$0xff] }
 0x11e   :  { %1195 = vmatpush.msra.mxu3 %v5335_v48  ;;  %4561 = vmatpush.msk.msra.mxu2 %vm458_vm3, %v8615_v23 }
 0x11f   :  { %1101 = vmatpush.msra.mxu1 %v5659_v53  ;;  %1052 = vmatpush.msra.mxu0 %v8618_v14  ;;  %v8620_v53 = vand.u32 4294901760, %v5736_v29  ;;  %v8632_v14 = vld [vmem:[#allocation46_spill] sm:$0xff] }
 0x120   :  { %1200 = vmatpush.msra.mxu3 %v5337_v51  ;;  %4562 = vmatpush.msk.msra.mxu2 %vm457_vm4, %v8615_v23 }
 0x121   :  { %1103 = vmatpush.msra.mxu1 %v5667_v38 }
 0x122   :  { %1205 = vmatpush.msra.mxu3 %v5339_v10  ;;  %4563 = vmatpush.msk.msra.mxu2 %vm456_vm5, %v8615_v23 }
 0x123   :  { %1105 = vmatpush.msra.mxu1 %v5679_v9 }
 0x124   :  { %1210 = vmatpush.msra.mxu3 %v5414_v15  ;;  %4564 = vmatpush.msk.msra.mxu2 %vm455_vm6, %v8615_v23 }
 0x125   :  { %1107 = vmatpush.msra.mxu1 %v5693_v12  ;;  %v8623_v12 = vand.u32 4294901760, %v5770_v6 }
 0x126   :  { %1215 = vmatpush.msra.mxu3 %v5430_v63  ;;  %4565 = vmatpush.msk.msra.mxu2 %vm454_vm7, %v8615_v23 }
 0x127   :  { %1109 = vmatpush.msra.mxu1 %v5700_v35 }
 0x128   :  { %1220 = vmatpush.msra.mxu3 %v5454_v8  ;;  %4566 = vmatpush.msk.msra.mxu2 %vm453_vm8, %v8615_v23 }
 0x129   :  { %1111 = vmatpush.msra.mxu1 %v5714_v31  ;;  %v8625_v31 = vand.u32 4294901760, %v5795_v30  ;;  %v8627_v30 = vld [vmem:[#allocation49_spill] sm:$0xff] }
 0x12a   :  { %1225 = vmatpush.msra.mxu3 %v5474_v22  ;;  %4567 = vmatpush.msk.msra.mxu2 %vm452_vm9, %v8615_v23 }
 0x12b   :  { %1113 = vmatpush.msra.mxu1 %v5723_v17 }
 0x12c   :  { %1230 = vmatpush.msra.mxu3 %v5489_v46  ;;  %4568 = vmatpush.msk.msra.mxu2 %vm451_vm10, %v8615_v23 }
 0x12d   :  { %1115 = vmatpush.msra.mxu1 %v5738_v57 }
 0x12e   :  { %1235 = vmatpush.msra.mxu3 %v5504_v13  ;;  %4569 = vmatpush.msk.msra.mxu2 %vm450_vm11, %v8615_v23 }
 0x12f   :  { %1117 = vmatpush.msra.mxu1 %v5751_v11 }
 0x130   :  { %4570 = vmatpush.msk.msra.mxu2 %vm8494_vm12, %v8615_v23 }
 0x131   :  { %1119 = vmatpush.msra.mxu1 %v8627_v30  ;;  %v8644_v30 = vld [vmem:[#allocation9_spill] sm:$0xff] }
 0x132   :  { %4571 = vmatpush.msk.msra.mxu2 %vm8492_vm14, %v8615_v23 }
 0x134   :  { %4572 = vmatpush.msk.msra.mxu2 %vm8493_vm15, %v8615_v23 }
 0x136   :  { %4573 = vmatpush.msk.msra.mxu2 %vm446_vm13, %v8615_v23 }
 0x156   :  { %v636_v52 = vpop.f32.mrf.mxu0 }
 0x158   :  { %v664_v36 = vpop.f32.mrf.mxu1 }
 0x15a   :  { %v594_v50 = vpop.f32.mrf.mxu3 }
 0x162   :  { %v501_v7 = vpop.f32.mrf.mxu2  ;;  %v598_v43 = vpop.f32.mrf.mxu3 }
 0x163   :  { %v595_v34 = vadd.f32 %v594_v50, %v501_v7  ;;  %v8619_v50 = vand.u32 4294901760, %v5721_v2  ;;  %v8621_v2 = vand.u32 4294901760, %v5748_v58  ;;  %v670_v58 = vpop.f32.mrf.mxu1 }
 0x165   :  { %v637_v7 = vadd.f32 %v636_v52, %v595_v34  ;;  %1056 = vmatpush.msra.mxu0 %v8619_v50  ;;  %v8626_v52 = vand.u32 4294901760, %v5807_v59  ;;  %v8629_v34 = vld [vmem:[#allocation45_spill] sm:$0xff]  ;;  %v8631_v59 = vld [vmem:[#allocation50_spill] sm:$0xff]  ;;  %v8635_v50 = vld [vmem:[#allocation47_spill] sm:$0xff] }
 0x166   :  { %1240 = vmatpush.msra.mxu3 %v8629_v34  ;;  %1121 = vmatpush.msra.mxu1 %v8631_v59  ;;  %v8647_v59 = vld [vmem:[#allocation19_spill] sm:$0xff] }
 0x167   :  { %1060 = vmatpush.msra.mxu0 %v8620_v53  ;;  %v665_v38 = vadd.f32 %v664_v36, %v637_v7  ;;  %v8633_v36 = vld [vmem:[#allocation35_spill] sm:$0xff]  ;;  %v8637_v53 = vld [vmem:[#allocation52_spill] sm:$0xff] }
 0x168   :  { %1245 = vmatpush.msra.mxu3 %v8632_v14  ;;  %v8634_v7 = vld [vmem:[#allocation51_spill] sm:$0xff] }
 0x169   :  { %1064 = vmatpush.msra.mxu0 %v8621_v2  ;;  %1123 = vmatpush.msra.mxu1 %v8634_v7  ;;  %v8649_v7 = vld [vmem:[#allocation16_spill] sm:$0xff] }
 0x16a   :  { %v509_v55 = vpop.f32.mrf.mxu2  ;;  %v748_v4 = vpop.f32.mrf.mxu3  ;;  %1250 = vmatpush.msra.mxu3 %v8635_v50  ;;  %v1438_v50 = vld [vmem:[#allocation4 + $0x90] sm:$0xff] }
 0x16b   :  { %v599_v32 = vadd.f32 %v598_v43, %v509_v55  ;;  %v641_v43 = vpop.f32.mrf.mxu0  ;;  %1068 = vmatpush.msra.mxu0 %v8622_v25  ;;  %v8628_v55 = vand.u32 4294901760, %v5823_v56  ;;  %1125 = vmatpush.msra.mxu1 %v8637_v53  ;;  %v8639_v25 = vld [vmem:[#allocation48_spill] sm:$0xff]  ;;  %v6245_v14 = vand.u32 4294901760, %v1438_v50 }
 0x16c   :  { %v8650_v53 = vld [vmem:[#allocation20_spill] sm:$0xff] }
 0x16d   :  { %v642_v9 = vadd.f32 %v641_v43, %v599_v32  ;;  %1072 = vmatpush.msra.mxu0 %v8623_v12  ;;  %v8636_v32 = vld [vmem:[#allocation36_spill] sm:$0xff]  ;;  %1127 = vmatpush.msra.mxu1 %v5811_v24  ;;  %v4808_v24 = vld [vmem:[%s8388_s3 + $0xe] ss:$0 sm:$0xff]  ;;  %8679 = vst [vmem:[#allocation48_spill] sm:$0xff] %v6245_v14 }
 0x16e   :  { %v4807_v43 = vld [vmem:[%s8388_s3 + $0x7] ss:$0 sm:$0xff] }
 0x16f   :  { %v671_v37 = vadd.f32 %v670_v58, %v642_v9  ;;  %1076 = vmatpush.msra.mxu0 %v8624_v61  ;;  %1129 = vmatpush.msra.mxu1 %v5818_v47 }
 0x171   :  { %1080 = vmatpush.msra.mxu0 %v8625_v31 }
 0x172   :  { %v723_v60 = vpop.f32.mrf.mxu2  ;;  %v752_v1 = vpop.f32.mrf.mxu3 }
 0x173   :  { %v724_v29 = vadd.f32 %v723_v60, %v665_v38  ;;  %1084 = vmatpush.msra.mxu0 %v8626_v52  ;;  %v8642_v52 = vld [vmem:[#allocation8_spill] sm:$0xff] }
 0x175   :  { %v749_v35 = vadd.f32 %v748_v4, %v724_v29  ;;  %1088 = vmatpush.msra.mxu0 %v8628_v55  ;;  %v8645_v55 = vld [vmem:[#allocation15_spill] sm:$0xff] }
 0x177   :  { %v755_v17 = vmul.f32 %v749_v35, %v749_v35  ;;  %1092 = vmatpush.msra.mxu0 %v927_v0  ;;  %v771_v12 = vsub.f32 %v8639_v25, %v749_v35  ;;  %v8640_v35 = vld [vmem:[#allocation12_spill] sm:$0xff]  ;;  %v8660_v25 = vld [vmem:[#allocation26_spill] sm:$0xff] }
 0x17a   :  { %v727_v40 = vpop.f32.mrf.mxu2 }
 0x17b   :  { %v728_v6 = vadd.f32 %v727_v40, %v671_v37 }
 0x17d   :  { %v753_v19 = vadd.f32 %v752_v1, %v728_v6 }
 0x17f   :  { %v756_v57 = vsub.f32 %v753_v19, %v755_v17  ;;  %v8641_v19 = vld [vmem:[#allocation13_spill] sm:$0xff] }
 0x181   :  { %v757_v11 = vmax.f32 %v756_v57, 0.0  ;;  %v8643_v57 = vld [vmem:[#allocation14_spill] sm:$0xff] }
 0x183   :  { %v758_v56 = vadd.f32 1e-05, %v757_v11  ;;  %v8646_v11 = vld [vmem:[#allocation10_spill] sm:$0xff] }
 0x185   :  { %4825 = vrsqrt.f32 %v758_v56  ;;  %vm765_vm15 = vweird.f32 %v758_v56 }
 0x18b   :  { %v4826_v0 = vpop.eup %4825 }
 0x18c   :  { %v760_v4 = vmul.f32 %v4826_v0, %v758_v56  ;;  %vm766_vm14 = vweird.f32 %v4826_v0  ;;  %v8648_v56 = vld [vmem:[#allocation11_spill] sm:$0xff] }
 0x18d   :  { %vm767_vm12 = vmor %vm765_vm15, %vm766_vm14  ;;  %vm8661_vm14 = vcmp.lt.s32.totalorder %v8633_v36, 32  ;;  %vm8664_vm15 = vcmp.lt.s32.totalorder %v8636_v32, 32 }
 0x18e   :  { %v761_v60 = vmul.f32 %v4826_v0, %v760_v4  ;;  %v8652_v4 = vld [vmem:[#allocation21_spill] sm:$0xff] }
 0x190   :  { %v762_v38 = vmul.f32 0.5, %v761_v60  ;;  %v8653_v60 = vld [vmem:[#allocation18_spill] sm:$0xff] }
 0x192   :  { %v763_v2 = vsub.f32 1.5, %v762_v38  ;;  %v8654_v38 = vld [vmem:[#allocation23_spill] sm:$0xff] }
 0x194   :  { %v764_v9 = vmul.f32 %v4826_v0, %v763_v2  ;;  %v8655_v2 = vld [vmem:[#allocation22_spill] sm:$0xff] }
 0x196   :  { %v768_v29 = vsel %vm767_vm12, %v4826_v0, %v764_v9  ;;  %v8651_v0 = vld [vmem:[#allocation17_spill] sm:$0xff]  ;;  %vm8658_vm12 = vcmp.lt.s32.totalorder %v8630_v45, 32 }
 0x197   :  { %v770_v58 = vmul.f32 %v4807_v43, %v768_v29  ;;  %v8656_v43 = vld [vmem:[#allocation28_spill] sm:$0xff]  ;;  %v8657_v9 = vld [vmem:[#allocation25_spill] sm:$0xff]  ;;  %v8659_v29 = vld [vmem:[#allocation30_spill] sm:$0xff] }
 0x199   :  { %v772_v47 = vmul.f32 %v771_v12, %v770_v58  ;;  %v8662_v12 = vld [vmem:[#allocation31_spill] sm:$0xff] }
 0x19a   :  { %v8663_v58 = vld [vmem:[#allocation27_spill] sm:$0xff] }
 0x19b   :  { %v774_v37 = vadd.f32 %v4808_v24, %v772_v47  ;;  %v8665_v24 = vld [vmem:[#allocation34_spill] sm:$0xff]  ;;  %v8666_v47 = vld [vmem:[#allocation29_spill] sm:$0xff] }
 0x19d   :  { %v775_v61 = vmax.f32 %v774_v37, 0.0  ;;  %v8667_v37 = vld [vmem:[#allocation39_spill] sm:$0xff] }
 0x19f   :  { %v826_v40 = vand.u32 4294901760, %v775_v61 }
 0x1a1   :  { %932 = vmatmul.f32.vlgmr.msrb.gmra.mxu1 %v826_v40  ;;  %v827_v6 = vsub.f32 %v775_v61, %v826_v40  ;;  %v8668_v61 = vld [vmem:[#allocation37_spill] sm:$0xff] }
 0x1a2   :  { %4574 = vmatpush.msk.msrb.mxu1 %vm461_vm0, %v8615_v23 }
 0x1a3   :  { %986 = vmatmul.f32.vlgmr.msrb.gmra.mxu2 %v827_v6  ;;  %v828_v31 = vand.u32 4294901760, %v827_v6 }
 0x1a4   :  { %4575 = vmatpush.msk.msrb.mxu1 %vm460_vm1, %v8615_v23  ;;  %1334 = vmatpush.msrb.mxu2 %v8640_v35 }
 0x1a5   :  { %1025 = vmatmul.f32.vlgmr.msrb.gmra.mxu3 %v828_v31  ;;  %v829_v1 = vsub.f32 %v827_v6, %v828_v31  ;;  %v8670_v6 = vld [vmem:[#allocation38_spill] sm:$0xff]  ;;  %v8671_v31 = vld [vmem:[#allocation43_spill] sm:$0xff] }
 0x1a6   :  { %4576 = vmatpush.msk.msrb.mxu1 %vm459_vm2, %v8615_v23  ;;  %4590 = vmatpush.msk.msrb.mxu3 %vm461_vm0, %v8615_v23 }
 0x1a7   :  { %v830_v17 = vand.u32 4294901760, %v829_v1  ;;  %1337 = vmatpush.msrb.mxu2 %v8641_v19  ;;  %v8672_v1 = vld [vmem:[#allocation42_spill] sm:$0xff] }
 0x1a8   :  { %4577 = vmatpush.msk.msrb.mxu1 %vm458_vm3, %v8615_v23  ;;  %4591 = vmatpush.msk.msrb.mxu3 %vm460_vm1, %v8615_v23 }
 0x1a9   :  { %831 = vmatmul.f32.vlgmr.msrb.gmra.mxu0 %v830_v17  ;;  %1131 = vmatmul.f32.vlgmr.msra.gmra.mxu1 %v826_v40  ;;  %v8673_v17 = vld [vmem:[#allocation44_spill] sm:$0xff] }
 0x1aa   :  { %1261 = vmatpush.msrb.mxu0 %v8642_v52  ;;  %4578 = vmatpush.msk.msrb.mxu1 %vm457_vm4, %v8615_v23 }
 0x1ab   :  { %4592 = vmatpush.msk.msrb.mxu3 %vm459_vm2, %v8615_v23  ;;  %1340 = vmatpush.msrb.mxu2 %v8643_v57 }
 0x1ac   :  { %1263 = vmatpush.msrb.mxu0 %v8644_v30  ;;  %4579 = vmatpush.msk.msrb.mxu1 %vm456_vm5, %v8615_v23  ;;  %v1442_v30 = vld [vmem:[#allocation4 + $0xb0] sm:$0xff] }
 0x1ad   :  { %4593 = vmatpush.msk.msrb.mxu3 %vm458_vm3, %v8615_v23  ;;  %1343 = vmatpush.msrb.mxu2 %v8645_v55  ;;  %v6199_v52 = vand.u32 4294901760, %v1442_v30 }
 0x1ae   :  { %1265 = vmatpush.msrb.mxu0 %v8646_v11  ;;  %4580 = vmatpush.msk.msrb.mxu1 %vm455_vm6, %v8615_v23  ;;  %v1443_v11 = vld [vmem:[#allocation4 + $0xb8] sm:$0xff] }
 0x1af   :  { %4594 = vmatpush.msk.msrb.mxu3 %vm457_vm4, %v8615_v23  ;;  %1346 = vmatpush.msrb.mxu2 %v8647_v59  ;;  %v6186_v55 = vand.u32 4294901760, %v1443_v11 }
 0x1b0   :  { %1267 = vmatpush.msrb.mxu0 %v8648_v56  ;;  %4581 = vmatpush.msk.msrb.mxu1 %vm454_vm7, %v8615_v23 }
 0x1b1   :  { %1094 = vmatmul.f32.vlgmr.msra.gmra.mxu0 %v826_v40  ;;  %4595 = vmatpush.msk.msrb.mxu3 %vm456_vm5, %v8615_v23  ;;  %v8669_v40 = vld [vmem:[#allocation41_spill] sm:$0xff] }
 0x1b2   :  { %1269 = vmatpush.msrb.mxu0 %v8649_v7  ;;  %4582 = vmatpush.msk.msrb.mxu1 %vm453_vm8, %v8615_v23 }
 0x1b3   :  { %4596 = vmatpush.msk.msrb.mxu3 %vm455_vm6, %v8615_v23  ;;  %1349 = vmatpush.msrb.mxu2 %v8650_v53  ;;  %v1445_v53 = vld [vmem:[#allocation4 + $0xc8] sm:$0xff] }
 0x1b4   :  { %1271 = vmatpush.msrb.mxu0 %v8651_v0  ;;  %4583 = vmatpush.msk.msrb.mxu1 %vm452_vm9, %v8615_v23  ;;  %v6162_v7 = vand.u32 4294901760, %v1445_v53 }
 0x1b5   :  { %4597 = vmatpush.msk.msrb.mxu3 %vm454_vm7, %v8615_v23  ;;  %1352 = vmatpush.msrb.mxu2 %v8652_v4 }
 0x1b6   :  { %1273 = vmatpush.msrb.mxu0 %v8653_v60  ;;  %4584 = vmatpush.msk.msrb.mxu1 %vm451_vm10, %v8615_v23  ;;  %v1446_v60 = vld [vmem:[#allocation4 + $0xd0] sm:$0xff] }
 0x1b7   :  { %4598 = vmatpush.msk.msrb.mxu3 %vm453_vm8, %v8615_v23  ;;  %1355 = vmatpush.msrb.mxu2 %v8654_v38  ;;  %v6148_v0 = vand.u32 4294901760, %v1446_v60 }
 0x1b8   :  { %1275 = vmatpush.msrb.mxu0 %v8655_v2  ;;  %4585 = vmatpush.msk.msrb.mxu1 %vm450_vm11, %v8615_v23 }
 0x1b9   :  { %4599 = vmatpush.msk.msrb.mxu3 %vm452_vm9, %v8615_v23  ;;  %1358 = vmatpush.msrb.mxu2 %v8656_v43 }
 0x1ba   :  { %1277 = vmatpush.msrb.mxu0 %v8657_v9  ;;  %4586 = vmatpush.msk.msrb.mxu1 %vm8658_vm12, %v8615_v23 }
 0x1bb   :  { %4600 = vmatpush.msk.msrb.mxu3 %vm451_vm10, %v8615_v23  ;;  %1361 = vmatpush.msrb.mxu2 %v8659_v29 }
 0x1bc   :  { %1279 = vmatpush.msrb.mxu0 %v8660_v25  ;;  %4587 = vmatpush.msk.msrb.mxu1 %vm8661_vm14, %v8615_v23 }
 0x1bd   :  { %4601 = vmatpush.msk.msrb.mxu3 %vm450_vm11, %v8615_v23  ;;  %1364 = vmatpush.msrb.mxu2 %v8662_v12 }
 0x1be   :  { %1281 = vmatpush.msrb.mxu0 %v8663_v58  ;;  %4588 = vmatpush.msk.msrb.mxu1 %vm8664_vm15, %v8615_v23 }
 0x1bf   :  { %4602 = vmatpush.msk.msrb.mxu3 %vm8658_vm12, %v8615_v23  ;;  %1367 = vmatpush.msrb.mxu2 %v8665_v24 }
 0x1c0   :  { %1283 = vmatpush.msrb.mxu0 %v8666_v47  ;;  %4589 = vmatpush.msk.msrb.mxu1 %vm446_vm13, %v8615_v23 }
 0x1c1   :  { %4603 = vmatpush.msk.msrb.mxu3 %vm8661_vm14, %v8615_v23  ;;  %1370 = vmatpush.msrb.mxu2 %v8667_v37  ;;  %v8674_v37 = vld [vmem:[#allocation40_spill] sm:$0xff] }
 0x1c2   :  { %1285 = vmatpush.msrb.mxu0 %v8668_v61  ;;  %v4809_v61 = vld [vmem:[%s8388_s3 + $0x1] ss:$0 sm:$0xff] }
 0x1c3   :  { %4604 = vmatpush.msk.msrb.mxu3 %vm8664_vm15, %v8615_v23  ;;  %1373 = vmatpush.msrb.mxu2 %v8669_v40 }
 0x1c4   :  { %1287 = vmatpush.msrb.mxu0 %v8670_v6 }
 0x1c5   :  { %4605 = vmatpush.msk.msrb.mxu3 %vm446_vm13, %v8615_v23  ;;  %1376 = vmatpush.msrb.mxu2 %v8671_v31 }
 0x1c6   :  { %1289 = vmatpush.msrb.mxu0 %v8672_v1 }
 0x1c7   :  { %1379 = vmatpush.msrb.mxu2 %v8673_v17 }
 0x1c8   :  { %1291 = vmatpush.msrb.mxu0 %v8674_v37 }
 0x21e   :  { %v933_v47 = vpop.f32.mrf.mxu1 }
 0x226   :  { %v832_v40 = vpop.f32.mrf.mxu0  ;;  %v987_v58 = vpop.f32.mrf.mxu2 }
 0x227   :  { %v833_v24 = vadd.f32 %v4809_v61, %v832_v40  ;;  %v1132_v43 = vpop.f32.mrf.mxu1  ;;  %v1450_v40 = vld [vmem:[#allocation4 + $0xf0] sm:$0xff] }
 0x228   :  { %v1026_v25 = vpop.f32.mrf.mxu3 }
 0x229   :  { %v934_v6 = vadd.f32 %v933_v47, %v833_v24 }
 0x22b   :  { %v988_v12 = vadd.f32 %v987_v58, %v934_v6  ;;  %v1449_v6 = vld [vmem:[#allocation4 + $0xe8] sm:$0xff] }
 0x22d   :  { %v1027_v29 = vadd.f32 %v1026_v25, %v988_v12 }
 0x22e   :  { %v1095_v9 = vpop.f32.mrf.mxu0 }
 0x22f   :  { %v1096_v31 = vadd.f32 %v1095_v9, %v1027_v29  ;;  %v1451_v29 = vld [vmem:[#allocation4 + $0xf8] sm:$0xff] }
 0x230   :  { %v6102_v61 = vand.u32 4294901760, %v1451_v29 }
 0x231   :  { %v6096_v1 = vadd.f32 %v1132_v43, %v1096_v31 }
 0x232   :  { %1455 = vmatpush.msra.mxu0 %v6102_v61 }
 0x233   :  { %8675 = vst [vmem:[#allocation49_spill] sm:$0xff] %v6096_v1  ;;  %v1154_v17 = vand.u32 4294901760, %v6096_v1  ;;  %v1137_v37 = vmul.f32 %v6096_v1, %v6096_v1 }
 0x235   :  { %1252 = vmatmul.f32.vlgmr.msra.gmra.mxu3 %v1154_v17  ;;  %v1155_v2 = vsub.f32 %v6096_v1, %v1154_v17  ;;  %v1162_v38 = vand.u32 4294901760, %v1137_v37 }
 0x236   :  { %1651 = vmatpush.msra.mxu3 %v6102_v61 }
 0x237   :  { %1294 = vmatmul.f32.vlgmr.msrb.gmra.mxu0 %v1155_v2  ;;  %v1156_v24 = vand.u32 4294901760, %v1155_v2  ;;  %v1163_v47 = vsub.f32 %v1137_v37, %v1162_v38  ;;  %v6105_v37 = vsub.f32 %v1451_v29, %v6102_v61 }
 0x239   :  { %1322 = vmatmul.f32.vlgmr.msrb.gmra.mxu1 %v1156_v24  ;;  %v1157_v58 = vsub.f32 %v1155_v2, %v1156_v24  ;;  %v1164_v12 = vand.u32 4294901760, %v1163_v47  ;;  %v6107_v2 = vand.u32 4294901760, %v1450_v40  ;;  %v8495_v31 = vand.u32 4294901760, %v6105_v37  ;;  %v1448_v24 = vld [vmem:[#allocation4 + $0xe0] sm:$0xff] }
 0x23b   :  { %v1158_v25 = vand.u32 4294901760, %v1157_v58  ;;  %v1165_v43 = vsub.f32 %v1163_v47, %v1164_v12  ;;  %1457 = vmatpush.msra.mxu0 %v6107_v2  ;;  %1653 = vmatpush.msra.mxu3 %v6107_v2 }
 0x23d   :  { %1159 = vmatmul.f32.vlgmr.msra.gmra.mxu2 %v1158_v25  ;;  %1256 = vmatmul.f32.gmra.mxu3 %v1162_v38  ;;  %v1166_v9 = vand.u32 4294901760, %v1165_v43  ;;  %v1447_v43 = vld [vmem:[#allocation4 + $0xd8] sm:$0xff] }
 0x23e   :  { %1598 = vmatpush.msra.mxu2 %v6105_v37 }
 0x23f   :  { %1299 = vmatmul.f32.gmra.mxu0 %v1163_v47  ;;  %v1498_v47 = vsub.f32 %v6105_v37, %v8495_v31 }
 0x241   :  { %1328 = vmatmul.f32.gmra.mxu1 %v1164_v12  ;;  %v6127_v12 = vand.u32 4294901760, %v1448_v24 }
 0x243   :  { %v6137_v31 = vsub.f32 %v1448_v24, %v6127_v12 }
 0x245   :  { %1167 = vmatmul.f32.gmra.mxu2 %v1166_v9  ;;  %1406 = vmatmul.f32.vlgmr.msrb.gmra.mxu3 %v1154_v17  ;;  %v1499_v9 = vand.u32 4294901760, %v1498_v47  ;;  %v8498_v4 = vand.u32 4294901760, %v6137_v31 }
 0x247   :  { %1500 = vmatpush.msra.mxu1 %v1499_v9 }
 0x24d   :  { %1381 = vmatmul.f32.vlgmr.msrb.gmra.mxu2 %v1154_v17  ;;  %1410 = vmatmul.f32.gmra.mxu3 %v1162_v38  ;;  %v6113_v17 = vsub.f32 %v1450_v40, %v6107_v2 }
 0x24f   :  { %v8496_v58 = vand.u32 4294901760, %v6113_v17  ;;  %1601 = vmatpush.msra.mxu2 %v6113_v17 }
 0x251   :  { %v1504_v29 = vsub.f32 %v6113_v17, %v8496_v58 }
 0x253   :  { %v1505_v47 = vand.u32 4294901760, %v1504_v29  ;;  %v1516_v29 = vsub.f32 %v6137_v31, %v8498_v4 }
 0x255   :  { %1385 = vmatmul.f32.gmra.mxu2 %v1162_v38  ;;  %v6115_v38 = vand.u32 4294901760, %v1449_v6  ;;  %1506 = vmatpush.msra.mxu1 %v1505_v47  ;;  %v1517_v59 = vand.u32 4294901760, %v1516_v29  ;;  %v6169_v47 = vsub.f32 %v1445_v53, %v6162_v7 }
 0x257   :  { %v6125_v25 = vsub.f32 %v1449_v6, %v6115_v38  ;;  %1459 = vmatpush.msra.mxu0 %v6115_v38  ;;  %1655 = vmatpush.msra.mxu3 %v6115_v38  ;;  %v6141_v6 = vand.u32 4294901760, %v1447_v43  ;;  %v8501_v53 = vand.u32 4294901760, %v6169_v47 }
 0x259   :  { %v8497_v40 = vand.u32 4294901760, %v6125_v25  ;;  %1461 = vmatpush.msra.mxu0 %v6127_v12  ;;  %1604 = vmatpush.msra.mxu2 %v6125_v25  ;;  %v6152_v24 = vsub.f32 %v1447_v43, %v6141_v6  ;;  %v1444_v43 = vld [vmem:[#allocation4 + $0xc0] sm:$0xff] }
 0x25a   :  { %1657 = vmatpush.msra.mxu3 %v6127_v12  ;;  %v6171_v4 = vand.u32 4294901760, %v1444_v43 }
 0x25b   :  { %v1510_v58 = vsub.f32 %v6125_v25, %v8497_v40  ;;  %1607 = vmatpush.msra.mxu2 %v6137_v31  ;;  %1463 = vmatpush.msra.mxu0 %v6141_v6  ;;  %v6160_v40 = vsub.f32 %v1446_v60, %v6148_v0  ;;  %v8499_v56 = vand.u32 4294901760, %v6152_v24 }
 0x25c   :  { %1659 = vmatpush.msra.mxu3 %v6141_v6  ;;  %v6184_v29 = vsub.f32 %v1444_v43, %v6171_v4  ;;  %v6196_v43 = vsub.f32 %v1443_v11, %v6186_v55  ;;  %v6211_v11 = vsub.f32 %v1442_v30, %v6199_v52 }
 0x25d   :  { %v1511_v9 = vand.u32 4294901760, %v1510_v58  ;;  %1465 = vmatpush.msra.mxu0 %v6148_v0  ;;  %1610 = vmatpush.msra.mxu2 %v6152_v24  ;;  %v8500_v58 = vand.u32 4294901760, %v6160_v40  ;;  %v1522_v60 = vsub.f32 %v6152_v24, %v8499_v56 }
 0x25e   :  { %1661 = vmatpush.msra.mxu3 %v6148_v0  ;;  %v8502_v57 = vand.u32 4294901760, %v6184_v29  ;;  %v8508_v30 = vand.u32 4294901760, %v6211_v11 }
 0x25f   :  { %1512 = vmatpush.msra.mxu1 %v1511_v9  ;;  %1467 = vmatpush.msra.mxu0 %v6162_v7  ;;  %v1528_v9 = vsub.f32 %v6160_v40, %v8500_v58  ;;  %v1523_v56 = vand.u32 4294901760, %v1522_v60  ;;  %v1534_v58 = vsub.f32 %v6169_v47, %v8501_v53  ;;  %v1441_v60 = vld [vmem:[#allocation4 + $0xa8] sm:$0xff]  ;;  %v8506_v53 = vand.u32 4294901760, %v6196_v43 }
 0x260   :  { %1613 = vmatpush.msra.mxu2 %v6160_v40  ;;  %1663 = vmatpush.msra.mxu3 %v6162_v7  ;;  %v6206_v35 = vand.u32 4294901760, %v1441_v60 }
 0x261   :  { %1518 = vmatpush.msra.mxu1 %v1517_v59  ;;  %1469 = vmatpush.msra.mxu0 %v6171_v4  ;;  %v1529_v59 = vand.u32 4294901760, %v1528_v9  ;;  %v1535_v19 = vand.u32 4294901760, %v1534_v58  ;;  %v1540_v9 = vsub.f32 %v6184_v29, %v8502_v57  ;;  %v1546_v57 = vsub.f32 %v6196_v43, %v8506_v53 }
 0x262   :  { %1616 = vmatpush.msra.mxu2 %v6169_v47  ;;  %1665 = vmatpush.msra.mxu3 %v6171_v4  ;;  %8676 = vst [vmem:[#allocation50_spill] sm:$0xff] %v6206_v35  ;;  %v6218_v1 = vsub.f32 %v1441_v60, %v6206_v35 }
 0x263   :  { %1524 = vmatpush.msra.mxu1 %v1523_v56  ;;  %1471 = vmatpush.msra.mxu0 %v6186_v55  ;;  %v1440_v56 = vld [vmem:[#allocation4 + $0xa0] sm:$0xff]  ;;  %v1541_v58 = vand.u32 4294901760, %v1540_v9  ;;  %v1547_v9 = vand.u32 4294901760, %v1546_v57 }
 0x264   :  { %1619 = vmatpush.msra.mxu2 %v6184_v29  ;;  %1667 = vmatpush.msra.mxu3 %v6186_v55  ;;  %v6220_v54 = vand.u32 4294901760, %v1440_v56  ;;  %v8510_v32 = vand.u32 4294901760, %v6218_v1 }
 0x265   :  { %1530 = vmatpush.msra.mxu1 %v1529_v59  ;;  %1473 = vmatpush.msra.mxu0 %v6199_v52  ;;  %v1439_v59 = vld [vmem:[#allocation4 + $0x98] sm:$0xff] }
 0x266   :  { %8677 = vst [vmem:[#allocation51_spill] sm:$0xff] %v6220_v54  ;;  %1622 = vmatpush.msra.mxu2 %v6196_v43  ;;  %1669 = vmatpush.msra.mxu3 %v6199_v52  ;;  %v6228_v53 = vsub.f32 %v1440_v56, %v6220_v54  ;;  %v6230_v60 = vand.u32 4294901760, %v1439_v59  ;;  %v1558_v57 = vsub.f32 %v6218_v1, %v8510_v32 }
 0x267   :  { %1536 = vmatpush.msra.mxu1 %v1535_v19  ;;  %1475 = vmatpush.msra.mxu0 %v6206_v35  ;;  %v1552_v19 = vsub.f32 %v6211_v11, %v8508_v30  ;;  %v1437_v30 = vld [vmem:[#allocation4 + $0x88] sm:$0xff] }
 0x268   :  { %8678 = vst [vmem:[#allocation52_spill] sm:$0xff] %v6230_v60  ;;  %1625 = vmatpush.msra.mxu2 %v6211_v11  ;;  %1671 = vmatpush.msra.mxu3 %v6206_v35  ;;  %v8512_v56 = vand.u32 4294901760, %v6228_v53  ;;  %v6243_v36 = vsub.f32 %v1439_v59, %v6230_v60  ;;  %v1559_v34 = vand.u32 4294901760, %v1558_v57  ;;  %v6255_v35 = vsub.f32 %v1438_v50, %v6245_v14 }
 0x269   :  { %1542 = vmatpush.msra.mxu1 %v1541_v58  ;;  %1477 = vmatpush.msra.mxu0 %v6220_v54  ;;  %v1553_v58 = vand.u32 4294901760, %v1552_v19  ;;  %v1436_v19 = vld [vmem:[#allocation4 + $0x80] sm:$0xff] }
 0x26a   :  { %1628 = vmatpush.msra.mxu2 %v6218_v1  ;;  %1673 = vmatpush.msra.mxu3 %v6220_v54  ;;  %v1564_v32 = vsub.f32 %v6228_v53, %v8512_v56  ;;  %v8516_v59 = vand.u32 4294901760, %v6243_v36  ;;  %v8519_v54 = vand.u32 4294901760, %v6255_v35  ;;  %v6266_v49 = vand.u32 4294901760, %v1436_v19 }
 0x26b   :  { %1548 = vmatpush.msra.mxu1 %v1547_v9  ;;  %1479 = vmatpush.msra.mxu0 %v6230_v60  ;;  %v6259_v9 = vand.u32 4294901760, %v1437_v30 }
 0x26c   :  { %1631 = vmatpush.msra.mxu2 %v6228_v53  ;;  %1675 = vmatpush.msra.mxu3 %v6230_v60  ;;  %v1565_v57 = vand.u32 4294901760, %v1564_v32  ;;  %v1570_v56 = vsub.f32 %v6243_v36, %v8516_v59  ;;  %v1576_v59 = vsub.f32 %v6255_v35, %v8519_v54  ;;  %v6278_v60 = vsub.f32 %v1436_v19, %v6266_v49 }
 0x26d   :  { %1554 = vmatpush.msra.mxu1 %v1553_v58  ;;  %1481 = vmatpush.msra.mxu0 %v6245_v14  ;;  %v6271_v50 = vsub.f32 %v1437_v30, %v6259_v9  ;;  %v8682_v54 = vand.u32 4294901760, %v6125_v25 }
 0x26e   :  { %1634 = vmatpush.msra.mxu2 %v6243_v36  ;;  %1677 = vmatpush.msra.mxu3 %v6245_v14  ;;  %v1571_v32 = vand.u32 4294901760, %v1570_v56  ;;  %v1577_v30 = vand.u32 4294901760, %v1576_v59  ;;  %v8520_v14 = vand.u32 4294901760, %v6278_v60  ;;  %v8680_v56 = vand.u32 4294901760, %v6105_v37 }
 0x26f   :  { %1560 = vmatpush.msra.mxu1 %v1559_v34  ;;  %1483 = vmatpush.msra.mxu0 %v6259_v9  ;;  %v1581_v34 = vand.u32 4294901760, %v6271_v50  ;;  %v8681_v59 = vand.u32 4294901760, %v6113_v17 }
 0x270   :  { %1637 = vmatpush.msra.mxu2 %v6255_v35  ;;  %1679 = vmatpush.msra.mxu3 %v6259_v9 }
 0x271   :  { %1566 = vmatpush.msra.mxu1 %v1565_v57  ;;  %1485 = vmatpush.msra.mxu0 %v6266_v49  ;;  %v1582_v19 = vsub.f32 %v6271_v50, %v1581_v34  ;;  %v1588_v57 = vsub.f32 %v6278_v60, %v8520_v14  ;;  %v8683_v14 = vand.u32 4294901760, %v6137_v31  ;;  %v8685_v31 = vand.u32 4294901760, %v6160_v40 }
 0x272   :  { %1640 = vmatpush.msra.mxu2 %v6271_v50  ;;  %1681 = vmatpush.msra.mxu3 %v6266_v49  ;;  %v8702_v50 = vld [vmem:[#allocation52_spill] sm:$0xff] }
 0x273   :  { %1692 = vmatpush.msrb.mxu0 %v8680_v56  ;;  %1572 = vmatpush.msra.mxu1 %v1571_v32  ;;  %v1583_v37 = vand.u32 4294901760, %v1582_v19  ;;  %v1589_v56 = vand.u32 4294901760, %v1588_v57 }
 0x274   :  { %1643 = vmatpush.msra.mxu2 %v6278_v60  ;;  %1835 = vmatpush.msrb.mxu3 %v5271_v16 }
 0x275   :  { %1696 = vmatpush.msrb.mxu0 %v8681_v59  ;;  %1578 = vmatpush.msra.mxu1 %v1577_v30 }
 0x276   :  { %4606 = vmatpush.msk.msrb.mxu2 %vm461_vm0, %v8615_v23  ;;  %1840 = vmatpush.msrb.mxu3 %v5273_v18 }
 0x277   :  { %1700 = vmatpush.msrb.mxu0 %v8682_v54  ;;  %1584 = vmatpush.msra.mxu1 %v1583_v37  ;;  %v8684_v54 = vand.u32 4294901760, %v6152_v24  ;;  %v8687_v24 = vand.u32 4294901760, %v6184_v29  ;;  %v8690_v29 = vand.u32 4294901760, %v6218_v1  ;;  %v8692_v1 = vand.u32 4294901760, %v6243_v36  ;;  %v8695_v36 = vld [vmem:[#allocation50_spill] sm:$0xff] }
 0x278   :  { %4607 = vmatpush.msk.msrb.mxu2 %vm460_vm1, %v8615_v23  ;;  %1845 = vmatpush.msrb.mxu3 %v5275_v3 }
 0x279   :  { %1704 = vmatpush.msrb.mxu0 %v8683_v14  ;;  %1590 = vmatpush.msra.mxu1 %v1589_v56 }
 0x27a   :  { %1850 = vmatpush.msrb.mxu3 %v5277_v20  ;;  %4608 = vmatpush.msk.msrb.mxu2 %vm459_vm2, %v8615_v23 }
 0x27b   :  { %1759 = vmatpush.msrb.mxu1 %v6102_v61  ;;  %1708 = vmatpush.msrb.mxu0 %v8684_v54  ;;  %v8686_v61 = vand.u32 4294901760, %v6169_v47  ;;  %v8688_v47 = vand.u32 4294901760, %v6196_v43  ;;  %v8699_v54 = vand.u32 4294901760, %v6278_v60 }
 0x27c   :  { %1855 = vmatpush.msrb.mxu3 %v5335_v48  ;;  %4609 = vmatpush.msk.msrb.mxu2 %vm458_vm3, %v8615_v23 }
 0x27d   :  { %1761 = vmatpush.msrb.mxu1 %v6107_v2  ;;  %1712 = vmatpush.msrb.mxu0 %v8685_v31  ;;  %v8700_v31 = vld [vmem:[#allocation46_spill] sm:$0xff] }
 0x27e   :  { %1860 = vmatpush.msrb.mxu3 %v5337_v51  ;;  %4610 = vmatpush.msk.msrb.mxu2 %vm457_vm4, %v8615_v23 }
 0x27f   :  { %1763 = vmatpush.msrb.mxu1 %v6115_v38  ;;  %1716 = vmatpush.msrb.mxu0 %v8686_v61  ;;  %v8704_v61 = vld [vmem:[#allocation36_spill] sm:$0xff] }
 0x280   :  { %1865 = vmatpush.msrb.mxu3 %v5339_v10  ;;  %4611 = vmatpush.msk.msrb.mxu2 %vm456_vm5, %v8615_v23 }
 0x281   :  { %1765 = vmatpush.msrb.mxu1 %v6127_v12  ;;  %1720 = vmatpush.msrb.mxu0 %v8687_v24  ;;  %v8689_v12 = vand.u32 4294901760, %v6211_v11  ;;  %v8691_v11 = vand.u32 4294901760, %v6228_v53 }
 0x282   :  { %1870 = vmatpush.msrb.mxu3 %v5414_v15  ;;  %4612 = vmatpush.msk.msrb.mxu2 %vm455_vm6, %v8615_v23 }
 0x283   :  { %1767 = vmatpush.msrb.mxu1 %v6141_v6  ;;  %1724 = vmatpush.msrb.mxu0 %v8688_v47  ;;  %v4810_v47 = vld [vmem:[%s8388_s3 + $0x8] ss:$0 sm:$0xff] }
 0x284   :  { %1875 = vmatpush.msrb.mxu3 %v5430_v63  ;;  %4613 = vmatpush.msk.msrb.mxu2 %vm454_vm7, %v8615_v23 }
 0x285   :  { %1769 = vmatpush.msrb.mxu1 %v6148_v0  ;;  %1728 = vmatpush.msrb.mxu0 %v8689_v12  ;;  %v8707_v12 = vld [vmem:[#allocation49_spill] sm:$0xff] }
 0x286   :  { %1880 = vmatpush.msrb.mxu3 %v5454_v8  ;;  %4614 = vmatpush.msk.msrb.mxu2 %vm453_vm8, %v8615_v23 }
 0x287   :  { %1771 = vmatpush.msrb.mxu1 %v6162_v7  ;;  %1732 = vmatpush.msrb.mxu0 %v8690_v29 }
 0x288   :  { %1885 = vmatpush.msrb.mxu3 %v5474_v22  ;;  %4615 = vmatpush.msk.msrb.mxu2 %vm452_vm9, %v8615_v23 }
 0x289   :  { %1773 = vmatpush.msrb.mxu1 %v6171_v4  ;;  %1736 = vmatpush.msrb.mxu0 %v8691_v11  ;;  %v8693_v4 = vand.u32 4294901760, %v6255_v35  ;;  %v8698_v35 = vld [vmem:[#allocation51_spill] sm:$0xff] }
 0x28a   :  { %1890 = vmatpush.msrb.mxu3 %v5489_v46  ;;  %4616 = vmatpush.msk.msrb.mxu2 %vm451_vm10, %v8615_v23 }
 0x28b   :  { %1775 = vmatpush.msrb.mxu1 %v6186_v55  ;;  %1740 = vmatpush.msrb.mxu0 %v8692_v1 }
 0x28c   :  { %1895 = vmatpush.msrb.mxu3 %v5504_v13  ;;  %4617 = vmatpush.msk.msrb.mxu2 %vm450_vm11, %v8615_v23 }
 0x28d   :  { %1777 = vmatpush.msrb.mxu1 %v6199_v52  ;;  %1744 = vmatpush.msrb.mxu0 %v8693_v4  ;;  %v8697_v52 = vld [vmem:[#allocation32_spill] sm:$0xff] }
 0x28e   :  { %4618 = vmatpush.msk.msrb.mxu2 %vm8658_vm12, %v8615_v23  ;;  %v8710_v4 = vld [vmem:[#allocation8_spill] sm:$0xff] }
 0x28f   :  { %1779 = vmatpush.msrb.mxu1 %v8695_v36  ;;  %1748 = vmatpush.msrb.mxu0 %v1581_v34  ;;  %v8703_v34 = vld [vmem:[#allocation47_spill] sm:$0xff]  ;;  %v8712_v36 = vld [vmem:[#allocation9_spill] sm:$0xff] }
 0x290   :  { %4619 = vmatpush.msk.msrb.mxu2 %vm8661_vm14, %v8615_v23 }
 0x291   :  { %1781 = vmatpush.msrb.mxu1 %v8698_v35  ;;  %1752 = vmatpush.msrb.mxu0 %v8699_v54  ;;  %v8714_v35 = vld [vmem:[#allocation10_spill] sm:$0xff]  ;;  %v8715_v54 = vld [vmem:[#allocation19_spill] sm:$0xff] }
 0x292   :  { %4620 = vmatpush.msk.msrb.mxu2 %vm8664_vm15, %v8615_v23 }
 0x293   :  { %1783 = vmatpush.msrb.mxu1 %v8702_v50  ;;  %v8717_v50 = vld [vmem:[#allocation16_spill] sm:$0xff] }
 0x294   :  { %4621 = vmatpush.msk.msrb.mxu2 %vm446_vm13, %v8615_v23 }
 0x2b4   :  { %v1295_v17 = vpop.f32.mrf.mxu0 }
 0x2b6   :  { %v1323_v14 = vpop.f32.mrf.mxu1 }
 0x2b8   :  { %v1253_v45 = vpop.f32.mrf.mxu3 }
 0x2bc   :  { %v1300_v38 = vpop.f32.mrf.mxu0 }
 0x2be   :  { %v1329_v6 = vpop.f32.mrf.mxu1 }
 0x2c0   :  { %v1160_v58 = vpop.f32.mrf.mxu2  ;;  %v1257_v32 = vpop.f32.mrf.mxu3 }
 0x2c1   :  { %v1254_v30 = vadd.f32 %v1253_v45, %v1160_v58 }
 0x2c3   :  { %v1296_v45 = vadd.f32 %v1295_v17, %v1254_v30  ;;  %v8696_v30 = vld [vmem:[#allocation45_spill] sm:$0xff] }
 0x2c4   :  { %1900 = vmatpush.msrb.mxu3 %v8696_v30 }
 0x2c5   :  { %v1324_v58 = vadd.f32 %v1323_v14, %v1296_v45  ;;  %v8701_v45 = vld [vmem:[#allocation35_spill] sm:$0xff] }
 0x2c6   :  { %1905 = vmatpush.msrb.mxu3 %v8700_v31 }
 0x2c8   :  { %v1168_v59 = vpop.f32.mrf.mxu2  ;;  %v1407_v2 = vpop.f32.mrf.mxu3  ;;  %1910 = vmatpush.msrb.mxu3 %v8703_v34  ;;  %v2098_v34 = vld [vmem:[#allocation4 + $0x110] sm:$0xff] }
 0x2c9   :  { %v1258_v25 = vadd.f32 %v1257_v32, %v1168_v59  ;;  %v6693_v31 = vand.u32 4294901760, %v2098_v34 }
 0x2cb   :  { %v1301_v19 = vadd.f32 %v1300_v38, %v1258_v25  ;;  %v8705_v25 = vld [vmem:[#allocation48_spill] sm:$0xff]  ;;  %8747 = vst [vmem:[#allocation49_spill] sm:$0xff] %v6693_v31 }
 0x2cc   :  { %1785 = vmatpush.msrb.mxu1 %v8705_v25  ;;  %v8718_v25 = vld [vmem:[#allocation20_spill] sm:$0xff] }
 0x2cd   :  { %v1330_v37 = vadd.f32 %v1329_v6, %v1301_v19 }
 0x2ce   :  { %1787 = vmatpush.msrb.mxu1 %v6259_v9 }
 0x2d0   :  { %v1382_v40 = vpop.f32.mrf.mxu2  ;;  %v1411_v7 = vpop.f32.mrf.mxu3  ;;  %1789 = vmatpush.msrb.mxu1 %v6266_v49  ;;  %v4811_v49 = vld [vmem:[%s8388_s3 + $0xf] ss:$0 sm:$0xff] }
 0x2d1   :  { %v1383_v57 = vadd.f32 %v1382_v40, %v1324_v58 }
 0x2d3   :  { %v1408_v43 = vadd.f32 %v1407_v2, %v1383_v57 }
 0x2d5   :  { %v1414_v56 = vmul.f32 %v1408_v43, %v1408_v43  ;;  %v1430_v6 = vsub.f32 %v8707_v12, %v1408_v43  ;;  %v8708_v43 = vld [vmem:[#allocation12_spill] sm:$0xff]  ;;  %v8728_v12 = vld [vmem:[#allocation26_spill] sm:$0xff] }
 0x2d8   :  { %v1386_v0 = vpop.f32.mrf.mxu2 }
 0x2d9   :  { %v1387_v32 = vadd.f32 %v1386_v0, %v1330_v37 }
 0x2db   :  { %v1412_v17 = vadd.f32 %v1411_v7, %v1387_v32 }
 0x2dd   :  { %v1415_v53 = vsub.f32 %v1412_v17, %v1414_v56  ;;  %v8709_v17 = vld [vmem:[#allocation13_spill] sm:$0xff] }
 0x2df   :  { %v1416_v59 = vmax.f32 %v1415_v53, 0.0  ;;  %v8711_v53 = vld [vmem:[#allocation14_spill] sm:$0xff] }
 0x2e1   :  { %v1417_v14 = vadd.f32 1e-05, %v1416_v59  ;;  %v8713_v59 = vld [vmem:[#allocation15_spill] sm:$0xff] }
 0x2e3   :  { %4827 = vrsqrt.f32 %v1417_v14  ;;  %vm1424_vm14 = vweird.f32 %v1417_v14 }
 0x2e9   :  { %v4828_v2 = vpop.eup %4827 }
 0x2ea   :  { %v1419_v40 = vmul.f32 %v4828_v2, %v1417_v14  ;;  %vm1425_vm12 = vweird.f32 %v4828_v2  ;;  %v8716_v14 = vld [vmem:[#allocation11_spill] sm:$0xff] }
 0x2eb   :  { %vm1426_vm15 = vmor %vm1424_vm14, %vm1425_vm12  ;;  %vm8726_vm12 = vcmp.lt.s32.totalorder %v8697_v52, 32  ;;  %vm8729_vm14 = vcmp.lt.s32.totalorder %v8701_v45, 32 }
 0x2ec   :  { %v1420_v24 = vmul.f32 %v4828_v2, %v1419_v40  ;;  %v8720_v40 = vld [vmem:[#allocation21_spill] sm:$0xff] }
 0x2ee   :  { %v1421_v58 = vmul.f32 0.5, %v1420_v24  ;;  %v8721_v24 = vld [vmem:[#allocation18_spill] sm:$0xff] }
 0x2f0   :  { %v1422_v38 = vsub.f32 1.5, %v1421_v58  ;;  %v8722_v58 = vld [vmem:[#allocation23_spill] sm:$0xff] }
 0x2f2   :  { %v1423_v19 = vmul.f32 %v4828_v2, %v1422_v38  ;;  %v8723_v38 = vld [vmem:[#allocation22_spill] sm:$0xff] }
 0x2f4   :  { %v1427_v57 = vsel %vm1426_vm15, %v4828_v2, %v1423_v19  ;;  %v8719_v2 = vld [vmem:[#allocation17_spill] sm:$0xff]  ;;  %vm8732_vm15 = vcmp.lt.s32.totalorder %v8704_v61, 32 }
 0x2f5   :  { %v1429_v29 = vmul.f32 %v4810_v47, %v1427_v57  ;;  %v8724_v47 = vld [vmem:[#allocation28_spill] sm:$0xff]  ;;  %v8725_v19 = vld [vmem:[#allocation25_spill] sm:$0xff]  ;;  %v8727_v57 = vld [vmem:[#allocation30_spill] sm:$0xff] }
 0x2f7   :  { %v1431_v9 = vmul.f32 %v1430_v6, %v1429_v29  ;;  %v8730_v6 = vld [vmem:[#allocation31_spill] sm:$0xff] }
 0x2f8   :  { %v8731_v29 = vld [vmem:[#allocation27_spill] sm:$0xff] }
 0x2f9   :  { %v1433_v37 = vadd.f32 %v4811_v49, %v1431_v9  ;;  %v8733_v49 = vld [vmem:[#allocation34_spill] sm:$0xff]  ;;  %v8734_v9 = vld [vmem:[#allocation29_spill] sm:$0xff] }
 0x2fb   :  { %v1434_v0 = vmax.f32 %v1433_v37, 0.0  ;;  %v8735_v37 = vld [vmem:[#allocation39_spill] sm:$0xff] }
 0x2fd   :  { %v1486_v11 = vand.u32 4294901760, %v1434_v0 }
 0x2ff   :  { %1592 = vmatmul.f32.vlgmr.msra.gmra.mxu1 %v1486_v11  ;;  %v1487_v32 = vsub.f32 %v1434_v0, %v1486_v11  ;;  %v8736_v0 = vld [vmem:[#allocation37_spill] sm:$0xff] }
 0x300   :  { %4622 = vmatpush.msk.msra.mxu1 %vm461_vm0, %v8615_v23 }
 0x301   :  { %1646 = vmatmul.f32.vlgmr.msra.gmra.mxu2 %v1487_v32  ;;  %v1488_v7 = vand.u32 4294901760, %v1487_v32 }
 0x302   :  { %4623 = vmatpush.msk.msra.mxu1 %vm460_vm1, %v8615_v23  ;;  %1994 = vmatpush.msra.mxu2 %v8708_v43 }
 0x303   :  { %1685 = vmatmul.f32.vlgmr.msra.gmra.mxu3 %v1488_v7  ;;  %v1489_v1 = vsub.f32 %v1487_v32, %v1488_v7  ;;  %v8738_v32 = vld [vmem:[#allocation38_spill] sm:$0xff]  ;;  %v8739_v7 = vld [vmem:[#allocation43_spill] sm:$0xff] }
 0x304   :  { %4624 = vmatpush.msk.msra.mxu1 %vm459_vm2, %v8615_v23  ;;  %4638 = vmatpush.msk.msra.mxu3 %vm461_vm0, %v8615_v23 }
 0x305   :  { %v1490_v56 = vand.u32 4294901760, %v1489_v1  ;;  %1997 = vmatpush.msra.mxu2 %v8709_v17  ;;  %v8740_v1 = vld [vmem:[#allocation42_spill] sm:$0xff] }
 0x306   :  { %4625 = vmatpush.msk.msra.mxu1 %vm458_vm3, %v8615_v23  ;;  %4639 = vmatpush.msk.msra.mxu3 %vm460_vm1, %v8615_v23 }
 0x307   :  { %1491 = vmatmul.f32.vlgmr.msra.gmra.mxu0 %v1490_v56  ;;  %1791 = vmatmul.f32.vlgmr.msrb.gmra.mxu1 %v1486_v11  ;;  %v8741_v56 = vld [vmem:[#allocation44_spill] sm:$0xff] }
 0x308   :  { %1921 = vmatpush.msra.mxu0 %v8710_v4  ;;  %4626 = vmatpush.msk.msra.mxu1 %vm457_vm4, %v8615_v23 }
 0x309   :  { %4640 = vmatpush.msk.msra.mxu3 %vm459_vm2, %v8615_v23  ;;  %2000 = vmatpush.msra.mxu2 %v8711_v53 }
 0x30a   :  { %1923 = vmatpush.msra.mxu0 %v8712_v36  ;;  %4627 = vmatpush.msk.msra.mxu1 %vm456_vm5, %v8615_v23  ;;  %v2102_v36 = vld [vmem:[#allocation4 + $0x130] sm:$0xff] }
 0x30b   :  { %4641 = vmatpush.msk.msra.mxu3 %vm458_vm3, %v8615_v23  ;;  %2003 = vmatpush.msra.mxu2 %v8713_v59  ;;  %v6647_v4 = vand.u32 4294901760, %v2102_v36 }
 0x30c   :  { %1925 = vmatpush.msra.mxu0 %v8714_v35  ;;  %4628 = vmatpush.msk.msra.mxu1 %vm455_vm6, %v8615_v23  ;;  %v2103_v35 = vld [vmem:[#allocation4 + $0x138] sm:$0xff] }
 0x30d   :  { %4642 = vmatpush.msk.msra.mxu3 %vm457_vm4, %v8615_v23  ;;  %2006 = vmatpush.msra.mxu2 %v8715_v54  ;;  %v6634_v59 = vand.u32 4294901760, %v2103_v35 }
 0x30e   :  { %1927 = vmatpush.msra.mxu0 %v8716_v14  ;;  %4629 = vmatpush.msk.msra.mxu1 %vm454_vm7, %v8615_v23 }
 0x30f   :  { %1754 = vmatmul.f32.vlgmr.msrb.gmra.mxu0 %v1486_v11  ;;  %4643 = vmatpush.msk.msra.mxu3 %vm456_vm5, %v8615_v23  ;;  %v8737_v11 = vld [vmem:[#allocation41_spill] sm:$0xff] }
 0x310   :  { %1929 = vmatpush.msra.mxu0 %v8717_v50  ;;  %4630 = vmatpush.msk.msra.mxu1 %vm453_vm8, %v8615_v23 }
 0x311   :  { %4644 = vmatpush.msk.msra.mxu3 %vm455_vm6, %v8615_v23  ;;  %2009 = vmatpush.msra.mxu2 %v8718_v25  ;;  %v2105_v25 = vld [vmem:[#allocation4 + $0x148] sm:$0xff] }
 0x312   :  { %1931 = vmatpush.msra.mxu0 %v8719_v2  ;;  %4631 = vmatpush.msk.msra.mxu1 %vm452_vm9, %v8615_v23  ;;  %v6610_v50 = vand.u32 4294901760, %v2105_v25 }
 0x313   :  { %4645 = vmatpush.msk.msra.mxu3 %vm454_vm7, %v8615_v23  ;;  %2012 = vmatpush.msra.mxu2 %v8720_v40 }
 0x314   :  { %1933 = vmatpush.msra.mxu0 %v8721_v24  ;;  %4632 = vmatpush.msk.msra.mxu1 %vm451_vm10, %v8615_v23  ;;  %v2106_v24 = vld [vmem:[#allocation4 + $0x150] sm:$0xff] }
 0x315   :  { %4646 = vmatpush.msk.msra.mxu3 %vm453_vm8, %v8615_v23  ;;  %2015 = vmatpush.msra.mxu2 %v8722_v58  ;;  %v6596_v2 = vand.u32 4294901760, %v2106_v24 }
 0x316   :  { %1935 = vmatpush.msra.mxu0 %v8723_v38  ;;  %4633 = vmatpush.msk.msra.mxu1 %vm450_vm11, %v8615_v23 }
 0x317   :  { %4647 = vmatpush.msk.msra.mxu3 %vm452_vm9, %v8615_v23  ;;  %2018 = vmatpush.msra.mxu2 %v8724_v47 }
 0x318   :  { %1937 = vmatpush.msra.mxu0 %v8725_v19  ;;  %4634 = vmatpush.msk.msra.mxu1 %vm8726_vm12, %v8615_v23 }
 0x319   :  { %4648 = vmatpush.msk.msra.mxu3 %vm451_vm10, %v8615_v23  ;;  %2021 = vmatpush.msra.mxu2 %v8727_v57 }
 0x31a   :  { %1939 = vmatpush.msra.mxu0 %v8728_v12  ;;  %4635 = vmatpush.msk.msra.mxu1 %vm8729_vm14, %v8615_v23 }
 0x31b   :  { %4649 = vmatpush.msk.msra.mxu3 %vm450_vm11, %v8615_v23  ;;  %2024 = vmatpush.msra.mxu2 %v8730_v6 }
 0x31c   :  { %1941 = vmatpush.msra.mxu0 %v8731_v29  ;;  %4636 = vmatpush.msk.msra.mxu1 %vm8732_vm15, %v8615_v23 }
 0x31d   :  { %4650 = vmatpush.msk.msra.mxu3 %vm8726_vm12, %v8615_v23  ;;  %2027 = vmatpush.msra.mxu2 %v8733_v49 }
 0x31e   :  { %1943 = vmatpush.msra.mxu0 %v8734_v9  ;;  %4637 = vmatpush.msk.msra.mxu1 %vm446_vm13, %v8615_v23 }
 0x31f   :  { %4651 = vmatpush.msk.msra.mxu3 %vm8729_vm14, %v8615_v23  ;;  %2030 = vmatpush.msra.mxu2 %v8735_v37  ;;  %v8742_v37 = vld [vmem:[#allocation40_spill] sm:$0xff] }
 0x320   :  { %1945 = vmatpush.msra.mxu0 %v8736_v0  ;;  %v4812_v0 = vld [vmem:[%s8388_s3 + $0x2] ss:$0 sm:$0xff] }
 0x321   :  { %4652 = vmatpush.msk.msra.mxu3 %vm8732_vm15, %v8615_v23  ;;  %2033 = vmatpush.msra.mxu2 %v8737_v11 }
 0x322   :  { %1947 = vmatpush.msra.mxu0 %v8738_v32 }
 0x323   :  { %4653 = vmatpush.msk.msra.mxu3 %vm446_vm13, %v8615_v23  ;;  %2036 = vmatpush.msra.mxu2 %v8739_v7 }
 0x324   :  { %1949 = vmatpush.msra.mxu0 %v8740_v1 }
 0x325   :  { %2039 = vmatpush.msra.mxu2 %v8741_v56 }
 0x326   :  { %1951 = vmatpush.msra.mxu0 %v8742_v37 }
 0x37c   :  { %v1593_v9 = vpop.f32.mrf.mxu1 }
 0x384   :  { %v1492_v11 = vpop.f32.mrf.mxu0  ;;  %v1647_v29 = vpop.f32.mrf.mxu2 }
 0x385   :  { %v1493_v49 = vadd.f32 %v4812_v0, %v1492_v11  ;;  %v1792_v47 = vpop.f32.mrf.mxu1  ;;  %v2110_v11 = vld [vmem:[#allocation4 + $0x170] sm:$0xff] }
 0x386   :  { %v1686_v12 = vpop.f32.mrf.mxu3 }
 0x387   :  { %v1594_v32 = vadd.f32 %v1593_v9, %v1493_v49 }
 0x389   :  { %v1648_v6 = vadd.f32 %v1647_v29, %v1594_v32  ;;  %v2109_v32 = vld [vmem:[#allocation4 + $0x168] sm:$0xff] }
 0x38b   :  { %v1687_v57 = vadd.f32 %v1686_v12, %v1648_v6 }
 0x38c   :  { %v1755_v19 = vpop.f32.mrf.mxu0 }
 0x38d   :  { %v1756_v7 = vadd.f32 %v1755_v19, %v1687_v57  ;;  %v2111_v57 = vld [vmem:[#allocation4 + $0x178] sm:$0xff] }
 0x38e   :  { %v6550_v0 = vand.u32 4294901760, %v2111_v57 }
 0x38f   :  { %v6544_v1 = vadd.f32 %v1792_v47, %v1756_v7 }
 0x390   :  { %2115 = vmatpush.msrb.mxu0 %v6550_v0 }
 0x391   :  { %8743 = vst [vmem:[#allocation50_spill] sm:$0xff] %v6544_v1  ;;  %v1814_v56 = vand.u32 4294901760, %v6544_v1  ;;  %v1797_v37 = vmul.f32 %v6544_v1, %v6544_v1 }
 0x393   :  { %1912 = vmatmul.f32.vlgmr.msrb.gmra.mxu3 %v1814_v56  ;;  %v1815_v38 = vsub.f32 %v6544_v1, %v1814_v56  ;;  %v1822_v58 = vand.u32 4294901760, %v1797_v37 }
 0x394   :  { %2311 = vmatpush.msrb.mxu3 %v6550_v0 }
 0x395   :  { %1954 = vmatmul.f32.vlgmr.msra.gmra.mxu0 %v1815_v38  ;;  %v1816_v49 = vand.u32 4294901760, %v1815_v38  ;;  %v1823_v9 = vsub.f32 %v1797_v37, %v1822_v58  ;;  %v6553_v37 = vsub.f32 %v2111_v57, %v6550_v0 }
 0x397   :  { %1982 = vmatmul.f32.vlgmr.msra.gmra.mxu1 %v1816_v49  ;;  %v1817_v29 = vsub.f32 %v1815_v38, %v1816_v49  ;;  %v1824_v6 = vand.u32 4294901760, %v1823_v9  ;;  %v6555_v38 = vand.u32 4294901760, %v2110_v11  ;;  %v8521_v7 = vand.u32 4294901760, %v6553_v37  ;;  %v2108_v49 = vld [vmem:[#allocation4 + $0x160] sm:$0xff] }
 0x399   :  { %v1818_v12 = vand.u32 4294901760, %v1817_v29  ;;  %v1825_v47 = vsub.f32 %v1823_v9, %v1824_v6  ;;  %2117 = vmatpush.msrb.mxu0 %v6555_v38  ;;  %2313 = vmatpush.msrb.mxu3 %v6555_v38 }
 0x39b   :  { %1819 = vmatmul.f32.vlgmr.msrb.gmra.mxu2 %v1818_v12  ;;  %1916 = vmatmul.f32.gmra.mxu3 %v1822_v58  ;;  %v1826_v19 = vand.u32 4294901760, %v1825_v47  ;;  %v2107_v47 = vld [vmem:[#allocation4 + $0x158] sm:$0xff] }
 0x39c   :  { %2258 = vmatpush.msrb.mxu2 %v6553_v37 }
 0x39d   :  { %1959 = vmatmul.f32.gmra.mxu0 %v1823_v9  ;;  %v2158_v9 = vsub.f32 %v6553_v37, %v8521_v7 }
 0x39f   :  { %1988 = vmatmul.f32.gmra.mxu1 %v1824_v6  ;;  %v6575_v6 = vand.u32 4294901760, %v2108_v49 }
 0x3a1   :  { %v6585_v7 = vsub.f32 %v2108_v49, %v6575_v6 }
 0x3a3   :  { %1827 = vmatmul.f32.gmra.mxu2 %v1826_v19  ;;  %2066 = vmatmul.f32.vlgmr.msra.gmra.mxu3 %v1814_v56  ;;  %v2159_v19 = vand.u32 4294901760, %v2158_v9  ;;  %v8524_v40 = vand.u32 4294901760, %v6585_v7 }
 0x3a5   :  { %2160 = vmatpush.msrb.mxu1 %v2159_v19 }
 0x3ab   :  { %2041 = vmatmul.f32.vlgmr.msra.gmra.mxu2 %v1814_v56  ;;  %2070 = vmatmul.f32.gmra.mxu3 %v1822_v58  ;;  %v6561_v56 = vsub.f32 %v2110_v11, %v6555_v38 }
 0x3ad   :  { %v8522_v29 = vand.u32 4294901760, %v6561_v56  ;;  %2261 = vmatpush.msrb.mxu2 %v6561_v56 }
 0x3af   :  { %v2164_v57 = vsub.f32 %v6561_v56, %v8522_v29 }
 0x3b1   :  { %v2165_v9 = vand.u32 4294901760, %v2164_v57  ;;  %v2176_v57 = vsub.f32 %v6585_v7, %v8524_v40 }
 0x3b3   :  { %2045 = vmatmul.f32.gmra.mxu2 %v1822_v58  ;;  %v6563_v58 = vand.u32 4294901760, %v2109_v32  ;;  %2166 = vmatpush.msrb.mxu1 %v2165_v9  ;;  %v2177_v54 = vand.u32 4294901760, %v2176_v57  ;;  %v6617_v9 = vsub.f32 %v2105_v25, %v6610_v50 }
 0x3b5   :  { %v6573_v12 = vsub.f32 %v2109_v32, %v6563_v58  ;;  %2119 = vmatpush.msrb.mxu0 %v6563_v58  ;;  %2315 = vmatpush.msrb.mxu3 %v6563_v58  ;;  %v6589_v32 = vand.u32 4294901760, %v2107_v47  ;;  %v8527_v25 = vand.u32 4294901760, %v6617_v9 }
 0x3b7   :  { %v8523_v11 = vand.u32 4294901760, %v6573_v12  ;;  %2121 = vmatpush.msrb.mxu0 %v6575_v6  ;;  %2264 = vmatpush.msrb.mxu2 %v6573_v12  ;;  %v6600_v49 = vsub.f32 %v2107_v47, %v6589_v32  ;;  %v2104_v47 = vld [vmem:[#allocation4 + $0x140] sm:$0xff] }
 0x3b8   :  { %2317 = vmatpush.msrb.mxu3 %v6575_v6  ;;  %v6619_v40 = vand.u32 4294901760, %v2104_v47 }
 0x3b9   :  { %v2170_v29 = vsub.f32 %v6573_v12, %v8523_v11  ;;  %2267 = vmatpush.msrb.mxu2 %v6585_v7  ;;  %2123 = vmatpush.msrb.mxu0 %v6589_v32  ;;  %v6608_v11 = vsub.f32 %v2106_v24, %v6596_v2  ;;  %v8525_v14 = vand.u32 4294901760, %v6600_v49 }
 0x3ba   :  { %2319 = vmatpush.msrb.mxu3 %v6589_v32  ;;  %v6632_v57 = vsub.f32 %v2104_v47, %v6619_v40  ;;  %v6644_v47 = vsub.f32 %v2103_v35, %v6634_v59  ;;  %v6659_v35 = vsub.f32 %v2102_v36, %v6647_v4 }
 0x3bb   :  { %v2171_v19 = vand.u32 4294901760, %v2170_v29  ;;  %2125 = vmatpush.msrb.mxu0 %v6596_v2  ;;  %2270 = vmatpush.msrb.mxu2 %v6600_v49  ;;  %v8526_v29 = vand.u32 4294901760, %v6608_v11  ;;  %v2182_v24 = vsub.f32 %v6600_v49, %v8525_v14 }
 0x3bc   :  { %2321 = vmatpush.msrb.mxu3 %v6596_v2  ;;  %v8528_v53 = vand.u32 4294901760, %v6632_v57  ;;  %v8534_v36 = vand.u32 4294901760, %v6659_v35 }
 0x3bd   :  { %2172 = vmatpush.msrb.mxu1 %v2171_v19  ;;  %2127 = vmatpush.msrb.mxu0 %v6610_v50  ;;  %v2188_v19 = vsub.f32 %v6608_v11, %v8526_v29  ;;  %v2183_v14 = vand.u32 4294901760, %v2182_v24  ;;  %v2194_v29 = vsub.f32 %v6617_v9, %v8527_v25  ;;  %v2101_v24 = vld [vmem:[#allocation4 + $0x128] sm:$0xff]  ;;  %v8532_v25 = vand.u32 4294901760, %v6644_v47 }
 0x3be   :  { %2273 = vmatpush.msrb.mxu2 %v6608_v11  ;;  %2323 = vmatpush.msrb.mxu3 %v6610_v50  ;;  %v6654_v43 = vand.u32 4294901760, %v2101_v24 }
 0x3bf   :  { %2178 = vmatpush.msrb.mxu1 %v2177_v54  ;;  %2129 = vmatpush.msrb.mxu0 %v6619_v40  ;;  %v2189_v54 = vand.u32 4294901760, %v2188_v19  ;;  %v2195_v17 = vand.u32 4294901760, %v2194_v29  ;;  %v2200_v19 = vsub.f32 %v6632_v57, %v8528_v53  ;;  %v2206_v53 = vsub.f32 %v6644_v47, %v8532_v25 }
 0x3c0   :  { %2276 = vmatpush.msrb.mxu2 %v6617_v9  ;;  %2325 = vmatpush.msrb.mxu3 %v6619_v40  ;;  %8744 = vst [vmem:[#allocation51_spill] sm:$0xff] %v6654_v43  ;;  %v6666_v1 = vsub.f32 %v2101_v24, %v6654_v43 }
 0x3c1   :  { %2184 = vmatpush.msrb.mxu1 %v2183_v14  ;;  %2131 = vmatpush.msrb.mxu0 %v6634_v59  ;;  %v2100_v14 = vld [vmem:[#allocation4 + $0x120] sm:$0xff]  ;;  %v2201_v29 = vand.u32 4294901760, %v2200_v19  ;;  %v2207_v19 = vand.u32 4294901760, %v2206_v53 }
 0x3c2   :  { %2279 = vmatpush.msrb.mxu2 %v6632_v57  ;;  %2327 = vmatpush.msrb.mxu3 %v6634_v59  ;;  %v6668_v60 = vand.u32 4294901760, %v2100_v14  ;;  %v8536_v61 = vand.u32 4294901760, %v6666_v1 }
 0x3c3   :  { %2190 = vmatpush.msrb.mxu1 %v2189_v54  ;;  %2133 = vmatpush.msrb.mxu0 %v6647_v4  ;;  %v2099_v54 = vld [vmem:[#allocation4 + $0x118] sm:$0xff] }
 0x3c4   :  { %8745 = vst [vmem:[#allocation52_spill] sm:$0xff] %v6668_v60  ;;  %2282 = vmatpush.msrb.mxu2 %v6644_v47  ;;  %2329 = vmatpush.msrb.mxu3 %v6647_v4  ;;  %v6676_v25 = vsub.f32 %v2100_v14, %v6668_v60  ;;  %v6678_v24 = vand.u32 4294901760, %v2099_v54  ;;  %v2218_v53 = vsub.f32 %v6666_v1, %v8536_v61 }
 0x3c5   :  { %2196 = vmatpush.msrb.mxu1 %v2195_v17  ;;  %2135 = vmatpush.msrb.mxu0 %v6654_v43  ;;  %v2212_v17 = vsub.f32 %v6659_v35, %v8534_v36  ;;  %v2097_v36 = vld [vmem:[#allocation4 + $0x108] sm:$0xff] }
 0x3c6   :  { %8746 = vst [vmem:[#allocation48_spill] sm:$0xff] %v6678_v24  ;;  %2285 = vmatpush.msrb.mxu2 %v6659_v35  ;;  %2331 = vmatpush.msrb.mxu3 %v6654_v43  ;;  %v8538_v14 = vand.u32 4294901760, %v6676_v25  ;;  %v6691_v45 = vsub.f32 %v2099_v54, %v6678_v24  ;;  %v2219_v30 = vand.u32 4294901760, %v2218_v53  ;;  %v6703_v43 = vsub.f32 %v2098_v34, %v6693_v31 }
 0x3c7   :  { %2202 = vmatpush.msrb.mxu1 %v2201_v29  ;;  %2137 = vmatpush.msrb.mxu0 %v6668_v60  ;;  %v2213_v29 = vand.u32 4294901760, %v2212_v17  ;;  %v2096_v17 = vld [vmem:[#allocation4 + $0x100] sm:$0xff] }
 0x3c8   :  { %2288 = vmatpush.msrb.mxu2 %v6666_v1  ;;  %2333 = vmatpush.msrb.mxu3 %v6668_v60  ;;  %v2224_v61 = vsub.f32 %v6676_v25, %v8538_v14  ;;  %v8541_v54 = vand.u32 4294901760, %v6691_v45  ;;  %v8544_v60 = vand.u32 4294901760, %v6703_v43  ;;  %v6714_v55 = vand.u32 4294901760, %v2096_v17 }
 0x3c9   :  { %2208 = vmatpush.msrb.mxu1 %v2207_v19  ;;  %2139 = vmatpush.msrb.mxu0 %v6678_v24  ;;  %v6707_v19 = vand.u32 4294901760, %v2097_v36 }
 0x3ca   :  { %2291 = vmatpush.msrb.mxu2 %v6676_v25  ;;  %2335 = vmatpush.msrb.mxu3 %v6678_v24  ;;  %v2225_v53 = vand.u32 4294901760, %v2224_v61  ;;  %v2230_v14 = vsub.f32 %v6691_v45, %v8541_v54  ;;  %v2236_v54 = vsub.f32 %v6703_v43, %v8544_v60  ;;  %v6726_v24 = vsub.f32 %v2096_v17, %v6714_v55 }
 0x3cb   :  { %2214 = vmatpush.msrb.mxu1 %v2213_v29  ;;  %2141 = vmatpush.msrb.mxu0 %v6693_v31  ;;  %v6719_v34 = vsub.f32 %v2097_v36, %v6707_v19  ;;  %v8750_v60 = vand.u32 4294901760, %v6573_v12 }
 0x3cc   :  { %2294 = vmatpush.msrb.mxu2 %v6691_v45  ;;  %2337 = vmatpush.msrb.mxu3 %v6693_v31  ;;  %v2231_v61 = vand.u32 4294901760, %v2230_v14  ;;  %v2237_v36 = vand.u32 4294901760, %v2236_v54  ;;  %v8545_v31 = vand.u32 4294901760, %v6726_v24  ;;  %v8748_v14 = vand.u32 4294901760, %v6553_v37 }
 0x3cd   :  { %2220 = vmatpush.msrb.mxu1 %v2219_v30  ;;  %2143 = vmatpush.msrb.mxu0 %v6707_v19  ;;  %v2241_v30 = vand.u32 4294901760, %v6719_v34  ;;  %v8749_v54 = vand.u32 4294901760, %v6561_v56 }
 0x3ce   :  { %2297 = vmatpush.msrb.mxu2 %v6703_v43  ;;  %2339 = vmatpush.msrb.mxu3 %v6707_v19 }
 0x3cf   :  { %2226 = vmatpush.msrb.mxu1 %v2225_v53  ;;  %2145 = vmatpush.msrb.mxu0 %v6714_v55  ;;  %v2242_v17 = vsub.f32 %v6719_v34, %v2241_v30  ;;  %v2248_v53 = vsub.f32 %v6726_v24, %v8545_v31  ;;  %v8751_v31 = vand.u32 4294901760, %v6585_v7 }
 0x3d0   :  { %2300 = vmatpush.msrb.mxu2 %v6719_v34  ;;  %2341 = vmatpush.msrb.mxu3 %v6714_v55  ;;  %v8770_v34 = vld [vmem:[#allocation48_spill] sm:$0xff] }
 0x3d1   :  { %2352 = vmatpush.msra.mxu0 %v8748_v14  ;;  %2232 = vmatpush.msrb.mxu1 %v2231_v61  ;;  %v2243_v37 = vand.u32 4294901760, %v2242_v17  ;;  %v2249_v14 = vand.u32 4294901760, %v2248_v53  ;;  %v8773_v17 = vld [vmem:[#allocation49_spill] sm:$0xff] }
 0x3d2   :  { %2303 = vmatpush.msrb.mxu2 %v6726_v24  ;;  %2495 = vmatpush.msra.mxu3 %v5271_v16 }
 0x3d3   :  { %2356 = vmatpush.msra.mxu0 %v8749_v54  ;;  %2238 = vmatpush.msrb.mxu1 %v2237_v36  ;;  %v8772_v36 = vld [vmem:[#allocation36_spill] sm:$0xff] }
 0x3d4   :  { %4654 = vmatpush.msk.msra.mxu2 %vm461_vm0, %v8615_v23  ;;  %2500 = vmatpush.msra.mxu3 %v5273_v18 }
 0x3d5   :  { %2360 = vmatpush.msra.mxu0 %v8750_v60  ;;  %2244 = vmatpush.msrb.mxu1 %v2243_v37  ;;  %v8752_v60 = vand.u32 4294901760, %v6600_v49 }
 0x3d6   :  { %4655 = vmatpush.msk.msra.mxu2 %vm460_vm1, %v8615_v23  ;;  %2505 = vmatpush.msra.mxu3 %v5275_v3  ;;  %v8754_v3 = vand.u32 4294901760, %v6617_v9 }
 0x3d7   :  { %2364 = vmatpush.msra.mxu0 %v8751_v31  ;;  %2250 = vmatpush.msrb.mxu1 %v2249_v14  ;;  %v8753_v31 = vand.u32 4294901760, %v6608_v11 }
 0x3d8   :  { %2510 = vmatpush.msra.mxu3 %v5277_v20  ;;  %4656 = vmatpush.msk.msra.mxu2 %vm459_vm2, %v8615_v23 }
 0x3d9   :  { %2419 = vmatpush.msra.mxu1 %v6550_v0  ;;  %2368 = vmatpush.msra.mxu0 %v8752_v60 }
 0x3da   :  { %2515 = vmatpush.msra.mxu3 %v5335_v48  ;;  %4657 = vmatpush.msk.msra.mxu2 %vm458_vm3, %v8615_v23  ;;  %v8755_v48 = vand.u32 4294901760, %v6632_v57 }
 0x3db   :  { %2421 = vmatpush.msra.mxu1 %v6555_v38  ;;  %2372 = vmatpush.msra.mxu0 %v8753_v31 }
 0x3dc   :  { %2520 = vmatpush.msra.mxu3 %v5337_v51  ;;  %4658 = vmatpush.msk.msra.mxu2 %vm457_vm4, %v8615_v23  ;;  %v8756_v51 = vand.u32 4294901760, %v6644_v47 }
 0x3dd   :  { %2423 = vmatpush.msra.mxu1 %v6563_v58  ;;  %2376 = vmatpush.msra.mxu0 %v8754_v3 }
 0x3de   :  { %2525 = vmatpush.msra.mxu3 %v5339_v10  ;;  %4659 = vmatpush.msk.msra.mxu2 %vm456_vm5, %v8615_v23  ;;  %v8757_v10 = vand.u32 4294901760, %v6659_v35  ;;  %v8768_v35 = vld [vmem:[#allocation46_spill] sm:$0xff] }
 0x3df   :  { %2425 = vmatpush.msra.mxu1 %v6575_v6  ;;  %2380 = vmatpush.msra.mxu0 %v8755_v48 }
 0x3e0   :  { %2530 = vmatpush.msra.mxu3 %v5414_v15  ;;  %4660 = vmatpush.msk.msra.mxu2 %vm455_vm6, %v8615_v23  ;;  %v8758_v15 = vand.u32 4294901760, %v6666_v1 }
 0x3e1   :  { %2427 = vmatpush.msra.mxu1 %v6589_v32  ;;  %2384 = vmatpush.msra.mxu0 %v8756_v51 }
 0x3e2   :  { %2535 = vmatpush.msra.mxu3 %v5430_v63  ;;  %4661 = vmatpush.msk.msra.mxu2 %vm454_vm7, %v8615_v23  ;;  %v8759_v63 = vand.u32 4294901760, %v6676_v25  ;;  %v8764_v25 = vld [vmem:[#allocation45_spill] sm:$0xff] }
 0x3e3   :  { %2429 = vmatpush.msra.mxu1 %v6596_v2  ;;  %2388 = vmatpush.msra.mxu0 %v8757_v10  ;;  %v8779_v10 = vld [vmem:[#allocation14_spill] sm:$0xff] }
 0x3e4   :  { %2540 = vmatpush.msra.mxu3 %v5454_v8  ;;  %4662 = vmatpush.msk.msra.mxu2 %vm453_vm8, %v8615_v23  ;;  %v8760_v8 = vand.u32 4294901760, %v6691_v45  ;;  %v8763_v45 = vld [vmem:[#allocation51_spill] sm:$0xff] }
 0x3e5   :  { %2431 = vmatpush.msra.mxu1 %v6610_v50  ;;  %2392 = vmatpush.msra.mxu0 %v8758_v15  ;;  %v8781_v15 = vld [vmem:[#allocation15_spill] sm:$0xff] }
 0x3e6   :  { %2545 = vmatpush.msra.mxu3 %v5474_v22  ;;  %4663 = vmatpush.msk.msra.mxu2 %vm452_vm9, %v8615_v23  ;;  %v8761_v22 = vand.u32 4294901760, %v6703_v43  ;;  %v8766_v43 = vld [vmem:[#allocation52_spill] sm:$0xff] }
 0x3e7   :  { %2433 = vmatpush.msra.mxu1 %v6619_v40  ;;  %2396 = vmatpush.msra.mxu0 %v8759_v63  ;;  %v8785_v63 = vld [vmem:[#allocation16_spill] sm:$0xff] }
 0x3e8   :  { %2550 = vmatpush.msra.mxu3 %v5489_v46  ;;  %4664 = vmatpush.msk.msra.mxu2 %vm451_vm10, %v8615_v23 }
 0x3e9   :  { %2435 = vmatpush.msra.mxu1 %v6634_v59  ;;  %2400 = vmatpush.msra.mxu0 %v8760_v8  ;;  %v8762_v59 = vld [vmem:[#allocation24_spill] sm:$0xff]  ;;  %v8788_v8 = vld [vmem:[#allocation21_spill] sm:$0xff] }
 0x3ea   :  { %2555 = vmatpush.msra.mxu3 %v5504_v13  ;;  %4665 = vmatpush.msk.msra.mxu2 %vm450_vm11, %v8615_v23  ;;  %v8767_v13 = vand.u32 4294901760, %v6726_v24  ;;  %v8774_v24 = vld [vmem:[#allocation33_spill] sm:$0xff] }
 0x3eb   :  { %2437 = vmatpush.msra.mxu1 %v6647_v4  ;;  %2404 = vmatpush.msra.mxu0 %v8761_v22  ;;  %v8765_v4 = vld [vmem:[#allocation32_spill] sm:$0xff]  ;;  %v8791_v22 = vld [vmem:[#allocation22_spill] sm:$0xff] }
 0x3ec   :  { %2560 = vmatpush.msra.mxu3 %v8764_v25  ;;  %4666 = vmatpush.msk.msra.mxu2 %vm8726_vm12, %v8615_v23  ;;  %v8796_v25 = vld [vmem:[#allocation26_spill] sm:$0xff] }
 0x3ed   :  { %2439 = vmatpush.msra.mxu1 %v8763_v45  ;;  %2408 = vmatpush.msra.mxu0 %v2241_v30  ;;  %v8771_v30 = vld [vmem:[#allocation47_spill] sm:$0xff]  ;;  %v8793_v45 = vld [vmem:[#allocation25_spill] sm:$0xff] }
 0x3ee   :  { %2565 = vmatpush.msra.mxu3 %v8768_v35  ;;  %4667 = vmatpush.msk.msra.mxu2 %vm8729_vm14, %v8615_v23  ;;  %v8803_v35 = vld [vmem:[#allocation29_spill] sm:$0xff] }
 0x3ef   :  { %2441 = vmatpush.msra.mxu1 %v8766_v43  ;;  %2412 = vmatpush.msra.mxu0 %v8767_v13  ;;  %v8798_v43 = vld [vmem:[#allocation31_spill] sm:$0xff] }
 0x3f0   :  { %2570 = vmatpush.msra.mxu3 %v8771_v30  ;;  %4668 = vmatpush.msk.msra.mxu2 %vm8732_vm15, %v8615_v23  ;;  %v8799_v13 = vld [vmem:[#allocation27_spill] sm:$0xff]  ;;  %v8806_v30 = vld [vmem:[#allocation37_spill] sm:$0xff] }
 0x3f1   :  { %2443 = vmatpush.msra.mxu1 %v8770_v34  ;;  %v8805_v34 = vld [vmem:[#allocation39_spill] sm:$0xff] }
 0x3f2   :  { %4669 = vmatpush.msk.msra.mxu2 %vm446_vm13, %v8615_v23 }
 0x3f3   :  { %2445 = vmatpush.msra.mxu1 %v8773_v17  ;;  %v8808_v17 = vld [vmem:[#allocation41_spill] sm:$0xff] }
 0x3f5   :  { %2447 = vmatpush.msra.mxu1 %v6707_v19 }
 0x3f7   :  { %2449 = vmatpush.msra.mxu1 %v6714_v55  ;;  %v4814_v55 = vld [vmem:[%s8388_s3 + $0x10] ss:$0 sm:$0xff] }
 0x412   :  { %v1955_v56 = vpop.f32.mrf.mxu0 }
 0x414   :  { %v1983_v18 = vpop.f32.mrf.mxu1 }
 0x416   :  { %v1913_v52 = vpop.f32.mrf.mxu3 }
 0x41a   :  { %v1960_v58 = vpop.f32.mrf.mxu0 }
 0x41c   :  { %v1989_v6 = vpop.f32.mrf.mxu1 }
 0x41e   :  { %v1820_v29 = vpop.f32.mrf.mxu2  ;;  %v1917_v61 = vpop.f32.mrf.mxu3 }
 0x41f   :  { %v1914_v16 = vadd.f32 %v1913_v52, %v1820_v29  ;;  %v8769_v29 = vld [vmem:[#allocation35_spill] sm:$0xff] }
 0x421   :  { %v1956_v52 = vadd.f32 %v1955_v56, %v1914_v16 }
 0x423   :  { %v1984_v7 = vadd.f32 %v1983_v18, %v1956_v52  ;;  %v8775_v18 = vld [vmem:[#allocation50_spill] sm:$0xff] }
 0x426   :  { %v1828_v54 = vpop.f32.mrf.mxu2  ;;  %v2067_v0 = vpop.f32.mrf.mxu3 }
 0x427   :  { %v1918_v20 = vadd.f32 %v1917_v61, %v1828_v54  ;;  %v4813_v54 = vld [vmem:[%s8388_s3 + $0x9] ss:$0 sm:$0xff] }
 0x429   :  { %v1961_v12 = vadd.f32 %v1960_v58, %v1918_v20 }
 0x42b   :  { %v1990_v49 = vadd.f32 %v1989_v6, %v1961_v12  ;;  %v8777_v12 = vld [vmem:[#allocation13_spill] sm:$0xff] }
 0x42c   :  { %v8780_v6 = vld [vmem:[#allocation9_spill] sm:$0xff] }
 0x42e   :  { %v2042_v38 = vpop.f32.mrf.mxu2  ;;  %v2071_v50 = vpop.f32.mrf.mxu3 }
 0x42f   :  { %v2043_v11 = vadd.f32 %v2042_v38, %v1984_v7  ;;  %v8776_v7 = vld [vmem:[#allocation12_spill] sm:$0xff] }
 0x431   :  { %v2068_v32 = vadd.f32 %v2067_v0, %v2043_v11  ;;  %v8778_v11 = vld [vmem:[#allocation8_spill] sm:$0xff] }
 0x433   :  { %v2074_v1 = vmul.f32 %v2068_v32, %v2068_v32  ;;  %v2090_v31 = vsub.f32 %v8775_v18, %v2068_v32  ;;  %v8782_v32 = vld [vmem:[#allocation10_spill] sm:$0xff] }
 0x436   :  { %v2046_v2 = vpop.f32.mrf.mxu2 }
 0x437   :  { %v2047_v9 = vadd.f32 %v2046_v2, %v1990_v49  ;;  %v8783_v49 = vld [vmem:[#allocation19_spill] sm:$0xff] }
 0x438   :  { %v8784_v2 = vld [vmem:[#allocation11_spill] sm:$0xff] }
 0x439   :  { %v2072_v57 = vadd.f32 %v2071_v50, %v2047_v9  ;;  %v8786_v9 = vld [vmem:[#allocation20_spill] sm:$0xff]  ;;  %v8787_v50 = vld [vmem:[#allocation17_spill] sm:$0xff] }
 0x43b   :  { %v2075_v40 = vsub.f32 %v2072_v57, %v2074_v1  ;;  %v8789_v1 = vld [vmem:[#allocation18_spill] sm:$0xff]  ;;  %v8790_v57 = vld [vmem:[#allocation23_spill] sm:$0xff] }
 0x43d   :  { %v2076_v46 = vmax.f32 %v2075_v40, 0.0  ;;  %v8792_v40 = vld [vmem:[#allocation28_spill] sm:$0xff] }
 0x43f   :  { %v2077_v47 = vadd.f32 1e-05, %v2076_v46  ;;  %v8795_v46 = vld [vmem:[#allocation30_spill] sm:$0xff] }
 0x441   :  { %4829 = vrsqrt.f32 %v2077_v47  ;;  %vm2084_vm14 = vweird.f32 %v2077_v47 }
 0x447   :  { %v4830_v53 = vpop.eup %4829 }
 0x448   :  { %v2079_v37 = vmul.f32 %v4830_v53, %v2077_v47  ;;  %vm2085_vm12 = vweird.f32 %v4830_v53  ;;  %v8802_v47 = vld [vmem:[#allocation34_spill] sm:$0xff] }
 0x449   :  { %vm2086_vm15 = vmor %vm2084_vm14, %vm2085_vm12  ;;  %vm3127_vm14 = vcmp.lt.s32.totalorder %v5175_v41, 16 }
 0x44a   :  { %v2080_v61 = vmul.f32 %v4830_v53, %v2079_v37  ;;  %v8810_v37 = vld [vmem:[#allocation43_spill] sm:$0xff] }
 0x44c   :  { %v2081_v14 = vmul.f32 0.5, %v2080_v61  ;;  %v8811_v61 = vld [vmem:[#allocation42_spill] sm:$0xff] }
 0x44e   :  { %v2082_v56 = vsub.f32 1.5, %v2081_v14  ;;  %v8812_v14 = vld [vmem:[#allocation44_spill] sm:$0xff] }
 0x450   :  { %v2083_v16 = vmul.f32 %v4830_v53, %v2082_v56  ;;  %v8813_v56 = vld [vmem:[#allocation40_spill] sm:$0xff] }
 0x452   :  { %v2087_v60 = vsel %vm2086_vm15, %v4830_v53, %v2083_v16  ;;  %v8809_v53 = vld [vmem:[#allocation38_spill] sm:$0xff]  ;;  %vm3126_vm15 = vcmp.lt.s32.totalorder %v5178_v42, 16 }
 0x453   :  { %v2089_v52 = vmul.f32 %v4813_v54, %v2087_v60  ;;  %v4815_v54 = vld [vmem:[%s8388_s3 + $0x3] ss:$0 sm:$0xff] }
 0x455   :  { %v2091_v19 = vmul.f32 %v2090_v31, %v2089_v52 }
 0x457   :  { %v2093_v3 = vadd.f32 %v4814_v55, %v2091_v19 }
 0x459   :  { %v2094_v20 = vmax.f32 %v2093_v3, 0.0 }
 0x45b   :  { %v2146_v0 = vand.u32 4294901760, %v2094_v20 }
 0x45d   :  { %2252 = vmatmul.f32.vlgmr.msrb.gmra.mxu1 %v2146_v0  ;;  %v2147_v38 = vsub.f32 %v2094_v20, %v2146_v0 }
 0x45e   :  { %4670 = vmatpush.msk.msrb.mxu1 %vm461_vm0, %v8615_v23 }
 0x45f   :  { %2306 = vmatmul.f32.vlgmr.msrb.gmra.mxu2 %v2147_v38  ;;  %v2148_v48 = vand.u32 4294901760, %v2147_v38 }
 0x460   :  { %4671 = vmatpush.msk.msrb.mxu1 %vm460_vm1, %v8615_v23  ;;  %2654 = vmatpush.msrb.mxu2 %v8776_v7 }
 0x461   :  { %2345 = vmatmul.f32.vlgmr.msrb.gmra.mxu3 %v2148_v48  ;;  %v2149_v58 = vsub.f32 %v2147_v38, %v2148_v48 }
 0x462   :  { %4672 = vmatpush.msk.msrb.mxu1 %vm459_vm2, %v8615_v23  ;;  %4686 = vmatpush.msk.msrb.mxu3 %vm461_vm0, %v8615_v23  ;;  %vm8794_vm0 = vcmp.lt.s32.totalorder %v8765_v4, 32 }
 0x463   :  { %v2150_v51 = vand.u32 4294901760, %v2149_v58  ;;  %2657 = vmatpush.msrb.mxu2 %v8777_v12 }
 0x464   :  { %4673 = vmatpush.msk.msrb.mxu1 %vm458_vm3, %v8615_v23  ;;  %4687 = vmatpush.msk.msrb.mxu3 %vm460_vm1, %v8615_v23  ;;  %vm8797_vm1 = vcmp.lt.s32.totalorder %v8769_v29, 32 }
 0x465   :  { %2151 = vmatmul.f32.vlgmr.msrb.gmra.mxu0 %v2150_v51  ;;  %2451 = vmatmul.f32.vlgmr.msra.gmra.mxu1 %v2146_v0 }
 0x466   :  { %2581 = vmatpush.msrb.mxu0 %v8778_v11  ;;  %4674 = vmatpush.msk.msrb.mxu1 %vm457_vm4, %v8615_v23 }
 0x467   :  { %4688 = vmatpush.msk.msrb.mxu3 %vm459_vm2, %v8615_v23  ;;  %2660 = vmatpush.msrb.mxu2 %v8779_v10  ;;  %vm8800_vm2 = vcmp.lt.s32.totalorder %v8772_v36, 32 }
 0x468   :  { %2583 = vmatpush.msrb.mxu0 %v8780_v6  ;;  %4675 = vmatpush.msk.msrb.mxu1 %vm456_vm5, %v8615_v23 }
 0x469   :  { %4689 = vmatpush.msk.msrb.mxu3 %vm458_vm3, %v8615_v23  ;;  %2663 = vmatpush.msrb.mxu2 %v8781_v15  ;;  %vm8801_vm3 = vmmov %vm8794_vm0 }
 0x46a   :  { %2585 = vmatpush.msrb.mxu0 %v8782_v32  ;;  %4676 = vmatpush.msk.msrb.mxu1 %vm455_vm6, %v8615_v23 }
 0x46b   :  { %4690 = vmatpush.msk.msrb.mxu3 %vm457_vm4, %v8615_v23  ;;  %2666 = vmatpush.msrb.mxu2 %v8783_v49  ;;  %vm8804_vm4 = vmmov %vm8797_vm1 }
 0x46c   :  { %2587 = vmatpush.msrb.mxu0 %v8784_v2  ;;  %4677 = vmatpush.msk.msrb.mxu1 %vm454_vm7, %v8615_v23  ;;  %v2771_v2 = vld [vmem:[#allocation4 + $0x1f8] sm:$0xff] }
 0x46d   :  { %2414 = vmatmul.f32.vlgmr.msra.gmra.mxu0 %v2146_v0  ;;  %4691 = vmatpush.msk.msrb.mxu3 %vm456_vm5, %v8615_v23  ;;  %vm8807_vm5 = vmmov %vm8800_vm2 }
 0x46e   :  { %2589 = vmatpush.msrb.mxu0 %v8785_v63  ;;  %4678 = vmatpush.msk.msrb.mxu1 %vm453_vm8, %v8615_v23  ;;  %v6998_v63 = vand.u32 4294901760, %v2771_v2 }
 0x46f   :  { %4692 = vmatpush.msk.msrb.mxu3 %vm455_vm6, %v8615_v23  ;;  %2669 = vmatpush.msrb.mxu2 %v8786_v9  ;;  %v2770_v9 = vld [vmem:[#allocation4 + $0x1f0] sm:$0xff] }
 0x470   :  { %2591 = vmatpush.msrb.mxu0 %v8787_v50  ;;  %4679 = vmatpush.msk.msrb.mxu1 %vm452_vm9, %v8615_v23  ;;  %v7001_v50 = vsub.f32 %v2771_v2, %v6998_v63 }
 0x471   :  { %4693 = vmatpush.msk.msrb.mxu3 %vm454_vm7, %v8615_v23  ;;  %2672 = vmatpush.msrb.mxu2 %v8788_v8  ;;  %v7003_v8 = vand.u32 4294901760, %v2770_v9 }
 0x472   :  { %2593 = vmatpush.msrb.mxu0 %v8789_v1  ;;  %4680 = vmatpush.msk.msrb.mxu1 %vm451_vm10, %v8615_v23  ;;  %v2769_v1 = vld [vmem:[#allocation4 + $0x1e8] sm:$0xff] }
 0x473   :  { %4694 = vmatpush.msk.msrb.mxu3 %vm453_vm8, %v8615_v23  ;;  %2675 = vmatpush.msrb.mxu2 %v8790_v57  ;;  %v2817_v57 = vand.u32 4294901760, %v7001_v50  ;;  %vm3132_vm8 = vcmp.lt.s32.totalorder %v5157_v26, 16 }
 0x474   :  { %2595 = vmatpush.msrb.mxu0 %v8791_v22  ;;  %4681 = vmatpush.msk.msrb.mxu1 %vm450_vm11, %v8615_v23  ;;  %v7009_v22 = vsub.f32 %v2770_v9, %v7003_v8 }
 0x475   :  { %4695 = vmatpush.msk.msrb.mxu3 %vm452_vm9, %v8615_v23  ;;  %2678 = vmatpush.msrb.mxu2 %v8792_v40  ;;  %v7011_v40 = vand.u32 4294901760, %v2769_v1  ;;  %vm3131_vm9 = vcmp.lt.s32.totalorder %v5160_v27, 16 }
 0x476   :  { %2597 = vmatpush.msrb.mxu0 %v8793_v45  ;;  %4682 = vmatpush.msk.msrb.mxu1 %vm8794_vm0, %v8615_v23  ;;  %v2768_v45 = vld [vmem:[#allocation4 + $0x1e0] sm:$0xff]  ;;  %vm3125_vm0 = vcmp.lt.s32.totalorder %v5218_v62, 16 }
 0x477   :  { %4696 = vmatpush.msk.msrb.mxu3 %vm451_vm10, %v8615_v23  ;;  %2681 = vmatpush.msrb.mxu2 %v8795_v46  ;;  %v2818_v46 = vsub.f32 %v7001_v50, %v2817_v57  ;;  %vm3130_vm10 = vcmp.lt.s32.totalorder %v5163_v39, 16 }
 0x478   :  { %2599 = vmatpush.msrb.mxu0 %v8796_v25  ;;  %4683 = vmatpush.msk.msrb.mxu1 %vm8797_vm1, %v8615_v23  ;;  %v2823_v25 = vand.u32 4294901760, %v7009_v22  ;;  %vm3124_vm1 = vcmp.lt.s32.totalorder %v5301_v33, 16 }
 0x479   :  { %4697 = vmatpush.msk.msrb.mxu3 %vm450_vm11, %v8615_v23  ;;  %2684 = vmatpush.msrb.mxu2 %v8798_v43  ;;  %v7021_v43 = vsub.f32 %v2769_v1, %v7011_v40  ;;  %vm3129_vm11 = vcmp.lt.s32.totalorder %v5166_v5, 16 }
 0x47a   :  { %2601 = vmatpush.msrb.mxu0 %v8799_v13  ;;  %4684 = vmatpush.msk.msrb.mxu1 %vm8800_vm2, %v8615_v23  ;;  %v7023_v13 = vand.u32 4294901760, %v2768_v45  ;;  %vm3123_vm2 = vcmp.lt.s32.totalorder %v5324_v44, 16 }
 0x47b   :  { %4698 = vmatpush.msk.msrb.mxu3 %vm8801_vm3, %v8615_v23  ;;  %2687 = vmatpush.msrb.mxu2 %v8802_v47  ;;  %v2767_v47 = vld [vmem:[#allocation4 + $0x1d8] sm:$0xff]  ;;  %vm3122_vm3 = vcmp.lt.s32.totalorder %v5327_v21, 16 }
 0x47c   :  { %2603 = vmatpush.msrb.mxu0 %v8803_v35  ;;  %4685 = vmatpush.msk.msrb.mxu1 %vm446_vm13, %v8615_v23  ;;  %v2819_v35 = vand.u32 4294901760, %v2818_v46 }
 0x47d   :  { %4699 = vmatpush.msk.msrb.mxu3 %vm8804_vm4, %v8615_v23  ;;  %2690 = vmatpush.msrb.mxu2 %v8805_v34  ;;  %v2824_v34 = vsub.f32 %v7009_v22, %v2823_v25  ;;  %vm3121_vm4 = vcmp.lt.s32.totalorder %v8762_v59, 16 }
 0x47e   :  { %2605 = vmatpush.msrb.mxu0 %v8806_v30  ;;  %v2829_v30 = vand.u32 4294901760, %v7021_v43  ;;  %2820 = vmatpush.msra.mxu1 %v2819_v35 }
 0x47f   :  { %4700 = vmatpush.msk.msrb.mxu3 %vm8807_vm5, %v8615_v23  ;;  %2693 = vmatpush.msrb.mxu2 %v8808_v17  ;;  %v7033_v17 = vsub.f32 %v2768_v45, %v7023_v13  ;;  %v2761_v45 = vld [vmem:[#allocation4 + $0x1a8] sm:$0xff]  ;;  %vm3120_vm5 = vcmp.lt.s32.totalorder %v8765_v4, 16 }
 0x480   :  { %2607 = vmatpush.msrb.mxu0 %v8809_v53  ;;  %v7037_v53 = vand.u32 4294901760, %v2767_v47 }
 0x481   :  { %4701 = vmatpush.msk.msrb.mxu3 %vm446_vm13, %v8615_v23  ;;  %2696 = vmatpush.msrb.mxu2 %v8810_v37  ;;  %v2766_v37 = vld [vmem:[#allocation4 + $0x1d0] sm:$0xff]  ;;  %vm3128_vm13 = vcmp.lt.s32.totalorder %v5172_v28, 16 }
 0x482   :  { %2609 = vmatpush.msrb.mxu0 %v8811_v61  ;;  %v2825_v61 = vand.u32 4294901760, %v2824_v34  ;;  %v7102_v34 = vand.u32 4294901760, %v2761_v45 }
 0x483   :  { %2699 = vmatpush.msrb.mxu2 %v8812_v14  ;;  %v2830_v14 = vsub.f32 %v7021_v43, %v2829_v30 }
 0x484   :  { %2611 = vmatpush.msrb.mxu0 %v8813_v56  ;;  %v2835_v56 = vand.u32 4294901760, %v7033_v17  ;;  %2826 = vmatpush.msra.mxu1 %v2825_v61  ;;  %v2760_v61 = vld [vmem:[#allocation4 + $0x1a0] sm:$0xff] }
 0x486   :  { %2775 = vmatpush.msra.mxu0 %v6998_v63 }
 0x488   :  { %2777 = vmatpush.msra.mxu0 %v7003_v8 }
 0x48a   :  { %2779 = vmatpush.msra.mxu0 %v7011_v40 }
 0x48c   :  { %2781 = vmatpush.msra.mxu0 %v7023_v13 }
 0x48e   :  { %2783 = vmatpush.msra.mxu0 %v7037_v53 }
 0x4da   :  { %v2253_v16 = vpop.f32.mrf.mxu1 }
 0x4e2   :  { %v2152_v60 = vpop.f32.mrf.mxu0  ;;  %v2307_v52 = vpop.f32.mrf.mxu2 }
 0x4e3   :  { %v2153_v18 = vadd.f32 %v4815_v54, %v2152_v60  ;;  %v2452_v0 = vpop.f32.mrf.mxu1  ;;  %v7044_v54 = vand.u32 4294901760, %v2766_v37  ;;  %v2765_v60 = vld [vmem:[#allocation4 + $0x1c8] sm:$0xff] }
 0x4e4   :  { %v2346_v19 = vpop.f32.mrf.mxu3 }
 0x4e5   :  { %v2254_v31 = vadd.f32 %v2253_v16, %v2153_v18  ;;  %v7048_v16 = vsub.f32 %v2767_v47, %v7037_v53  ;;  %v2831_v18 = vand.u32 4294901760, %v2830_v14  ;;  %2785 = vmatpush.msra.mxu0 %v7044_v54 }
 0x4e7   :  { %v2308_v55 = vadd.f32 %v2307_v52, %v2254_v31  ;;  %v2836_v31 = vsub.f32 %v7033_v17, %v2835_v56  ;;  %v7056_v52 = vsub.f32 %v2766_v37, %v7044_v54  ;;  %2832 = vmatpush.msra.mxu1 %v2831_v18  ;;  %v7114_v18 = vsub.f32 %v2761_v45, %v7102_v34 }
 0x4e9   :  { %v2347_v23 = vadd.f32 %v2346_v19, %v2308_v55  ;;  %v7058_v55 = vand.u32 4294901760, %v2765_v60  ;;  %v8554_v19 = vand.u32 4294901760, %v7048_v16 }
 0x4ea   :  { %v2415_v3 = vpop.f32.mrf.mxu0 }
 0x4eb   :  { %v2416_v20 = vadd.f32 %v2415_v3, %v2347_v23  ;;  %v2764_v23 = vld [vmem:[#allocation4 + $0x1c0] sm:$0xff]  ;;  %v2837_v3 = vand.u32 4294901760, %v2836_v31  ;;  %2787 = vmatpush.msra.mxu0 %v7058_v55  ;;  %v7116_v31 = vand.u32 4294901760, %v2760_v61 }
 0x4ed   :  { %v6992_v38 = vadd.f32 %v2452_v0, %v2416_v20  ;;  %v8553_v20 = vand.u32 4294901760, %v7056_v52  ;;  %v7065_v0 = vsub.f32 %v2765_v60, %v7058_v55  ;;  %2838 = vmatpush.msra.mxu1 %v2837_v3  ;;  %v2759_v3 = vld [vmem:[#allocation4 + $0x198] sm:$0xff] }
 0x4ef   :  { %v2474_v48 = vand.u32 4294901760, %v6992_v38  ;;  %v2457_v7 = vmul.f32 %v6992_v38, %v6992_v38 }
 0x4f1   :  { %2572 = vmatmul.f32.vlgmr.msra.gmra.mxu3 %v2474_v48  ;;  %v2475_v58 = vsub.f32 %v6992_v38, %v2474_v48  ;;  %v2482_v51 = vand.u32 4294901760, %v2457_v7 }
 0x4f2   :  { %2971 = vmatpush.msra.mxu3 %v6998_v63 }
 0x4f3   :  { %2614 = vmatmul.f32.vlgmr.msrb.gmra.mxu0 %v2475_v58  ;;  %v2476_v12 = vand.u32 4294901760, %v2475_v58  ;;  %v2483_v11 = vsub.f32 %v2457_v7, %v2482_v51  ;;  %v2842_v7 = vsub.f32 %v7048_v16, %v8554_v19 }
 0x4f4   :  { %2973 = vmatpush.msra.mxu3 %v7003_v8 }
 0x4f5   :  { %2642 = vmatmul.f32.vlgmr.msrb.gmra.mxu1 %v2476_v12  ;;  %v2477_v10 = vsub.f32 %v2475_v58, %v2476_v12  ;;  %v2484_v15 = vand.u32 4294901760, %v2483_v11  ;;  %v2763_v58 = vld [vmem:[#allocation4 + $0x1b8] sm:$0xff]  ;;  %v8551_v12 = vand.u32 4294901760, %v7065_v0 }
 0x4f6   :  { %2975 = vmatpush.msra.mxu3 %v7011_v40 }
 0x4f7   :  { %v2478_v6 = vand.u32 4294901760, %v2477_v10  ;;  %v2485_v32 = vsub.f32 %v2483_v11, %v2484_v15  ;;  %v7082_v10 = vand.u32 4294901760, %v2763_v58 }
 0x4f8   :  { %2977 = vmatpush.msra.mxu3 %v7023_v13 }
 0x4f9   :  { %2479 = vmatmul.f32.vlgmr.msra.gmra.mxu2 %v2478_v6  ;;  %2576 = vmatmul.f32.gmra.mxu3 %v2482_v51  ;;  %v2486_v49 = vand.u32 4294901760, %v2485_v32  ;;  %v2843_v6 = vand.u32 4294901760, %v2842_v7  ;;  %v7092_v9 = vsub.f32 %v2763_v58, %v7082_v10  ;;  %v8547_v58 = vand.u32 4294901760, %v7114_v18 }
 0x4fa   :  { %2918 = vmatpush.msra.mxu2 %v7001_v50  ;;  %2979 = vmatpush.msra.mxu3 %v7037_v53 }
 0x4fb   :  { %2619 = vmatmul.f32.gmra.mxu0 %v2483_v11  ;;  %2844 = vmatpush.msra.mxu1 %v2843_v6  ;;  %v8548_v35 = vand.u32 4294901760, %v7092_v9  ;;  %v7126_v6 = vand.u32 4294901760, %v2759_v3 }
 0x4fc   :  { %2921 = vmatpush.msra.mxu2 %v7009_v22  ;;  %2981 = vmatpush.msra.mxu3 %v7044_v54  ;;  %v8814_v22 = vand.u32 4294901760, %v7048_v16 }
 0x4fd   :  { %2648 = vmatmul.f32.gmra.mxu1 %v2484_v15  ;;  %v2762_v15 = vld [vmem:[#allocation4 + $0x1b0] sm:$0xff]  ;;  %v2866_v60 = vsub.f32 %v7092_v9, %v8548_v35 }
 0x4fe   :  { %2924 = vmatpush.msra.mxu2 %v7021_v43  ;;  %2983 = vmatpush.msra.mxu3 %v7058_v55  ;;  %v7095_v1 = vand.u32 4294901760, %v2762_v15 }
 0x4ff   :  { %v2867_v7 = vand.u32 4294901760, %v2866_v60 }
 0x500   :  { %2927 = vmatpush.msra.mxu2 %v7033_v17  ;;  %v7107_v37 = vsub.f32 %v2762_v15, %v7095_v1 }
 0x501   :  { %2487 = vmatmul.f32.gmra.mxu2 %v2486_v49  ;;  %2726 = vmatmul.f32.vlgmr.msrb.gmra.mxu3 %v2474_v48  ;;  %v2854_v49 = vsub.f32 %v7065_v0, %v8551_v12 }
 0x502   :  { %2930 = vmatpush.msra.mxu2 %v7048_v16 }
 0x503   :  { %v2855_v46 = vand.u32 4294901760, %v2854_v49  ;;  %v2878_v49 = vsub.f32 %v7114_v18, %v8547_v58 }
 0x504   :  { %2933 = vmatpush.msra.mxu2 %v7056_v52 }
 0x506   :  { %2936 = vmatpush.msra.mxu2 %v7065_v0 }
 0x509   :  { %2701 = vmatmul.f32.vlgmr.msrb.gmra.mxu2 %v2474_v48  ;;  %2730 = vmatmul.f32.gmra.mxu3 %v2482_v51  ;;  %v7067_v48 = vand.u32 4294901760, %v2764_v23 }
 0x50b   :  { %v7080_v11 = vsub.f32 %v2764_v23, %v7067_v48  ;;  %2789 = vmatpush.msra.mxu0 %v7067_v48  ;;  %2985 = vmatpush.msra.mxu3 %v7067_v48  ;;  %v8546_v23 = vand.u32 4294901760, %v7107_v37 }
 0x50d   :  { %v8550_v2 = vand.u32 4294901760, %v7080_v11  ;;  %2791 = vmatpush.msra.mxu0 %v7082_v10  ;;  %2939 = vmatpush.msra.mxu2 %v7080_v11  ;;  %v2872_v15 = vsub.f32 %v7107_v37, %v8546_v23  ;;  %v2879_v23 = vand.u32 4294901760, %v2878_v49 }
 0x50e   :  { %2987 = vmatpush.msra.mxu3 %v7082_v10 }
 0x50f   :  { %v2860_v47 = vsub.f32 %v7080_v11, %v8550_v2  ;;  %2793 = vmatpush.msra.mxu0 %v7095_v1  ;;  %2942 = vmatpush.msra.mxu2 %v7092_v9 }
 0x510   :  { %2989 = vmatpush.msra.mxu3 %v7095_v1 }
 0x511   :  { %2705 = vmatmul.f32.gmra.mxu2 %v2482_v51  ;;  %v2848_v51 = vsub.f32 %v7056_v52, %v8553_v20  ;;  %v2861_v14 = vand.u32 4294901760, %v2860_v47  ;;  %2795 = vmatpush.msra.mxu0 %v7102_v34 }
 0x512   :  { %2945 = vmatpush.msra.mxu2 %v7107_v37  ;;  %2991 = vmatpush.msra.mxu3 %v7102_v34 }
 0x513   :  { %v2849_v32 = vand.u32 4294901760, %v2848_v51  ;;  %v7124_v51 = vsub.f32 %v2760_v61, %v7116_v31  ;;  %2797 = vmatpush.msra.mxu0 %v7116_v31  ;;  %v2873_v61 = vand.u32 4294901760, %v2872_v15  ;;  %v2756_v15 = vld [vmem:[#allocation4 + $0x180] sm:$0xff] }
 0x514   :  { %2948 = vmatpush.msra.mxu2 %v7114_v18  ;;  %2993 = vmatpush.msra.mxu3 %v7116_v31  ;;  %v7162_v12 = vand.u32 4294901760, %v2756_v15 }
 0x515   :  { %2850 = vmatpush.msra.mxu1 %v2849_v32  ;;  %v2758_v32 = vld [vmem:[#allocation4 + $0x190] sm:$0xff]  ;;  %v8549_v45 = vand.u32 4294901760, %v7124_v51  ;;  %2799 = vmatpush.msra.mxu0 %v7126_v6 }
 0x516   :  { %v7141_v47 = vand.u32 4294901760, %v2758_v32  ;;  %2951 = vmatpush.msra.mxu2 %v7124_v51  ;;  %2995 = vmatpush.msra.mxu3 %v7126_v6  ;;  %v7174_v20 = vsub.f32 %v2756_v15, %v7162_v12 }
 0x517   :  { %2856 = vmatpush.msra.mxu1 %v2855_v46  ;;  %v7139_v46 = vsub.f32 %v2759_v3, %v7126_v6  ;;  %v2884_v58 = vsub.f32 %v7124_v51, %v8549_v45 }
 0x518   :  { %v7151_v35 = vsub.f32 %v2758_v32, %v7141_v47  ;;  %2801 = vmatpush.msra.mxu0 %v7141_v47  ;;  %2997 = vmatpush.msra.mxu3 %v7141_v47  ;;  %v2907_v19 = vand.u32 4294901760, %v7174_v20 }
 0x519   :  { %2862 = vmatpush.msra.mxu1 %v2861_v14  ;;  %v2757_v14 = vld [vmem:[#allocation4 + $0x188] sm:$0xff]  ;;  %v8552_v3 = vand.u32 4294901760, %v7139_v46  ;;  %v2885_v49 = vand.u32 4294901760, %v2884_v58  ;;  %2954 = vmatpush.msra.mxu2 %v7139_v46 }
 0x51a   :  { %v8555_v2 = vand.u32 4294901760, %v7151_v35  ;;  %v2908_v15 = vsub.f32 %v7174_v20, %v2907_v19 }
 0x51b   :  { %2868 = vmatpush.msra.mxu1 %v2867_v7  ;;  %v7155_v7 = vand.u32 4294901760, %v2757_v14  ;;  %v2890_v45 = vsub.f32 %v7139_v46, %v8552_v3  ;;  %2957 = vmatpush.msra.mxu2 %v7151_v35 }
 0x51c   :  { %v2896_v3 = vsub.f32 %v7151_v35, %v8555_v2  ;;  %v2909_v2 = vand.u32 4294901760, %v2908_v15 }
 0x51d   :  { %2874 = vmatpush.msra.mxu1 %v2873_v61  ;;  %v7167_v32 = vsub.f32 %v2757_v14, %v7155_v7  ;;  %2803 = vmatpush.msra.mxu0 %v7155_v7  ;;  %v2891_v58 = vand.u32 4294901760, %v2890_v45 }
 0x51e   :  { %2999 = vmatpush.msra.mxu3 %v7155_v7  ;;  %v2897_v14 = vand.u32 4294901760, %v2896_v3 }
 0x51f   :  { %2880 = vmatpush.msra.mxu1 %v2879_v23  ;;  %v2901_v23 = vand.u32 4294901760, %v7167_v32  ;;  %2805 = vmatpush.msra.mxu0 %v7162_v12 }
 0x520   :  { %2960 = vmatpush.msra.mxu2 %v7167_v32  ;;  %3001 = vmatpush.msra.mxu3 %v7162_v12 }
 0x521   :  { %2886 = vmatpush.msra.mxu1 %v2885_v49  ;;  %3012 = vmatpush.msrb.mxu0 %v2817_v57  ;;  %v2902_v45 = vsub.f32 %v7167_v32, %v2901_v23 }
 0x522   :  { %2963 = vmatpush.msra.mxu2 %v7174_v20  ;;  %v8815_v20 = vand.u32 4294901760, %v7056_v52 }
 0x523   :  { %2892 = vmatpush.msra.mxu1 %v2891_v58  ;;  %3016 = vmatpush.msrb.mxu0 %v2823_v25  ;;  %v2903_v3 = vand.u32 4294901760, %v2902_v45  ;;  %v8823_v45 = vand.u32 4294901760, %v7151_v35 }
 0x525   :  { %2898 = vmatpush.msra.mxu1 %v2897_v14  ;;  %3020 = vmatpush.msrb.mxu0 %v2829_v30  ;;  %v8816_v30 = vand.u32 4294901760, %v7065_v0  ;;  %v8819_v0 = vand.u32 4294901760, %v7107_v37  ;;  %v8822_v37 = vand.u32 4294901760, %v7139_v46 }
 0x527   :  { %2904 = vmatpush.msra.mxu1 %v2903_v3  ;;  %3024 = vmatpush.msrb.mxu0 %v2835_v56 }
 0x529   :  { %2910 = vmatpush.msra.mxu1 %v2909_v2  ;;  %3028 = vmatpush.msrb.mxu0 %v8814_v22 }
 0x52b   :  { %3079 = vmatpush.msrb.mxu1 %v6998_v63  ;;  %3032 = vmatpush.msrb.mxu0 %v8815_v20  ;;  %v8817_v63 = vand.u32 4294901760, %v7080_v11  ;;  %v4895_v20 = vmov 0.0625  }
 0x52c   :  { %4702 = vmatpush.msk.msrb.mxu2 %vm3132_vm8, %v4895_v20 }
 0x52d   :  { %3081 = vmatpush.msrb.mxu1 %v7003_v8  ;;  %3036 = vmatpush.msrb.mxu0 %v8816_v30  ;;  %v8818_v8 = vand.u32 4294901760, %v7092_v9  ;;  %v8821_v9 = vand.u32 4294901760, %v7124_v51 }
 0x52e   :  { %4703 = vmatpush.msk.msrb.mxu2 %vm3131_vm9, %v4895_v20 }
 0x52f   :  { %3083 = vmatpush.msrb.mxu1 %v7011_v40  ;;  %3040 = vmatpush.msrb.mxu0 %v8817_v63  ;;  %v4817_v63 = vld [vmem:[%s8388_s3 + $0x11] ss:$0 sm:$0xff] }
 0x530   :  { %4704 = vmatpush.msk.msrb.mxu2 %vm3130_vm10, %v4895_v20 }
 0x531   :  { %3085 = vmatpush.msrb.mxu1 %v7023_v13  ;;  %3044 = vmatpush.msrb.mxu0 %v8818_v8  ;;  %v8820_v13 = vand.u32 4294901760, %v7114_v18 }
 0x532   :  { %4705 = vmatpush.msk.msrb.mxu2 %vm3129_vm11, %v4895_v20 }
 0x533   :  { %3087 = vmatpush.msrb.mxu1 %v7037_v53  ;;  %3048 = vmatpush.msrb.mxu0 %v8819_v0 }
 0x534   :  { %4706 = vmatpush.msk.msrb.mxu2 %vm3128_vm13, %v4895_v20 }
 0x535   :  { %3089 = vmatpush.msrb.mxu1 %v7044_v54  ;;  %3052 = vmatpush.msrb.mxu0 %v8820_v13 }
 0x536   :  { %4707 = vmatpush.msk.msrb.mxu2 %vm3127_vm14, %v4895_v20 }
 0x537   :  { %3091 = vmatpush.msrb.mxu1 %v7058_v55  ;;  %3056 = vmatpush.msrb.mxu0 %v8821_v9 }
 0x538   :  { %4708 = vmatpush.msk.msrb.mxu2 %vm3126_vm15, %v4895_v20 }
 0x539   :  { %3093 = vmatpush.msrb.mxu1 %v7067_v48  ;;  %3060 = vmatpush.msrb.mxu0 %v8822_v37 }
 0x53a   :  { %4709 = vmatpush.msk.msrb.mxu2 %vm3125_vm0, %v4895_v20 }
 0x53b   :  { %3095 = vmatpush.msrb.mxu1 %v7082_v10  ;;  %3064 = vmatpush.msrb.mxu0 %v8823_v45 }
 0x53c   :  { %4710 = vmatpush.msk.msrb.mxu2 %vm3124_vm1, %v4895_v20 }
 0x53d   :  { %3097 = vmatpush.msrb.mxu1 %v7095_v1  ;;  %3068 = vmatpush.msrb.mxu0 %v2901_v23 }
 0x53e   :  { %4711 = vmatpush.msk.msrb.mxu2 %vm3123_vm2, %v4895_v20 }
 0x53f   :  { %3099 = vmatpush.msrb.mxu1 %v7102_v34  ;;  %3072 = vmatpush.msrb.mxu0 %v2907_v19 }
 0x540   :  { %4712 = vmatpush.msk.msrb.mxu2 %vm3122_vm3, %v4895_v20 }
 0x541   :  { %3101 = vmatpush.msrb.mxu1 %v7116_v31  ;;  %v8824_v31 = vmov 0.0  }
 0x542   :  { %v3143_v0 = vsel %vm3127_vm14, 0.0625, %v8824_v31  ;;  %v3141_v45 = vsel %vm3125_vm0, 0.0625, %v8824_v31  ;;  %4713 = vmatpush.msk.msrb.mxu2 %vm3121_vm4, %v4895_v20 }
 0x543   :  { %3103 = vmatpush.msrb.mxu1 %v7126_v6  ;;  %v3146_v6 = vsel %vm3130_vm10, 0.0625, %v8824_v31  ;;  %v7308_v9 = vsub.f32 %v3143_v0, %v3143_v0 }
 0x544   :  { %v7256_v3 = vsub.f32 %v3146_v6, %v3146_v6  ;;  %v3139_v6 = vsel %vm3123_vm2, 0.0625, %v8824_v31  ;;  %4714 = vmatpush.msk.msrb.mxu2 %vm3120_vm5, %v4895_v20 }
 0x545   :  { %3105 = vmatpush.msrb.mxu1 %v7141_v47  ;;  %v4816_v47 = vld [vmem:[%s8388_s3 + $0xa] ss:$0 sm:$0xff] }
 0x547   :  { %3107 = vmatpush.msrb.mxu1 %v7155_v7 }
 0x549   :  { %3109 = vmatpush.msrb.mxu1 %v7162_v12  ;;  %v3148_v12 = vsel %vm3132_vm8, 0.0625, %v8824_v31 }
 0x54a   :  { %v7252_v7 = vsub.f32 %v3148_v12, %v3148_v12 }
 0x570   :  { %v2615_v50 = vpop.f32.mrf.mxu0 }
 0x572   :  { %v2643_v25 = vpop.f32.mrf.mxu1 }
 0x574   :  { %v2573_v60 = vpop.f32.mrf.mxu3 }
 0x57c   :  { %v2480_v61 = vpop.f32.mrf.mxu2  ;;  %v2577_v49 = vpop.f32.mrf.mxu3 }
 0x57d   :  { %v2574_v32 = vadd.f32 %v2573_v60, %v2480_v61  ;;  %v2620_v60 = vpop.f32.mrf.mxu0  ;;  %v2649_v61 = vpop.f32.mrf.mxu1 }
 0x57f   :  { %v2616_v43 = vadd.f32 %v2615_v50, %v2574_v32  ;;  %v3184_v32 = vand.u32 4294901760, %v7252_v7 }
 0x581   :  { %v2644_v16 = vadd.f32 %v2643_v25, %v2616_v43  ;;  %v3194_v25 = vand.u32 4294901760, %v7256_v3  ;;  %v3144_v43 = vsel %vm3128_vm13, 0.0625, %v8824_v31 }
 0x583   :  { %v3195_v8 = vsub.f32 %v7256_v3, %v3194_v25 }
 0x584   :  { %v2488_v57 = vpop.f32.mrf.mxu2  ;;  %v2727_v56 = vpop.f32.mrf.mxu3 }
 0x585   :  { %v2578_v17 = vadd.f32 %v2577_v49, %v2488_v57  ;;  %v3145_v49 = vsel %vm3129_vm11, 0.0625, %v8824_v31 }
 0x586   :  { %v7261_v57 = vsub.f32 %v3145_v49, %v3145_v49  ;;  %v3137_v49 = vsel %vm3121_vm4, 0.0625, %v8824_v31 }
 0x587   :  { %v2621_v52 = vadd.f32 %v2620_v60, %v2578_v17 }
 0x588   :  { %v3199_v17 = vand.u32 4294901760, %v7261_v57 }
 0x589   :  { %v2650_v58 = vadd.f32 %v2649_v61, %v2621_v52 }
 0x58a   :  { %v3200_v52 = vsub.f32 %v7261_v57, %v3199_v17 }
 0x58c   :  { %v2702_v2 = vpop.f32.mrf.mxu2  ;;  %v2731_v54 = vpop.f32.mrf.mxu3 }
 0x58d   :  { %v2703_v40 = vadd.f32 %v2702_v2, %v2644_v16  ;;  %v3185_v16 = vsub.f32 %v7252_v7, %v3184_v32 }
 0x58f   :  { %v7215_v11 = vadd.f32 %v2727_v56, %v2703_v40  ;;  %v7276_v56 = vsub.f32 %v3144_v43, %v3144_v43  ;;  %v3186_v13 = vand.u32 4294901760, %v3185_v16  ;;  %v7371_v16 = vsub.f32 %v3137_v49, %v3137_v49 }
 0x591   :  { %v2734_v55 = vmul.f32 %v7215_v11, %v7215_v11  ;;  %v2750_v34 = vsub.f32 %v6992_v38, %v7215_v11  ;;  %v3147_v38 = vsel %vm3131_vm9, 0.0625, %v8824_v31  ;;  %v3204_v40 = vand.u32 4294901760, %v7276_v56  ;;  %3187 = vmatpush.msrb.mxu3 %v3186_v13 }
 0x592   :  { %v7254_v15 = vsub.f32 %v3147_v38, %v3147_v38 }
 0x594   :  { %v2706_v53 = vpop.f32.mrf.mxu2  ;;  %v3189_v22 = vand.u32 4294901760, %v7254_v15 }
 0x595   :  { %v2707_v14 = vadd.f32 %v2706_v53, %v2650_v58  ;;  %v3196_v58 = vand.u32 4294901760, %v3195_v8  ;;  %v3205_v53 = vsub.f32 %v7276_v56, %v3204_v40 }
 0x596   :  { %v3190_v60 = vsub.f32 %v7254_v15, %v3189_v22 }
 0x597   :  { %v2732_v18 = vadd.f32 %v2731_v54, %v2707_v14  ;;  %v3142_v14 = vsel %vm3126_vm15, 0.0625, %v8824_v31 }
 0x598   :  { %v3191_v11 = vand.u32 4294901760, %v3190_v60  ;;  %v7313_v37 = vsub.f32 %v3142_v14, %v3142_v14 }
 0x599   :  { %v2735_v48 = vsub.f32 %v2732_v18, %v2734_v55  ;;  %v3201_v55 = vand.u32 4294901760, %v3200_v52  ;;  %v3209_v18 = vand.u32 4294901760, %v7308_v9 }
 0x59a   :  { %3192 = vmatpush.msrb.mxu3 %v3191_v11 }
 0x59b   :  { %v2736_v51 = vmax.f32 %v2735_v48, 0.0  ;;  %v3140_v48 = vsel %vm3124_vm1, 0.0625, %v8824_v31 }
 0x59c   :  { %3197 = vmatpush.msrb.mxu3 %v3196_v58 }
 0x59d   :  { %v2737_v10 = vadd.f32 1e-05, %v2736_v51 }
 0x59e   :  { %3202 = vmatpush.msrb.mxu3 %v3201_v55 }
 0x59f   :  { %4831 = vrsqrt.f32 %v2737_v10  ;;  %vm2744_vm6 = vweird.f32 %v2737_v10 }
 0x5a5   :  { %v4832_v1 = vpop.eup %4831 }
 0x5a6   :  { %v2739_v35 = vmul.f32 %v4832_v1, %v2737_v10  ;;  %vm2745_vm7 = vweird.f32 %v4832_v1  ;;  %v3214_v10 = vand.u32 4294901760, %v7313_v37 }
 0x5a7   :  { %vm2746_vm12 = vmor %vm2744_vm6, %vm2745_vm7  ;;  %vm3119_vm6 = vcmp.lt.s32.totalorder %v8769_v29, 16  ;;  %vm3118_vm7 = vcmp.lt.s32.totalorder %v8772_v36, 16 }
 0x5a8   :  { %v2740_v46 = vmul.f32 %v4832_v1, %v2739_v35  ;;  %v7333_v35 = vsub.f32 %v3140_v48, %v3140_v48  ;;  %4715 = vmatpush.msk.msrb.mxu2 %vm3119_vm6, %v4895_v20  ;;  %v3134_v49 = vsel %vm3118_vm7, 0.0625, %v8824_v31 }
 0x5aa   :  { %v2741_v23 = vmul.f32 0.5, %v2740_v46  ;;  %v3210_v46 = vsub.f32 %v7308_v9, %v3209_v18  ;;  %v3224_v38 = vand.u32 4294901760, %v7333_v35  ;;  %4716 = vmatpush.msk.msrb.mxu2 %vm3118_vm7, %v4895_v20 }
 0x5ac   :  { %v2742_v19 = vsub.f32 1.5, %v2741_v23  ;;  %v3206_v23 = vand.u32 4294901760, %v3205_v53  ;;  %v3225_v52 = vsub.f32 %v7333_v35, %v3224_v38  ;;  %v3239_v53 = vand.u32 4294901760, %v7371_v16 }
 0x5ae   :  { %v2743_v50 = vmul.f32 %v4832_v1, %v2742_v19  ;;  %v3215_v19 = vsub.f32 %v7313_v37, %v3214_v10  ;;  %3207 = vmatpush.msrb.mxu3 %v3206_v23  ;;  %v3240_v48 = vsub.f32 %v7371_v16, %v3239_v53 }
 0x5b0   :  { %v2747_v30 = vsel %vm2746_vm12, %v4832_v1, %v2743_v50  ;;  %v7328_v1 = vsub.f32 %v3141_v45, %v3141_v45  ;;  %v3216_v8 = vand.u32 4294901760, %v3215_v19  ;;  %v3135_v19 = vsel %vm3119_vm6, 0.0625, %v8824_v31 }
 0x5b1   :  { %v2749_v2 = vmul.f32 %v4816_v47, %v2747_v30  ;;  %v3138_v47 = vsel %vm3122_vm3, 0.0625, %v8824_v31  ;;  %v3211_v30 = vand.u32 4294901760, %v3210_v46  ;;  %v3241_v46 = vand.u32 4294901760, %v3240_v48 }
 0x5b2   :  { %v3219_v12 = vand.u32 4294901760, %v7328_v1  ;;  %vm3117_vm12 = vcmp.lt.s32.totalorder %v8774_v24, 16 }
 0x5b3   :  { %v2751_v61 = vmul.f32 %v2750_v34, %v2749_v2  ;;  %v7361_v2 = vsub.f32 %v3139_v6, %v3139_v6  ;;  %3212 = vmatpush.msrb.mxu3 %v3211_v30  ;;  %v3253_v30 = vsub.f32 %v3134_v49, %v3134_v49  ;;  %4717 = vmatpush.msk.msrb.mxu2 %vm3117_vm12, %v4895_v20 }
 0x5b4   :  { %v3220_v43 = vsub.f32 %v7328_v1, %v3219_v12 }
 0x5b5   :  { %v2753_v54 = vadd.f32 %v4817_v63, %v2751_v61  ;;  %v7369_v63 = vsub.f32 %v3138_v47, %v3138_v47  ;;  %v3229_v0 = vand.u32 4294901760, %v7361_v2  ;;  %3217 = vmatpush.msrb.mxu3 %v3216_v8  ;;  %v3248_v47 = vsub.f32 %v3135_v19, %v3135_v19  ;;  %v3461_v19 = vld [vmem:[#allocation4 + $0x268] sm:$0xff] }
 0x5b6   :  { %v3221_v11 = vand.u32 4294901760, %v3220_v43  ;;  %v7582_v49 = vand.u32 4294901760, %v3461_v19 }
 0x5b7   :  { %v2754_v51 = vmax.f32 %v2753_v54, 0.0  ;;  %v3234_v61 = vand.u32 4294901760, %v7369_v63  ;;  %v3230_v58 = vsub.f32 %v7361_v2, %v3229_v0  ;;  %v3226_v54 = vand.u32 4294901760, %v3225_v52 }
 0x5b8   :  { %3222 = vmatpush.msrb.mxu3 %v3221_v11  ;;  %v3249_v43 = vand.u32 4294901760, %v3248_v47 }
 0x5b9   :  { %v2806_v34 = vand.u32 4294901760, %v2754_v51  ;;  %v3235_v55 = vsub.f32 %v7369_v63, %v3234_v61  ;;  %v3231_v45 = vand.u32 4294901760, %v3230_v58 }
 0x5ba   :  { %3227 = vmatpush.msrb.mxu3 %v3226_v54  ;;  %v3250_v52 = vsub.f32 %v3248_v47, %v3249_v43 }
 0x5bb   :  { %2912 = vmatmul.f32.vlgmr.msra.gmra.mxu1 %v2806_v34  ;;  %v2807_v50 = vsub.f32 %v2754_v51, %v2806_v34  ;;  %v3236_v51 = vand.u32 4294901760, %v3235_v55 }
 0x5bc   :  { %4718 = vmatpush.msk.msra.mxu1 %vm3132_vm8, %v4895_v20  ;;  %3232 = vmatpush.msrb.mxu3 %v3231_v45  ;;  %v3251_v58 = vand.u32 4294901760, %v3250_v52  ;;  %v3459_v52 = vld [vmem:[#allocation4 + $0x258] sm:$0xff] }
 0x5bd   :  { %2966 = vmatmul.f32.vlgmr.msra.gmra.mxu2 %v2807_v50  ;;  %v2808_v60 = vand.u32 4294901760, %v2807_v50 }
 0x5be   :  { %4719 = vmatpush.msk.msra.mxu1 %vm3131_vm9, %v4895_v20  ;;  %3237 = vmatpush.msrb.mxu3 %v3236_v51 }
 0x5bf   :  { %3005 = vmatmul.f32.vlgmr.msra.gmra.mxu3 %v2808_v60  ;;  %v2809_v13 = vsub.f32 %v2807_v50, %v2808_v60  ;;  %v3133_v60 = vsel %vm3117_vm12, 0.0625, %v8824_v31  ;;  %3346 = vmatpush.msra.mxu2 %v3184_v32 }
 0x5c0   :  { %4720 = vmatpush.msk.msra.mxu1 %vm3130_vm10, %v4895_v20  ;;  %3242 = vmatpush.msrb.mxu3 %v3241_v46  ;;  %v3258_v11 = vsub.f32 %v3133_v60, %v3133_v60  ;;  %v3462_v46 = vld [vmem:[#allocation4 + $0x270] sm:$0xff]  ;;  %v7592_v60 = vsub.f32 %v3461_v19, %v7582_v49 }
 0x5c1   :  { %v2810_v14 = vand.u32 4294901760, %v2809_v13  ;;  %v3254_v13 = vand.u32 4294901760, %v3253_v30  ;;  %3349 = vmatpush.msra.mxu2 %v3189_v22 }
 0x5c2   :  { %4721 = vmatpush.msk.msra.mxu1 %vm3129_vm11, %v4895_v20  ;;  %v3259_v54 = vand.u32 4294901760, %v3258_v11 }
 0x5c3   :  { %2811 = vmatmul.f32.vlgmr.msra.gmra.mxu0 %v2810_v14  ;;  %3111 = vmatmul.f32.vlgmr.msrb.gmra.mxu1 %v2806_v34  ;;  %v3255_v14 = vsub.f32 %v3253_v30, %v3254_v13 }
 0x5c4   :  { %3273 = vmatpush.msra.mxu0 %v7252_v7  ;;  %4722 = vmatpush.msk.msra.mxu1 %vm3128_vm13, %v4895_v20  ;;  %v3260_v45 = vsub.f32 %v3258_v11, %v3259_v54  ;;  %v4818_v7 = vld [vmem:[%s8388_s3 + $0x4] ss:$0 sm:$0xff] }
 0x5c5   :  { %v3256_v55 = vand.u32 4294901760, %v3255_v14  ;;  %3352 = vmatpush.msra.mxu2 %v3194_v25 }
 0x5c6   :  { %3275 = vmatpush.msra.mxu0 %v7254_v15  ;;  %4723 = vmatpush.msk.msra.mxu1 %vm3127_vm14, %v4895_v20  ;;  %v3261_v48 = vand.u32 4294901760, %v3260_v45 }
 0x5c7   :  { %3355 = vmatpush.msra.mxu2 %v3199_v17 }
 0x5c8   :  { %3277 = vmatpush.msra.mxu0 %v7256_v3  ;;  %4724 = vmatpush.msk.msra.mxu1 %vm3126_vm15, %v4895_v20 }
 0x5c9   :  { %3358 = vmatpush.msra.mxu2 %v3204_v40 }
 0x5ca   :  { %3279 = vmatpush.msra.mxu0 %v7261_v57  ;;  %4725 = vmatpush.msk.msra.mxu1 %vm3125_vm0, %v4895_v20 }
 0x5cb   :  { %3074 = vmatmul.f32.vlgmr.msrb.gmra.mxu0 %v2806_v34  ;;  %v3136_v34 = vsel %vm3120_vm5, 0.0625, %v8824_v31  ;;  %3361 = vmatpush.msra.mxu2 %v3209_v18 }
 0x5cc   :  { %3281 = vmatpush.msra.mxu0 %v7276_v56  ;;  %4726 = vmatpush.msk.msra.mxu1 %vm3124_vm1, %v4895_v20  ;;  %v3243_v23 = vsub.f32 %v3136_v34, %v3136_v34 }
 0x5cd   :  { %3364 = vmatpush.msra.mxu2 %v3214_v10 }
 0x5ce   :  { %3283 = vmatpush.msra.mxu0 %v7308_v9  ;;  %4727 = vmatpush.msk.msra.mxu1 %vm3123_vm2, %v4895_v20  ;;  %v3244_v6 = vand.u32 4294901760, %v3243_v23 }
 0x5cf   :  { %3367 = vmatpush.msra.mxu2 %v3219_v12 }
 0x5d0   :  { %3285 = vmatpush.msra.mxu0 %v7313_v37  ;;  %4728 = vmatpush.msk.msra.mxu1 %vm3122_vm3, %v4895_v20  ;;  %v3245_v50 = vsub.f32 %v3243_v23, %v3244_v6 }
 0x5d1   :  { %3370 = vmatpush.msra.mxu2 %v3224_v38 }
 0x5d2   :  { %3287 = vmatpush.msra.mxu0 %v7328_v1  ;;  %4729 = vmatpush.msk.msra.mxu1 %vm3121_vm4, %v4895_v20  ;;  %v3246_v8 = vand.u32 4294901760, %v3245_v50  ;;  %v3460_v50 = vld [vmem:[#allocation4 + $0x260] sm:$0xff] }
 0x5d3   :  { %3373 = vmatpush.msra.mxu2 %v3229_v0 }
 0x5d4   :  { %3289 = vmatpush.msra.mxu0 %v7333_v35  ;;  %4730 = vmatpush.msk.msra.mxu1 %vm3120_vm5, %v4895_v20 }
 0x5d5   :  { %3247 = vmatpush.msrb.mxu3 %v3246_v8  ;;  %3376 = vmatpush.msra.mxu2 %v3234_v61  ;;  %v7594_v8 = vand.u32 4294901760, %v3460_v50 }
 0x5d6   :  { %3291 = vmatpush.msra.mxu0 %v7361_v2  ;;  %4731 = vmatpush.msk.msra.mxu1 %vm3119_vm6, %v4895_v20 }
 0x5d7   :  { %3252 = vmatpush.msrb.mxu3 %v3251_v58  ;;  %3379 = vmatpush.msra.mxu2 %v3239_v53  ;;  %v3463_v53 = vld [vmem:[#allocation4 + $0x278] sm:$0xff]  ;;  %v3521_v58 = vand.u32 4294901760, %v7592_v60  ;;  %v7604_v14 = vsub.f32 %v3460_v50, %v7594_v8 }
 0x5d8   :  { %3293 = vmatpush.msra.mxu0 %v7369_v63  ;;  %4732 = vmatpush.msk.msra.mxu1 %vm3118_vm7, %v4895_v20  ;;  %v7569_v51 = vand.u32 4294901760, %v3463_v53 }
 0x5d9   :  { %3257 = vmatpush.msrb.mxu3 %v3256_v55  ;;  %3382 = vmatpush.msra.mxu2 %v3244_v6  ;;  %v3458_v55 = vld [vmem:[#allocation4 + $0x250] sm:$0xff] }
 0x5da   :  { %3295 = vmatpush.msra.mxu0 %v7371_v16  ;;  %4733 = vmatpush.msk.msra.mxu1 %vm3117_vm12, %v4895_v20  ;;  %v7572_v34 = vsub.f32 %v3463_v53, %v7569_v51 }
 0x5db   :  { %3262 = vmatpush.msrb.mxu3 %v3261_v48  ;;  %3385 = vmatpush.msra.mxu2 %v3249_v43  ;;  %v3522_v48 = vsub.f32 %v7592_v60, %v3521_v58 }
 0x5dc   :  { %3297 = vmatpush.msra.mxu0 %v3243_v23  ;;  %v7574_v23 = vand.u32 4294901760, %v3462_v46  ;;  %v3509_v6 = vand.u32 4294901760, %v7572_v34 }
 0x5dd   :  { %4734 = vmatpush.msk.msra.mxu3 %vm3132_vm8, %v4895_v20  ;;  %3388 = vmatpush.msra.mxu2 %v3254_v13 }
 0x5de   :  { %3299 = vmatpush.msra.mxu0 %v3248_v47  ;;  %v7580_v47 = vsub.f32 %v3462_v46, %v7574_v23  ;;  %v3510_v43 = vsub.f32 %v7572_v34, %v3509_v6 }
 0x5df   :  { %4735 = vmatpush.msk.msra.mxu3 %vm3131_vm9, %v4895_v20  ;;  %3391 = vmatpush.msra.mxu2 %v3259_v54  ;;  %v7608_v54 = vand.u32 4294901760, %v3459_v52 }
 0x5e0   :  { %3301 = vmatpush.msra.mxu0 %v3253_v30  ;;  %v3515_v30 = vand.u32 4294901760, %v7580_v47  ;;  %v3511_v13 = vand.u32 4294901760, %v3510_v43  ;;  %v3453_v43 = vld [vmem:[#allocation4 + $0x228] sm:$0xff] }
 0x5e1   :  { %4736 = vmatpush.msk.msra.mxu3 %vm3130_vm10, %v4895_v20  ;;  %vm3824_vm10 = vcmp.lt.s32.totalorder %v5157_v26, 8  ;;  %v4821_v26 = vld [vmem:[%s8388_s3 + $0x5] ss:$0 sm:$0xff] }
 0x5e2   :  { %3303 = vmatpush.msra.mxu0 %v3258_v11  ;;  %v3516_v11 = vsub.f32 %v7580_v47, %v3515_v30  ;;  %3512 = vmatpush.msrb.mxu1 %v3511_v13 }
 0x5e3   :  { %4737 = vmatpush.msk.msra.mxu3 %vm3129_vm11, %v4895_v20  ;;  %vm3823_vm11 = vcmp.lt.s32.totalorder %v5160_v27, 8 }
 0x5e4   :  { %3467 = vmatpush.msrb.mxu0 %v7569_v51  ;;  %v3517_v45 = vand.u32 4294901760, %v3516_v11 }
 0x5e5   :  { %4738 = vmatpush.msk.msra.mxu3 %vm3128_vm13, %v4895_v20  ;;  %vm3822_vm13 = vcmp.lt.s32.totalorder %v5163_v39, 8 }
 0x5e6   :  { %3469 = vmatpush.msrb.mxu0 %v7574_v23  ;;  %3518 = vmatpush.msrb.mxu1 %v3517_v45 }
 0x5e7   :  { %4739 = vmatpush.msk.msra.mxu3 %vm3127_vm14, %v4895_v20  ;;  %vm3821_vm14 = vcmp.lt.s32.totalorder %v5166_v5, 8 }
 0x5e8   :  { %3471 = vmatpush.msrb.mxu0 %v7582_v49 }
 0x5e9   :  { %4740 = vmatpush.msk.msra.mxu3 %vm3126_vm15, %v4895_v20  ;;  %vm3820_vm15 = vcmp.lt.s32.totalorder %v5172_v28, 8 }
 0x5ea   :  { %3473 = vmatpush.msrb.mxu0 %v7594_v8 }
 0x5eb   :  { %4741 = vmatpush.msk.msra.mxu3 %vm3125_vm0, %v4895_v20 }
 0x5ec   :  { %3475 = vmatpush.msrb.mxu0 %v7608_v54 }
 0x5ed   :  { %4742 = vmatpush.msk.msra.mxu3 %vm3124_vm1, %v4895_v20  ;;  %vm3819_vm1 = vcmp.lt.s32.totalorder %v5175_v41, 8 }
 0x5ef   :  { %4743 = vmatpush.msk.msra.mxu3 %vm3123_vm2, %v4895_v20  ;;  %vm3818_vm2 = vcmp.lt.s32.totalorder %v5178_v42, 8 }
 0x5f1   :  { %4744 = vmatpush.msk.msra.mxu3 %vm3122_vm3, %v4895_v20  ;;  %vm3817_vm3 = vcmp.lt.s32.totalorder %v5218_v62, 8 }
 0x5f3   :  { %4745 = vmatpush.msk.msra.mxu3 %vm3121_vm4, %v4895_v20  ;;  %vm3816_vm4 = vcmp.lt.s32.totalorder %v5301_v33, 8 }
 0x5f5   :  { %4746 = vmatpush.msk.msra.mxu3 %vm3120_vm5, %v4895_v20  ;;  %vm3815_vm5 = vcmp.lt.s32.totalorder %v5324_v44, 8 }
 0x5f7   :  { %4747 = vmatpush.msk.msra.mxu3 %vm3119_vm6, %v4895_v20  ;;  %vm3814_vm6 = vcmp.lt.s32.totalorder %v5327_v21, 8 }
 0x5f9   :  { %4748 = vmatpush.msk.msra.mxu3 %vm3118_vm7, %v4895_v20  ;;  %vm3813_vm7 = vcmp.lt.s32.totalorder %v8762_v59, 8 }
 0x5fb   :  { %4749 = vmatpush.msk.msra.mxu3 %vm3117_vm12, %v4895_v20  ;;  %vm3812_vm12 = vcmp.lt.s32.totalorder %v8765_v4, 8 }
 0x638   :  { %v2913_v15 = vpop.f32.mrf.mxu1 }
 0x640   :  { %v2812_v3 = vpop.f32.mrf.mxu0  ;;  %v2967_v22 = vpop.f32.mrf.mxu2 }
 0x641   :  { %v2813_v57 = vadd.f32 %v4818_v7, %v2812_v3  ;;  %v3112_v37 = vpop.f32.mrf.mxu1  ;;  %v8565_v7 = vand.u32 4294901760, %v7604_v14  ;;  %v7619_v3 = vsub.f32 %v3459_v52, %v7608_v54 }
 0x642   :  { %v3006_v17 = vpop.f32.mrf.mxu3 }
 0x643   :  { %v2914_v32 = vadd.f32 %v2913_v15, %v2813_v57  ;;  %v7615_v15 = vand.u32 4294901760, %v3458_v55  ;;  %v3457_v57 = vld [vmem:[#allocation4 + $0x248] sm:$0xff] }
 0x645   :  { %v2968_v25 = vadd.f32 %v2967_v22, %v2914_v32  ;;  %v3523_v32 = vand.u32 4294901760, %v3522_v48  ;;  %v3528_v22 = vsub.f32 %v7604_v14, %v8565_v7  ;;  %3477 = vmatpush.msrb.mxu0 %v7615_v15  ;;  %v3452_v48 = vld [vmem:[#allocation4 + $0x220] sm:$0xff] }
 0x647   :  { %v3007_v56 = vadd.f32 %v3006_v17, %v2968_v25  ;;  %v7627_v25 = vsub.f32 %v3458_v55, %v7615_v15  ;;  %v7629_v17 = vand.u32 4294901760, %v3457_v57  ;;  %3524 = vmatpush.msrb.mxu1 %v3523_v32  ;;  %v7673_v55 = vand.u32 4294901760, %v3453_v43 }
 0x648   :  { %v3075_v40 = vpop.f32.mrf.mxu0 }
 0x649   :  { %v3076_v9 = vadd.f32 %v3075_v40, %v3007_v56  ;;  %v8564_v56 = vand.u32 4294901760, %v7619_v3  ;;  %v3456_v40 = vld [vmem:[#allocation4 + $0x240] sm:$0xff]  ;;  %3479 = vmatpush.msrb.mxu0 %v7629_v17 }
 0x64b   :  { %v7563_v18 = vadd.f32 %v3112_v37, %v3076_v9  ;;  %v3529_v9 = vand.u32 4294901760, %v3528_v22  ;;  %v8562_v37 = vand.u32 4294901760, %v7627_v25  ;;  %v7685_v22 = vsub.f32 %v3453_v43, %v7673_v55 }
 0x64d   :  { %v3166_v10 = vand.u32 4294901760, %v7563_v18  ;;  %v3149_v1 = vmul.f32 %v7563_v18, %v7563_v18  ;;  %3530 = vmatpush.msrb.mxu1 %v3529_v9 }
 0x64f   :  { %3264 = vmatmul.f32.vlgmr.msrb.gmra.mxu3 %v3166_v10  ;;  %v3167_v20 = vsub.f32 %v7563_v18, %v3166_v10  ;;  %v3174_v35 = vand.u32 4294901760, %v3149_v1 }
 0x650   :  { %3663 = vmatpush.msrb.mxu3 %v7569_v51 }
 0x651   :  { %3306 = vmatmul.f32.vlgmr.msra.gmra.mxu0 %v3167_v20  ;;  %v3168_v12 = vand.u32 4294901760, %v3167_v20  ;;  %v3175_v38 = vsub.f32 %v3149_v1, %v3174_v35  ;;  %v7638_v1 = vand.u32 4294901760, %v3456_v40 }
 0x652   :  { %3665 = vmatpush.msrb.mxu3 %v7574_v23 }
 0x653   :  { %3334 = vmatmul.f32.vlgmr.msra.gmra.mxu1 %v3168_v12  ;;  %v3169_v2 = vsub.f32 %v3167_v20, %v3168_v12  ;;  %v3176_v16 = vand.u32 4294901760, %v3175_v38  ;;  %v3534_v20 = vsub.f32 %v7619_v3, %v8564_v56  ;;  %v3540_v12 = vsub.f32 %v7627_v25, %v8562_v37  ;;  %3481 = vmatpush.msrb.mxu0 %v7638_v1 }
 0x654   :  { %3667 = vmatpush.msrb.mxu3 %v7582_v49 }
 0x655   :  { %v3170_v63 = vand.u32 4294901760, %v3169_v2  ;;  %v3177_v0 = vsub.f32 %v3175_v38, %v3176_v16  ;;  %v7651_v2 = vsub.f32 %v3456_v40, %v7638_v1  ;;  %v7687_v40 = vand.u32 4294901760, %v3452_v48 }
 0x656   :  { %3669 = vmatpush.msrb.mxu3 %v7594_v8 }
 0x657   :  { %3171 = vmatmul.f32.vlgmr.msrb.gmra.mxu2 %v3170_v63  ;;  %3268 = vmatmul.f32.gmra.mxu3 %v3174_v35  ;;  %v3178_v61 = vand.u32 4294901760, %v3177_v0  ;;  %v3454_v0 = vld [vmem:[#allocation4 + $0x230] sm:$0xff]  ;;  %v8559_v46 = vand.u32 4294901760, %v7651_v2 }
 0x658   :  { %3610 = vmatpush.msrb.mxu2 %v7572_v34  ;;  %3671 = vmatpush.msrb.mxu3 %v7608_v54  ;;  %v7666_v50 = vand.u32 4294901760, %v3454_v0 }
 0x659   :  { %3311 = vmatmul.f32.gmra.mxu0 %v3175_v38  ;;  %v3552_v13 = vsub.f32 %v7651_v2, %v8559_v46 }
 0x65a   :  { %3613 = vmatpush.msrb.mxu2 %v7580_v47  ;;  %3673 = vmatpush.msrb.mxu3 %v7615_v15  ;;  %v7678_v45 = vsub.f32 %v3454_v0, %v7666_v50  ;;  %v8826_v47 = vand.u32 4294901760, %v7619_v3 }
 0x65b   :  { %3340 = vmatmul.f32.gmra.mxu1 %v3176_v16  ;;  %v3535_v16 = vand.u32 4294901760, %v3534_v20  ;;  %v3451_v20 = vld [vmem:[#allocation4 + $0x218] sm:$0xff] }
 0x65c   :  { %3616 = vmatpush.msrb.mxu2 %v7592_v60  ;;  %3675 = vmatpush.msrb.mxu3 %v7629_v17  ;;  %v8556_v9 = vand.u32 4294901760, %v7678_v45  ;;  %v7697_v0 = vand.u32 4294901760, %v3451_v20 }
 0x65d   :  { %3536 = vmatpush.msrb.mxu1 %v3535_v16  ;;  %v7695_v16 = vsub.f32 %v3452_v48, %v7687_v40 }
 0x65e   :  { %3619 = vmatpush.msrb.mxu2 %v7604_v14  ;;  %3677 = vmatpush.msrb.mxu3 %v7638_v1 }
 0x65f   :  { %3179 = vmatmul.f32.gmra.mxu2 %v3178_v61  ;;  %3418 = vmatmul.f32.vlgmr.msra.gmra.mxu3 %v3166_v10  ;;  %v3541_v61 = vand.u32 4294901760, %v3540_v12  ;;  %v8558_v12 = vand.u32 4294901760, %v7685_v22 }
 0x660   :  { %3622 = vmatpush.msrb.mxu2 %v7619_v3 }
 0x661   :  { %3542 = vmatpush.msrb.mxu1 %v3541_v61  ;;  %v3564_v61 = vsub.f32 %v7678_v45, %v8556_v9  ;;  %v3570_v43 = vsub.f32 %v7685_v22, %v8558_v12 }
 0x662   :  { %3625 = vmatpush.msrb.mxu2 %v7627_v25 }
 0x667   :  { %3393 = vmatmul.f32.vlgmr.msra.gmra.mxu2 %v3166_v10  ;;  %3422 = vmatmul.f32.gmra.mxu3 %v3174_v35  ;;  %v7636_v10 = vsub.f32 %v3457_v57, %v7629_v17  ;;  %v3553_v57 = vand.u32 4294901760, %v3552_v13  ;;  %v7710_v13 = vsub.f32 %v3451_v20, %v7697_v0 }
 0x669   :  { %v8561_v38 = vand.u32 4294901760, %v7636_v10  ;;  %3628 = vmatpush.msrb.mxu2 %v7636_v10  ;;  %v8563_v20 = vand.u32 4294901760, %v7710_v13 }
 0x66b   :  { %v3546_v53 = vsub.f32 %v7636_v10, %v8561_v38  ;;  %3631 = vmatpush.msrb.mxu2 %v7651_v2 }
 0x66d   :  { %v3547_v52 = vand.u32 4294901760, %v3546_v53  ;;  %v3450_v53 = vld [vmem:[#allocation4 + $0x210] sm:$0xff] }
 0x66e   :  { %v7712_v48 = vand.u32 4294901760, %v3450_v53 }
 0x66f   :  { %3397 = vmatmul.f32.gmra.mxu2 %v3174_v35  ;;  %v3455_v35 = vld [vmem:[#allocation4 + $0x238] sm:$0xff]  ;;  %3548 = vmatpush.msrb.mxu1 %v3547_v52  ;;  %v8560_v52 = vand.u32 4294901760, %v7695_v16 }
 0x670   :  { %v7653_v63 = vand.u32 4294901760, %v3455_v35  ;;  %v7722_v46 = vsub.f32 %v3450_v53, %v7712_v48 }
 0x671   :  { %3554 = vmatpush.msrb.mxu1 %v3553_v57  ;;  %v3565_v57 = vand.u32 4294901760, %v3564_v61  ;;  %v3576_v12 = vsub.f32 %v7695_v16, %v8560_v52  ;;  %v3448_v61 = vld [vmem:[#allocation4 + $0x200] sm:$0xff]  ;;  %v3582_v52 = vsub.f32 %v7710_v13, %v8563_v20 }
 0x672   :  { %v7663_v19 = vsub.f32 %v3455_v35, %v7653_v63  ;;  %3483 = vmatpush.msrb.mxu0 %v7653_v63  ;;  %3679 = vmatpush.msrb.mxu3 %v7653_v63  ;;  %v8566_v38 = vand.u32 4294901760, %v7722_v46  ;;  %v7733_v37 = vand.u32 4294901760, %v3448_v61 }
 0x674   :  { %v8557_v11 = vand.u32 4294901760, %v7663_v19  ;;  %3485 = vmatpush.msrb.mxu0 %v7666_v50  ;;  %3634 = vmatpush.msrb.mxu2 %v7663_v19  ;;  %v3588_v20 = vsub.f32 %v7722_v46, %v8566_v38  ;;  %v7745_v56 = vsub.f32 %v3448_v61, %v7733_v37 }
 0x675   :  { %3681 = vmatpush.msrb.mxu3 %v7666_v50 }
 0x676   :  { %v3558_v32 = vsub.f32 %v7663_v19, %v8557_v11  ;;  %3487 = vmatpush.msrb.mxu0 %v7673_v55  ;;  %3637 = vmatpush.msrb.mxu2 %v7678_v45  ;;  %v3571_v11 = vand.u32 4294901760, %v3570_v43  ;;  %v3577_v43 = vand.u32 4294901760, %v3576_v12  ;;  %v3583_v12 = vand.u32 4294901760, %v3582_v52 }
 0x677   :  { %3683 = vmatpush.msrb.mxu3 %v7673_v55  ;;  %v3599_v7 = vand.u32 4294901760, %v7745_v56 }
 0x678   :  { %v3559_v35 = vand.u32 4294901760, %v3558_v32  ;;  %3489 = vmatpush.msrb.mxu0 %v7687_v40  ;;  %3640 = vmatpush.msrb.mxu2 %v7685_v22  ;;  %v3449_v32 = vld [vmem:[#allocation4 + $0x208] sm:$0xff] }
 0x679   :  { %3685 = vmatpush.msrb.mxu3 %v7687_v40  ;;  %v3600_v61 = vsub.f32 %v7745_v56, %v3599_v7 }
 0x67a   :  { %3560 = vmatpush.msrb.mxu1 %v3559_v35  ;;  %3491 = vmatpush.msrb.mxu0 %v7697_v0  ;;  %v7726_v35 = vand.u32 4294901760, %v3449_v32 }
 0x67b   :  { %3643 = vmatpush.msrb.mxu2 %v7695_v16  ;;  %3687 = vmatpush.msrb.mxu3 %v7697_v0  ;;  %v3601_v38 = vand.u32 4294901760, %v3600_v61 }
 0x67c   :  { %3566 = vmatpush.msrb.mxu1 %v3565_v57  ;;  %3493 = vmatpush.msrb.mxu0 %v7712_v48  ;;  %v7738_v53 = vsub.f32 %v3449_v32, %v7726_v35  ;;  %v3589_v32 = vand.u32 4294901760, %v3588_v20 }
 0x67d   :  { %3646 = vmatpush.msrb.mxu2 %v7710_v13  ;;  %3689 = vmatpush.msrb.mxu3 %v7712_v48 }
 0x67e   :  { %3572 = vmatpush.msrb.mxu1 %v3571_v11  ;;  %3495 = vmatpush.msrb.mxu0 %v7726_v35  ;;  %v3593_v11 = vand.u32 4294901760, %v7738_v53 }
 0x67f   :  { %3649 = vmatpush.msrb.mxu2 %v7722_v46  ;;  %3691 = vmatpush.msrb.mxu3 %v7726_v35 }
 0x680   :  { %3578 = vmatpush.msrb.mxu1 %v3577_v43  ;;  %3497 = vmatpush.msrb.mxu0 %v7733_v37  ;;  %v3594_v52 = vsub.f32 %v7738_v53, %v3593_v11 }
 0x681   :  { %3652 = vmatpush.msrb.mxu2 %v7738_v53  ;;  %3693 = vmatpush.msrb.mxu3 %v7733_v37  ;;  %v8825_v53 = vand.u32 4294901760, %v7604_v14 }
 0x682   :  { %3704 = vmatpush.msra.mxu0 %v3509_v6  ;;  %3584 = vmatpush.msrb.mxu1 %v3583_v12  ;;  %v3595_v20 = vand.u32 4294901760, %v3594_v52 }
 0x683   :  { %3655 = vmatpush.msrb.mxu2 %v7745_v56  ;;  %v8827_v56 = vand.u32 4294901760, %v7627_v25 }
 0x684   :  { %3708 = vmatpush.msra.mxu0 %v3515_v30  ;;  %3590 = vmatpush.msrb.mxu1 %v3589_v32 }
 0x686   :  { %3712 = vmatpush.msra.mxu0 %v3521_v58  ;;  %3596 = vmatpush.msrb.mxu1 %v3595_v20  ;;  %v8828_v58 = vand.u32 4294901760, %v7636_v10  ;;  %v8831_v10 = vand.u32 4294901760, %v7678_v45  ;;  %v8834_v45 = vand.u32 4294901760, %v7710_v13  ;;  %v8835_v20 = vand.u32 4294901760, %v7722_v46 }
 0x688   :  { %3716 = vmatpush.msra.mxu0 %v8825_v53  ;;  %3602 = vmatpush.msrb.mxu1 %v3601_v38 }
 0x68a   :  { %3771 = vmatpush.msra.mxu1 %v7569_v51  ;;  %3720 = vmatpush.msra.mxu0 %v8826_v47  ;;  %v8829_v51 = vand.u32 4294901760, %v7651_v2 }
 0x68c   :  { %3773 = vmatpush.msra.mxu1 %v7574_v23  ;;  %3724 = vmatpush.msra.mxu0 %v8827_v56  ;;  %v8830_v23 = vand.u32 4294901760, %v7663_v19  ;;  %v8833_v19 = vand.u32 4294901760, %v7695_v16  ;;  %v4896_v56 = vmov 0.125  }
 0x68d   :  { %4750 = vmatpush.msk.msra.mxu2 %vm3824_vm10, %v4896_v56 }
 0x68e   :  { %3775 = vmatpush.msra.mxu1 %v7582_v49  ;;  %3728 = vmatpush.msra.mxu0 %v8828_v58 }
 0x68f   :  { %4751 = vmatpush.msk.msra.mxu2 %vm3823_vm11, %v4896_v56 }
 0x690   :  { %3777 = vmatpush.msra.mxu1 %v7594_v8  ;;  %3732 = vmatpush.msra.mxu0 %v8829_v51  ;;  %v8832_v8 = vand.u32 4294901760, %v7685_v22  ;;  %v4820_v51 = vld [vmem:[%s8388_s3 + $0x12] ss:$0 sm:$0xff] }
 0x691   :  { %4752 = vmatpush.msk.msra.mxu2 %vm3822_vm13, %v4896_v56 }
 0x692   :  { %3779 = vmatpush.msra.mxu1 %v7608_v54  ;;  %3736 = vmatpush.msra.mxu0 %v8830_v23 }
 0x693   :  { %4753 = vmatpush.msk.msra.mxu2 %vm3821_vm14, %v4896_v56 }
 0x694   :  { %3781 = vmatpush.msra.mxu1 %v7615_v15  ;;  %3740 = vmatpush.msra.mxu0 %v8831_v10  ;;  %v3835_v10 = vsel %vm3819_vm1, 0.125, %v8824_v31 }
 0x695   :  { %4754 = vmatpush.msk.msra.mxu2 %vm3820_vm15, %v4896_v56 }
 0x696   :  { %3783 = vmatpush.msra.mxu1 %v7629_v17  ;;  %3744 = vmatpush.msra.mxu0 %v8832_v8 }
 0x697   :  { %4755 = vmatpush.msk.msra.mxu2 %vm3819_vm1, %v4896_v56 }
 0x698   :  { %3785 = vmatpush.msra.mxu1 %v7638_v1  ;;  %3748 = vmatpush.msra.mxu0 %v8833_v19  ;;  %v7879_v19 = vsub.f32 %v3835_v10, %v3835_v10 }
 0x699   :  { %4756 = vmatpush.msk.msra.mxu2 %vm3818_vm2, %v4896_v56 }
 0x69a   :  { %3787 = vmatpush.msra.mxu1 %v7653_v63  ;;  %3752 = vmatpush.msra.mxu0 %v8834_v45 }
 0x69b   :  { %4757 = vmatpush.msk.msra.mxu2 %vm3817_vm3, %v4896_v56 }
 0x69c   :  { %3789 = vmatpush.msra.mxu1 %v7666_v50  ;;  %3756 = vmatpush.msra.mxu0 %v8835_v20  ;;  %v3833_v20 = vsel %vm3817_vm3, 0.125, %v8824_v31 }
 0x69d   :  { %4758 = vmatpush.msk.msra.mxu2 %vm3816_vm4, %v4896_v56 }
 0x69e   :  { %3791 = vmatpush.msra.mxu1 %v7673_v55  ;;  %3760 = vmatpush.msra.mxu0 %v3593_v11 }
 0x69f   :  { %4759 = vmatpush.msk.msra.mxu2 %vm3815_vm5, %v4896_v56 }
 0x6a0   :  { %3793 = vmatpush.msra.mxu1 %v7687_v40  ;;  %3764 = vmatpush.msra.mxu0 %v3599_v7  ;;  %v3838_v40 = vsel %vm3822_vm13, 0.125, %v8824_v31 }
 0x6a1   :  { %4760 = vmatpush.msk.msra.mxu2 %vm3814_vm6, %v4896_v56 }
 0x6a2   :  { %3795 = vmatpush.msra.mxu1 %v7697_v0  ;;  %v4819_v0 = vld [vmem:[%s8388_s3 + $0xb] ss:$0 sm:$0xff] }
 0x6a3   :  { %4761 = vmatpush.msk.msra.mxu2 %vm3813_vm7, %v4896_v56 }
 0x6a4   :  { %3797 = vmatpush.msra.mxu1 %v7712_v48 }
 0x6a5   :  { %4762 = vmatpush.msk.msra.mxu2 %vm3812_vm12, %v4896_v56 }
 0x6a6   :  { %3799 = vmatpush.msra.mxu1 %v7726_v35 }
 0x6a8   :  { %3801 = vmatpush.msra.mxu1 %v7733_v37  ;;  %v3840_v37 = vsel %vm3824_vm10, 0.125, %v8824_v31 }
 0x6a9   :  { %v7823_v48 = vsub.f32 %v3840_v37, %v3840_v37 }
 0x6ce   :  { %v3307_v34 = vpop.f32.mrf.mxu0 }
 0x6d0   :  { %v3335_v30 = vpop.f32.mrf.mxu1 }
 0x6d2   :  { %v3265_v9 = vpop.f32.mrf.mxu3 }
 0x6d8   :  { %v3341_v32 = vpop.f32.mrf.mxu1 }
 0x6da   :  { %v3172_v57 = vpop.f32.mrf.mxu2  ;;  %v3269_v43 = vpop.f32.mrf.mxu3 }
 0x6db   :  { %v3266_v12 = vadd.f32 %v3265_v9, %v3172_v57  ;;  %v3312_v57 = vpop.f32.mrf.mxu0 }
 0x6dd   :  { %v3308_v60 = vadd.f32 %v3307_v34, %v3266_v12  ;;  %v3837_v34 = vsel %vm3821_vm14, 0.125, %v8824_v31  ;;  %v3876_v12 = vand.u32 4294901760, %v7823_v48 }
 0x6de   :  { %v7832_v53 = vsub.f32 %v3837_v34, %v3837_v34  ;;  %v3829_v34 = vsel %vm3813_vm7, 0.125, %v8824_v31 }
 0x6df   :  { %v3336_v3 = vadd.f32 %v3335_v30, %v3308_v60  ;;  %v3836_v60 = vsel %vm3820_vm15, 0.125, %v8824_v31 }
 0x6e2   :  { %v3180_v6 = vpop.f32.mrf.mxu2  ;;  %v3419_v9 = vpop.f32.mrf.mxu3 }
 0x6e3   :  { %v3270_v14 = vadd.f32 %v3269_v43, %v3180_v6  ;;  %v7827_v43 = vsub.f32 %v3838_v40, %v3838_v40  ;;  %v3831_v40 = vsel %vm3815_vm5, 0.125, %v8824_v31 }
 0x6e5   :  { %v3313_v25 = vadd.f32 %v3312_v57, %v3270_v14  ;;  %v3886_v30 = vand.u32 4294901760, %v7827_v43  ;;  %v3891_v14 = vand.u32 4294901760, %v7832_v53 }
 0x6e7   :  { %v3342_v52 = vadd.f32 %v3341_v32, %v3313_v25  ;;  %v3887_v23 = vsub.f32 %v7827_v43, %v3886_v30  ;;  %v3892_v25 = vsub.f32 %v7832_v53, %v3891_v14 }
 0x6ea   :  { %v3394_v38 = vpop.f32.mrf.mxu2  ;;  %v3423_v15 = vpop.f32.mrf.mxu3 }
 0x6eb   :  { %v3395_v49 = vadd.f32 %v3394_v38, %v3336_v3  ;;  %v3877_v3 = vsub.f32 %v7823_v48, %v3876_v12 }
 0x6ed   :  { %v7786_v2 = vadd.f32 %v3419_v9, %v3395_v49  ;;  %v7847_v9 = vsub.f32 %v3836_v60, %v3836_v60  ;;  %v3878_v8 = vand.u32 4294901760, %v3877_v3  ;;  %v7942_v3 = vsub.f32 %v3829_v34, %v3829_v34 }
 0x6ef   :  { %v3426_v17 = vmul.f32 %v7786_v2, %v7786_v2  ;;  %v3442_v55 = vsub.f32 %v7563_v18, %v7786_v2  ;;  %v3839_v18 = vsel %vm3823_vm11, 0.125, %v8824_v31  ;;  %v3896_v49 = vand.u32 4294901760, %v7847_v9  ;;  %3879 = vmatpush.msra.mxu3 %v3878_v8 }
 0x6f0   :  { %v7825_v35 = vsub.f32 %v3839_v18, %v3839_v18 }
 0x6f2   :  { %v3398_v54 = vpop.f32.mrf.mxu2  ;;  %v3881_v47 = vand.u32 4294901760, %v7825_v35 }
 0x6f3   :  { %v3399_v61 = vadd.f32 %v3398_v54, %v3342_v52  ;;  %v3888_v52 = vand.u32 4294901760, %v3887_v23  ;;  %v3897_v54 = vsub.f32 %v7847_v9, %v3896_v49 }
 0x6f4   :  { %v3882_v57 = vsub.f32 %v7825_v35, %v3881_v47 }
 0x6f5   :  { %v3424_v22 = vadd.f32 %v3423_v15, %v3399_v61  ;;  %v3834_v61 = vsel %vm3818_vm2, 0.125, %v8824_v31 }
 0x6f6   :  { %v3883_v2 = vand.u32 4294901760, %v3882_v57  ;;  %v7884_v45 = vsub.f32 %v3834_v61, %v3834_v61 }
 0x6f7   :  { %v3427_v1 = vsub.f32 %v3424_v22, %v3426_v17  ;;  %v3893_v17 = vand.u32 4294901760, %v3892_v25  ;;  %v3901_v22 = vand.u32 4294901760, %v7879_v19 }
 0x6f8   :  { %3884 = vmatpush.msra.mxu3 %v3883_v2 }
 0x6f9   :  { %v3428_v16 = vmax.f32 %v3427_v1, 0.0  ;;  %v3832_v1 = vsel %vm3816_vm4, 0.125, %v8824_v31 }
 0x6fa   :  { %3889 = vmatpush.msra.mxu3 %v3888_v52 }
 0x6fb   :  { %v3429_v63 = vadd.f32 1e-05, %v3428_v16 }
 0x6fc   :  { %3894 = vmatpush.msra.mxu3 %v3893_v17 }
 0x6fd   :  { %4833 = vrsqrt.f32 %v3429_v63  ;;  %vm3436_vm8 = vweird.f32 %v3429_v63 }
 0x703   :  { %v4834_v46 = vpop.eup %4833 }
 0x704   :  { %v3431_v50 = vmul.f32 %v4834_v46, %v3429_v63  ;;  %vm3437_vm9 = vweird.f32 %v4834_v46  ;;  %v3906_v63 = vand.u32 4294901760, %v7884_v45 }
 0x705   :  { %vm3438_vm0 = vmor %vm3436_vm8, %vm3437_vm9  ;;  %vm3811_vm8 = vcmp.lt.s32.totalorder %v8769_v29, 8  ;;  %vm3810_vm9 = vcmp.lt.s32.totalorder %v8772_v36, 8 }
 0x706   :  { %v3432_v13 = vmul.f32 %v4834_v46, %v3431_v50  ;;  %v7904_v50 = vsub.f32 %v3832_v1, %v3832_v1  ;;  %4763 = vmatpush.msk.msra.mxu2 %vm3811_vm8, %v4896_v56  ;;  %v3826_v34 = vsel %vm3810_vm9, 0.125, %v8824_v31 }
 0x708   :  { %v3433_v11 = vmul.f32 0.5, %v3432_v13  ;;  %v3902_v13 = vsub.f32 %v7879_v19, %v3901_v22  ;;  %v3916_v18 = vand.u32 4294901760, %v7904_v50  ;;  %4764 = vmatpush.msk.msra.mxu2 %vm3810_vm9, %v4896_v56 }
 0x70a   :  { %v3434_v7 = vsub.f32 1.5, %v3433_v11  ;;  %v3898_v11 = vand.u32 4294901760, %v3897_v54  ;;  %v3917_v25 = vsub.f32 %v7904_v50, %v3916_v18  ;;  %v3931_v54 = vand.u32 4294901760, %v7942_v3 }
 0x70c   :  { %v3435_v6 = vmul.f32 %v4834_v46, %v3434_v7  ;;  %v3907_v7 = vsub.f32 %v7884_v45, %v3906_v63  ;;  %3899 = vmatpush.msra.mxu3 %v3898_v11  ;;  %v3932_v1 = vsub.f32 %v7942_v3, %v3931_v54 }
 0x70e   :  { %v3439_v58 = vsel %vm3438_vm0, %v4834_v46, %v3435_v6  ;;  %v7899_v46 = vsub.f32 %v3833_v20, %v3833_v20  ;;  %v3908_v23 = vand.u32 4294901760, %v3907_v7  ;;  %v3827_v7 = vsel %vm3811_vm8, 0.125, %v8824_v31 }
 0x70f   :  { %v3441_v38 = vmul.f32 %v4819_v0, %v3439_v58  ;;  %v3830_v0 = vsel %vm3814_vm6, 0.125, %v8824_v31  ;;  %v3903_v58 = vand.u32 4294901760, %v3902_v13  ;;  %v3933_v13 = vand.u32 4294901760, %v3932_v1 }
 0x710   :  { %v3911_v37 = vand.u32 4294901760, %v7899_v46  ;;  %vm3809_vm0 = vcmp.lt.s32.totalorder %v8774_v24, 8 }
 0x711   :  { %v3443_v32 = vmul.f32 %v3442_v55, %v3441_v38  ;;  %v7932_v38 = vsub.f32 %v3831_v40, %v3831_v40  ;;  %3904 = vmatpush.msra.mxu3 %v3903_v58  ;;  %v3945_v58 = vsub.f32 %v3826_v34, %v3826_v34  ;;  %4765 = vmatpush.msk.msra.mxu2 %vm3809_vm0, %v4896_v56 }
 0x712   :  { %v3912_v60 = vsub.f32 %v7899_v46, %v3911_v37 }
 0x713   :  { %v3445_v15 = vadd.f32 %v4820_v51, %v3443_v32  ;;  %v7940_v51 = vsub.f32 %v3830_v0, %v3830_v0  ;;  %v3921_v10 = vand.u32 4294901760, %v7932_v38  ;;  %3909 = vmatpush.msra.mxu3 %v3908_v23  ;;  %v3940_v0 = vsub.f32 %v3827_v7, %v3827_v7 }
 0x714   :  { %v3913_v2 = vand.u32 4294901760, %v3912_v60 }
 0x715   :  { %v3446_v16 = vmax.f32 %v3445_v15, 0.0  ;;  %v3926_v32 = vand.u32 4294901760, %v7940_v51  ;;  %v3922_v52 = vsub.f32 %v7932_v38, %v3921_v10  ;;  %v3918_v15 = vand.u32 4294901760, %v3917_v25 }
 0x716   :  { %3914 = vmatpush.msra.mxu3 %v3913_v2  ;;  %v3941_v60 = vand.u32 4294901760, %v3940_v0 }
 0x717   :  { %v3498_v55 = vand.u32 4294901760, %v3446_v16  ;;  %v3927_v17 = vsub.f32 %v7940_v51, %v3926_v32  ;;  %v3923_v20 = vand.u32 4294901760, %v3922_v52 }
 0x718   :  { %3919 = vmatpush.msra.mxu3 %v3918_v15  ;;  %v3942_v25 = vsub.f32 %v3940_v0, %v3941_v60 }
 0x719   :  { %v3499_v6 = vsub.f32 %v3446_v16, %v3498_v55  ;;  %3604 = vmatmul.f32.vlgmr.msrb.gmra.mxu1 %v3498_v55  ;;  %v3928_v16 = vand.u32 4294901760, %v3927_v17 }
 0x71a   :  { %4766 = vmatpush.msk.msrb.mxu1 %vm3824_vm10, %v4896_v56  ;;  %3924 = vmatpush.msra.mxu3 %v3923_v20  ;;  %v3943_v52 = vand.u32 4294901760, %v3942_v25 }
 0x71b   :  { %3658 = vmatmul.f32.vlgmr.msrb.gmra.mxu2 %v3499_v6  ;;  %v3500_v57 = vand.u32 4294901760, %v3499_v6 }
 0x71c   :  { %4767 = vmatpush.msk.msrb.mxu1 %vm3823_vm11, %v4896_v56  ;;  %3929 = vmatpush.msra.mxu3 %v3928_v16 }
 0x71d   :  { %3697 = vmatmul.f32.vlgmr.msrb.gmra.mxu3 %v3500_v57  ;;  %v3501_v8 = vsub.f32 %v3499_v6, %v3500_v57  ;;  %v3825_v57 = vsel %vm3809_vm0, 0.125, %v8824_v31  ;;  %4038 = vmatpush.msrb.mxu2 %v3876_v12 }
 0x71e   :  { %4768 = vmatpush.msk.msrb.mxu1 %vm3822_vm13, %v4896_v56  ;;  %3934 = vmatpush.msra.mxu3 %v3933_v13  ;;  %v3950_v2 = vsub.f32 %v3825_v57, %v3825_v57 }
 0x71f   :  { %v3502_v61 = vand.u32 4294901760, %v3501_v8  ;;  %v3946_v8 = vand.u32 4294901760, %v3945_v58  ;;  %4041 = vmatpush.msrb.mxu2 %v3881_v47 }
 0x720   :  { %4769 = vmatpush.msk.msrb.mxu1 %vm3821_vm14, %v4896_v56 }
 0x721   :  { %3503 = vmatmul.f32.vlgmr.msrb.gmra.mxu0 %v3502_v61  ;;  %3803 = vmatmul.f32.vlgmr.msra.gmra.mxu1 %v3498_v55  ;;  %v3947_v61 = vsub.f32 %v3945_v58, %v3946_v8 }
 0x722   :  { %3965 = vmatpush.msrb.mxu0 %v7823_v48  ;;  %4770 = vmatpush.msk.msrb.mxu1 %vm3820_vm15, %v4896_v56 }
 0x723   :  { %v3948_v15 = vand.u32 4294901760, %v3947_v61  ;;  %4044 = vmatpush.msrb.mxu2 %v3886_v30 }
 0x724   :  { %3967 = vmatpush.msrb.mxu0 %v7825_v35  ;;  %4771 = vmatpush.msk.msrb.mxu1 %vm3819_vm1, %v4896_v56 }
 0x725   :  { %4047 = vmatpush.msrb.mxu2 %v3891_v14  ;;  %v4155_v14 = vld [vmem:[#allocation4 + $0x2f8] sm:$0xff] }
 0x726   :  { %3969 = vmatpush.msrb.mxu0 %v7827_v43  ;;  %4772 = vmatpush.msk.msrb.mxu1 %vm3818_vm2, %v4896_v56 }
 0x727   :  { %4050 = vmatpush.msrb.mxu2 %v3896_v49  ;;  %v4154_v49 = vld [vmem:[#allocation4 + $0x2f0] sm:$0xff] }
 0x728   :  { %3971 = vmatpush.msrb.mxu0 %v7832_v53  ;;  %4773 = vmatpush.msk.msrb.mxu1 %vm3817_vm3, %v4896_v56 }
 0x729   :  { %3766 = vmatmul.f32.vlgmr.msra.gmra.mxu0 %v3498_v55  ;;  %v3828_v55 = vsel %vm3812_vm12, 0.125, %v8824_v31  ;;  %v3951_v31 = vand.u32 4294901760, %v3950_v2  ;;  %4053 = vmatpush.msrb.mxu2 %v3901_v22  ;;  %v4153_v22 = vld [vmem:[#allocation4 + $0x2e8] sm:$0xff] }
 0x72a   :  { %3973 = vmatpush.msrb.mxu0 %v7847_v9  ;;  %4774 = vmatpush.msk.msrb.mxu1 %vm3816_vm4, %v4896_v56  ;;  %v3935_v11 = vsub.f32 %v3828_v55, %v3828_v55  ;;  %v8140_v9 = vand.u32 4294901760, %v4155_v14  ;;  %v4150_v55 = vld [vmem:[#allocation4 + $0x2d0] sm:$0xff] }
 0x72b   :  { %v3952_v17 = vsub.f32 %v3950_v2, %v3951_v31  ;;  %4056 = vmatpush.msrb.mxu2 %v3906_v63 }
 0x72c   :  { %3975 = vmatpush.msrb.mxu0 %v7879_v19  ;;  %4775 = vmatpush.msk.msrb.mxu1 %vm3815_vm5, %v4896_v56  ;;  %v3936_v40 = vand.u32 4294901760, %v3935_v11  ;;  %v8143_v19 = vsub.f32 %v4155_v14, %v8140_v9 }
 0x72d   :  { %v3953_v20 = vand.u32 4294901760, %v3952_v17  ;;  %4059 = vmatpush.msrb.mxu2 %v3911_v37  ;;  %v4152_v37 = vld [vmem:[#allocation4 + $0x2e0] sm:$0xff]  ;;  %v4147_v17 = vld [vmem:[#allocation4 + $0x2b8] sm:$0xff] }
 0x72e   :  { %3977 = vmatpush.msrb.mxu0 %v7884_v45  ;;  %4776 = vmatpush.msk.msrb.mxu1 %vm3814_vm6, %v4896_v56  ;;  %v3937_v6 = vsub.f32 %v3935_v11, %v3936_v40  ;;  %v8145_v45 = vand.u32 4294901760, %v4154_v49  ;;  %v4201_v63 = vand.u32 4294901760, %v8143_v19 }
 0x72f   :  { %4062 = vmatpush.msrb.mxu2 %v3916_v18 }
 0x730   :  { %3979 = vmatpush.msrb.mxu0 %v7899_v46  ;;  %4777 = vmatpush.msk.msrb.mxu1 %vm3813_vm7, %v4896_v56  ;;  %v3938_v23 = vand.u32 4294901760, %v3937_v6  ;;  %v8151_v46 = vsub.f32 %v4154_v49, %v8145_v45  ;;  %v4202_v18 = vsub.f32 %v8143_v19, %v4201_v63  ;;  %v4149_v6 = vld [vmem:[#allocation4 + $0x2c8] sm:$0xff] }
 0x731   :  { %4065 = vmatpush.msrb.mxu2 %v3921_v10  ;;  %v4151_v10 = vld [vmem:[#allocation4 + $0x2d8] sm:$0xff] }
 0x732   :  { %3981 = vmatpush.msrb.mxu0 %v7904_v50  ;;  %4778 = vmatpush.msk.msrb.mxu1 %vm3812_vm12, %v4896_v56  ;;  %v8153_v50 = vand.u32 4294901760, %v4153_v22  ;;  %v8179_v13 = vand.u32 4294901760, %v4151_v10 }
 0x733   :  { %3939 = vmatpush.msra.mxu3 %v3938_v23  ;;  %4068 = vmatpush.msrb.mxu2 %v3926_v32  ;;  %v4203_v32 = vand.u32 4294901760, %v4202_v18  ;;  %v8200_v23 = vand.u32 4294901760, %v4149_v6 }
 0x734   :  { %3983 = vmatpush.msrb.mxu0 %v7932_v38  ;;  %4779 = vmatpush.msk.msrb.mxu1 %vm3811_vm8, %v4896_v56  ;;  %v4207_v38 = vand.u32 4294901760, %v8151_v46  ;;  %v8190_v34 = vsub.f32 %v4151_v10, %v8179_v13  ;;  %v4142_v10 = vld [vmem:[#allocation4 + $0x290] sm:$0xff] }
 0x735   :  { %3944 = vmatpush.msra.mxu3 %v3943_v52  ;;  %4071 = vmatpush.msrb.mxu2 %v3931_v54  ;;  %v8207_v61 = vsub.f32 %v4149_v6, %v8200_v23  ;;  %v4141_v6 = vld [vmem:[#allocation4 + $0x288] sm:$0xff] }
 0x736   :  { %3985 = vmatpush.msrb.mxu0 %v7940_v51  ;;  %4780 = vmatpush.msk.msrb.mxu1 %vm3810_vm9, %v4896_v56  ;;  %v8163_v51 = vsub.f32 %v4153_v22, %v8153_v50  ;;  %v4208_v54 = vsub.f32 %v8151_v46, %v4207_v38  ;;  %v4225_v25 = vand.u32 4294901760, %v8190_v34 }
 0x737   :  { %3949 = vmatpush.msra.mxu3 %v3948_v15  ;;  %4074 = vmatpush.msrb.mxu2 %v3936_v40 }
 0x738   :  { %3987 = vmatpush.msrb.mxu0 %v7942_v3  ;;  %4781 = vmatpush.msk.msrb.mxu1 %vm3809_vm0, %v4896_v56  ;;  %v8165_v3 = vand.u32 4294901760, %v4152_v37  ;;  %v4213_v1 = vand.u32 4294901760, %v8163_v51  ;;  %v4226_v15 = vsub.f32 %v8190_v34, %v4225_v25 }
 0x739   :  { %3954 = vmatpush.msra.mxu3 %v3953_v20  ;;  %4077 = vmatpush.msrb.mxu2 %v3941_v60 }
 0x73a   :  { %3989 = vmatpush.msrb.mxu0 %v3935_v11  ;;  %v8175_v16 = vsub.f32 %v4152_v37, %v8165_v3  ;;  %4204 = vmatpush.msra.mxu1 %v4203_v32  ;;  %v4209_v11 = vand.u32 4294901760, %v4208_v54  ;;  %v4214_v7 = vsub.f32 %v8163_v51, %v4213_v1 }
 0x73b   :  { %4782 = vmatpush.msk.msrb.mxu3 %vm3824_vm10, %v4896_v56  ;;  %4080 = vmatpush.msrb.mxu2 %v3946_v8  ;;  %v4148_v8 = vld [vmem:[#allocation4 + $0x2c0] sm:$0xff] }
 0x73c   :  { %3991 = vmatpush.msrb.mxu0 %v3940_v0  ;;  %v4219_v40 = vand.u32 4294901760, %v8175_v16  ;;  %v8186_v0 = vand.u32 4294901760, %v4150_v55  ;;  %4210 = vmatpush.msra.mxu1 %v4209_v11  ;;  %v4215_v60 = vand.u32 4294901760, %v4214_v7  ;;  %v8283_v11 = vand.u32 4294901760, %v4142_v10 }
 0x73d   :  { %4783 = vmatpush.msk.msrb.mxu3 %vm3823_vm11, %v4896_v56  ;;  %4083 = vmatpush.msrb.mxu2 %v3951_v31  ;;  %v8209_v31 = vand.u32 4294901760, %v4148_v8 }
 0x73e   :  { %3993 = vmatpush.msrb.mxu0 %v3945_v58  ;;  %v4220_v58 = vsub.f32 %v8175_v16, %v4219_v40  ;;  %v8198_v57 = vsub.f32 %v4150_v55, %v8186_v0  ;;  %4216 = vmatpush.msra.mxu1 %v4215_v60 }
 0x73f   :  { %4784 = vmatpush.msk.msrb.mxu3 %vm3822_vm13, %v4896_v56 }
 0x740   :  { %3995 = vmatpush.msrb.mxu0 %v3950_v2  ;;  %v4221_v2 = vand.u32 4294901760, %v4220_v58  ;;  %v4231_v52 = vand.u32 4294901760, %v8198_v57 }
 0x741   :  { %4785 = vmatpush.msk.msrb.mxu3 %vm3821_vm14, %v4896_v56  ;;  %vm4502_vm14 = vcmask 7168  }
 0x742   :  { %4159 = vmatpush.msra.mxu0 %v8140_v9  ;;  %4222 = vmatpush.msra.mxu1 %v4221_v2  ;;  %v4232_v20 = vsub.f32 %v8198_v57, %v4231_v52 }
 0x743   :  { %4786 = vmatpush.msk.msrb.mxu3 %vm3820_vm15, %v4896_v56 }
 0x744   :  { %4161 = vmatpush.msra.mxu0 %v8145_v45 }
 0x745   :  { %4787 = vmatpush.msk.msrb.mxu3 %vm3819_vm1, %v4896_v56 }
 0x746   :  { %4163 = vmatpush.msra.mxu0 %v8153_v50 }
 0x747   :  { %4788 = vmatpush.msk.msrb.mxu3 %vm3818_vm2, %v4896_v56 }
 0x748   :  { %4165 = vmatpush.msra.mxu0 %v8165_v3 }
 0x749   :  { %4789 = vmatpush.msk.msrb.mxu3 %vm3817_vm3, %v4896_v56 }
 0x74a   :  { %4167 = vmatpush.msra.mxu0 %v8179_v13 }
 0x74b   :  { %4790 = vmatpush.msk.msrb.mxu3 %vm3816_vm4, %v4896_v56 }
 0x74c   :  { %4169 = vmatpush.msra.mxu0 %v8186_v0 }
 0x74d   :  { %4791 = vmatpush.msk.msrb.mxu3 %vm3815_vm5, %v4896_v56 }
 0x74e   :  { %4171 = vmatpush.msra.mxu0 %v8200_v23 }
 0x74f   :  { %4792 = vmatpush.msk.msrb.mxu3 %vm3814_vm6, %v4896_v56 }
 0x750   :  { %4173 = vmatpush.msra.mxu0 %v8209_v31 }
 0x751   :  { %4793 = vmatpush.msk.msrb.mxu3 %vm3813_vm7, %v4896_v56 }
 0x753   :  { %4794 = vmatpush.msk.msrb.mxu3 %vm3812_vm12, %v4896_v56 }
 0x755   :  { %4795 = vmatpush.msk.msrb.mxu3 %vm3811_vm8, %v4896_v56 }
 0x757   :  { %4796 = vmatpush.msk.msrb.mxu3 %vm3810_vm9, %v4896_v56 }
 0x759   :  { %4797 = vmatpush.msk.msrb.mxu3 %vm3809_vm0, %v4896_v56 }
 0x796   :  { %v3605_v27 = vpop.f32.mrf.mxu1 }
 0x79e   :  { %v3504_v39 = vpop.f32.mrf.mxu0  ;;  %v3659_v41 = vpop.f32.mrf.mxu2 }
 0x79f   :  { %v3505_v5 = vadd.f32 %v4821_v26, %v3504_v39  ;;  %v3804_v59 = vpop.f32.mrf.mxu1  ;;  %v4237_v26 = vand.u32 4294901760, %v8207_v61  ;;  %v8224_v39 = vand.u32 4294901760, %v4147_v17 }
 0x7a0   :  { %v3698_v62 = vpop.f32.mrf.mxu3 }
 0x7a1   :  { %v3606_v28 = vadd.f32 %v3605_v27, %v3505_v5  ;;  %v8222_v27 = vsub.f32 %v4148_v8, %v8209_v31  ;;  %v4227_v5 = vand.u32 4294901760, %v4226_v15  ;;  %4175 = vmatpush.msra.mxu0 %v8224_v39  ;;  %v8293_v15 = vsub.f32 %v4142_v10, %v8283_v11 }
 0x7a3   :  { %v3660_v42 = vadd.f32 %v3659_v41, %v3606_v28  ;;  %v4146_v28 = vld [vmem:[#allocation4 + $0x2b0] sm:$0xff]  ;;  %v4233_v41 = vand.u32 4294901760, %v4232_v20  ;;  %4228 = vmatpush.msra.mxu1 %v4227_v5  ;;  %v4140_v20 = vld [vmem:[#allocation4 + $0x280] sm:$0xff] }
 0x7a5   :  { %v3699_v33 = vadd.f32 %v3698_v62, %v3660_v42  ;;  %v4238_v42 = vsub.f32 %v8207_v61, %v4237_v26  ;;  %v4243_v62 = vand.u32 4294901760, %v8222_v27  ;;  %4234 = vmatpush.msra.mxu1 %v4233_v41  ;;  %v4279_v41 = vand.u32 4294901760, %v8293_v15 }
 0x7a6   :  { %v3767_v44 = vpop.f32.mrf.mxu0 }
 0x7a7   :  { %v3768_v21 = vadd.f32 %v3767_v44, %v3699_v33  ;;  %v8234_v33 = vsub.f32 %v4147_v17, %v8224_v39  ;;  %v8237_v44 = vand.u32 4294901760, %v4146_v28  ;;  %v8297_v17 = vand.u32 4294901760, %v4141_v6 }
 0x7a9   :  { %v8134_v4 = vadd.f32 %v3804_v59, %v3768_v21  ;;  %v4145_v21 = vld [vmem:[#allocation4 + $0x2a8] sm:$0xff]  ;;  %v4239_v59 = vand.u32 4294901760, %v4238_v42  ;;  %4177 = vmatpush.msra.mxu0 %v8237_v44  ;;  %v8304_v42 = vand.u32 4294901760, %v4140_v20 }
 0x7ab   :  { %v3858_v29 = vand.u32 4294901760, %v8134_v4  ;;  %v3841_v36 = vmul.f32 %v8134_v4, %v8134_v4  ;;  %4240 = vmatpush.msra.mxu1 %v4239_v59 }
 0x7ad   :  { %3956 = vmatmul.f32.vlgmr.msra.gmra.mxu3 %v3858_v29  ;;  %v3859_v24 = vsub.f32 %v8134_v4, %v3858_v29  ;;  %v3866_v48 = vand.u32 4294901760, %v3841_v36 }
 0x7ae   :  { %4355 = vmatpush.msra.mxu3 %v8140_v9 }
 0x7af   :  { %3998 = vmatmul.f32.vlgmr.msrb.gmra.mxu0 %v3859_v24  ;;  %v3860_v35 = vand.u32 4294901760, %v3859_v24  ;;  %v3867_v43 = vsub.f32 %v3841_v36, %v3866_v48  ;;  %v4249_v36 = vand.u32 4294901760, %v8234_v33 }
 0x7b0   :  { %4357 = vmatpush.msra.mxu3 %v8145_v45 }
 0x7b1   :  { %v3861_v53 = vsub.f32 %v3859_v24, %v3860_v35  ;;  %4026 = vmatmul.f32.vlgmr.msrb.gmra.mxu1 %v3860_v35  ;;  %v3868_v47 = vand.u32 4294901760, %v3867_v43  ;;  %v8244_v24 = vand.u32 4294901760, %v4145_v21  ;;  %v4144_v35 = vld [vmem:[#allocation4 + $0x2a0] sm:$0xff] }
 0x7b2   :  { %4359 = vmatpush.msra.mxu3 %v8153_v50 }
 0x7b3   :  { %v3862_v12 = vand.u32 4294901760, %v3861_v53  ;;  %v3869_v30 = vsub.f32 %v3867_v43, %v3868_v47  ;;  %v4250_v53 = vsub.f32 %v8234_v33, %v4249_v36  ;;  %4179 = vmatpush.msra.mxu0 %v8244_v24 }
 0x7b4   :  { %4361 = vmatpush.msra.mxu3 %v8165_v3 }
 0x7b5   :  { %3863 = vmatmul.f32.vlgmr.msra.gmra.mxu2 %v3862_v12  ;;  %3960 = vmatmul.f32.gmra.mxu3 %v3866_v48  ;;  %v3870_v56 = vand.u32 4294901760, %v3869_v30  ;;  %v8256_v12 = vsub.f32 %v4145_v21, %v8244_v24  ;;  %v4251_v14 = vand.u32 4294901760, %v4250_v53  ;;  %v8309_v21 = vsub.f32 %v4141_v6, %v8297_v17 }
 0x7b6   :  { %4302 = vmatpush.msra.mxu2 %v8143_v19  ;;  %4363 = vmatpush.msra.mxu3 %v8179_v13 }
 0x7b7   :  { %4003 = vmatmul.f32.gmra.mxu0 %v3867_v43  ;;  %v4261_v49 = vand.u32 4294901760, %v8256_v12  ;;  %v4285_v53 = vand.u32 4294901760, %v8309_v21 }
 0x7b8   :  { %4305 = vmatpush.msra.mxu2 %v8151_v46  ;;  %4365 = vmatpush.msra.mxu3 %v8186_v0 }
 0x7b9   :  { %4032 = vmatmul.f32.gmra.mxu1 %v3868_v47  ;;  %v8258_v47 = vand.u32 4294901760, %v4144_v35  ;;  %v4262_v32 = vsub.f32 %v8256_v12, %v4261_v49 }
 0x7ba   :  { %4308 = vmatpush.msra.mxu2 %v8163_v51  ;;  %4367 = vmatpush.msra.mxu3 %v8200_v23 }
 0x7bb   :  { %v8266_v22 = vsub.f32 %v4144_v35, %v8258_v47  ;;  %4181 = vmatpush.msra.mxu0 %v8258_v47  ;;  %v4263_v58 = vand.u32 4294901760, %v4262_v32  ;;  %v4280_v35 = vsub.f32 %v8293_v15, %v4279_v41 }
 0x7bc   :  { %4311 = vmatpush.msra.mxu2 %v8175_v16  ;;  %4369 = vmatpush.msra.mxu3 %v8209_v31 }
 0x7bd   :  { %3871 = vmatmul.f32.gmra.mxu2 %v3870_v56  ;;  %4110 = vmatmul.f32.vlgmr.msrb.gmra.mxu3 %v3858_v29  ;;  %v4143_v56 = vld [vmem:[#allocation4 + $0x298] sm:$0xff]  ;;  %v4267_v54 = vand.u32 4294901760, %v8266_v22 }
 0x7be   :  { %4314 = vmatpush.msra.mxu2 %v8190_v34  ;;  %4371 = vmatpush.msra.mxu3 %v8224_v39  ;;  %v8268_v37 = vand.u32 4294901760, %v4143_v56 }
 0x7bf   :  { %v4268_v8 = vsub.f32 %v8266_v22, %v4267_v54 }
 0x7c0   :  { %4317 = vmatpush.msra.mxu2 %v8198_v57  ;;  %4373 = vmatpush.msra.mxu3 %v8237_v44  ;;  %v8281_v55 = vsub.f32 %v4143_v56, %v8268_v37  ;;  %v4281_v56 = vand.u32 4294901760, %v4280_v35 }
 0x7c1   :  { %4183 = vmatpush.msra.mxu0 %v8268_v37  ;;  %v4269_v5 = vand.u32 4294901760, %v4268_v8 }
 0x7c2   :  { %4320 = vmatpush.msra.mxu2 %v8207_v61  ;;  %4375 = vmatpush.msra.mxu3 %v8244_v24  ;;  %v4273_v2 = vand.u32 4294901760, %v8281_v55 }
 0x7c3   :  { %4185 = vmatpush.msra.mxu0 %v8283_v11 }
 0x7c4   :  { %4323 = vmatpush.msra.mxu2 %v8222_v27  ;;  %4377 = vmatpush.msra.mxu3 %v8258_v47 }
 0x7c5   :  { %4085 = vmatmul.f32.vlgmr.msrb.gmra.mxu2 %v3858_v29  ;;  %4114 = vmatmul.f32.gmra.mxu3 %v3866_v48  ;;  %v4244_v29 = vsub.f32 %v8222_v27, %v4243_v62 }
 0x7c6   :  { %4326 = vmatpush.msra.mxu2 %v8234_v33  ;;  %4379 = vmatpush.msra.mxu3 %v8268_v37 }
 0x7c7   :  { %v4245_v43 = vand.u32 4294901760, %v4244_v29  ;;  %4187 = vmatpush.msra.mxu0 %v8297_v17 }
 0x7c8   :  { %4381 = vmatpush.msra.mxu3 %v8283_v11 }
 0x7c9   :  { %4246 = vmatpush.msra.mxu1 %v4245_v43  ;;  %v8316_v43 = vsub.f32 %v4140_v20, %v8304_v42  ;;  %4189 = vmatpush.msra.mxu0 %v8304_v42 }
 0x7ca   :  { %4383 = vmatpush.msra.mxu3 %v8297_v17 }
 0x7cb   :  { %4252 = vmatpush.msra.mxu1 %v4251_v14  ;;  %v4291_v14 = vand.u32 4294901760, %v8316_v43  ;;  %4396 = vmatpush.msrb.mxu0 %v4201_v63 }
 0x7cc   :  { %4385 = vmatpush.msra.mxu3 %v8304_v42 }
 0x7cd   :  { %4089 = vmatmul.f32.gmra.mxu2 %v3866_v48  ;;  %v8249_v48 = vsub.f32 %v4146_v28, %v8237_v44  ;;  %v4274_v28 = vsub.f32 %v8281_v55, %v4273_v2  ;;  %v4292_v10 = vsub.f32 %v8316_v43, %v4291_v14  ;;  %4400 = vmatpush.msrb.mxu0 %v4207_v38 }
 0x7cf   :  { %v4255_v30 = vand.u32 4294901760, %v8249_v48  ;;  %4329 = vmatpush.msra.mxu2 %v8249_v48  ;;  %v4275_v29 = vand.u32 4294901760, %v4274_v28  ;;  %v4293_v6 = vand.u32 4294901760, %v4292_v10  ;;  %4404 = vmatpush.msrb.mxu0 %v4213_v1 }
 0x7d1   :  { %v4256_v18 = vsub.f32 %v8249_v48, %v4255_v30  ;;  %4332 = vmatpush.msra.mxu2 %v8256_v12  ;;  %4408 = vmatpush.msrb.mxu0 %v4219_v40 }
 0x7d3   :  { %v4257_v7 = vand.u32 4294901760, %v4256_v18  ;;  %4335 = vmatpush.msra.mxu2 %v8266_v22  ;;  %v4286_v18 = vsub.f32 %v8309_v21, %v4285_v53  ;;  %4412 = vmatpush.msrb.mxu0 %v4225_v25 }
 0x7d5   :  { %4258 = vmatpush.msra.mxu1 %v4257_v7  ;;  %4338 = vmatpush.msra.mxu2 %v8281_v55  ;;  %v4287_v32 = vand.u32 4294901760, %v4286_v18 }
 0x7d6   :  { %4416 = vmatpush.msrb.mxu0 %v4231_v52 }
 0x7d7   :  { %4264 = vmatpush.msra.mxu1 %v4263_v58  ;;  %4341 = vmatpush.msra.mxu2 %v8293_v15 }
 0x7d8   :  { %4420 = vmatpush.msrb.mxu0 %v4237_v26 }
 0x7d9   :  { %4270 = vmatpush.msra.mxu1 %v4269_v5  ;;  %4344 = vmatpush.msra.mxu2 %v8309_v21 }
 0x7da   :  { %4424 = vmatpush.msrb.mxu0 %v4243_v62 }
 0x7db   :  { %4276 = vmatpush.msra.mxu1 %v4275_v29  ;;  %4347 = vmatpush.msra.mxu2 %v8316_v43 }
 0x7dc   :  { %4428 = vmatpush.msrb.mxu0 %v4249_v36  ;;  %v4822_v36 = vld [vmem:[%s8388_s3 + $0xc] ss:$0 sm:$0xff] }
 0x7dd   :  { %4282 = vmatpush.msra.mxu1 %v4281_v56 }
 0x7de   :  { %4432 = vmatpush.msrb.mxu0 %v4255_v30  ;;  %v4823_v30 = vld [vmem:[%s8388_s3 + $0x13] ss:$0 sm:$0xff] }
 0x7df   :  { %4288 = vmatpush.msra.mxu1 %v4287_v32 }
 0x7e0   :  { %4436 = vmatpush.msrb.mxu0 %v4261_v49 }
 0x7e1   :  { %4294 = vmatpush.msra.mxu1 %v4293_v6 }
 0x7e2   :  { %4440 = vmatpush.msrb.mxu0 %v4267_v54 }
 0x7e3   :  { %4463 = vmatpush.msrb.mxu1 %v8140_v9 }
 0x7e4   :  { %4444 = vmatpush.msrb.mxu0 %v4273_v2 }
 0x7e5   :  { %4465 = vmatpush.msrb.mxu1 %v8145_v45 }
 0x7e6   :  { %4448 = vmatpush.msrb.mxu0 %v4279_v41 }
 0x7e7   :  { %4467 = vmatpush.msrb.mxu1 %v8153_v50 }
 0x7e8   :  { %4452 = vmatpush.msrb.mxu0 %v4285_v53 }
 0x7e9   :  { %4469 = vmatpush.msrb.mxu1 %v8165_v3 }
 0x7ea   :  { %4456 = vmatpush.msrb.mxu0 %v4291_v14 }
 0x7eb   :  { %4471 = vmatpush.msrb.mxu1 %v8179_v13 }
 0x7ed   :  { %4473 = vmatpush.msrb.mxu1 %v8186_v0 }
 0x7ef   :  { %4475 = vmatpush.msrb.mxu1 %v8200_v23 }
 0x7f1   :  { %4477 = vmatpush.msrb.mxu1 %v8209_v31 }
 0x7f3   :  { %4479 = vmatpush.msrb.mxu1 %v8224_v39 }
 0x7f5   :  { %4481 = vmatpush.msrb.mxu1 %v8237_v44 }
 0x7f7   :  { %4483 = vmatpush.msrb.mxu1 %v8244_v24 }
 0x7f9   :  { %4485 = vmatpush.msrb.mxu1 %v8258_v47 }
 0x7fb   :  { %4487 = vmatpush.msrb.mxu1 %v8268_v37 }
 0x7fd   :  { %4489 = vmatpush.msrb.mxu1 %v8283_v11 }
 0x7ff   :  { %4491 = vmatpush.msrb.mxu1 %v8297_v17 }
 0x801   :  { %4493 = vmatpush.msrb.mxu1 %v8304_v42 }
 0x82c   :  { %v3999_v19 = vpop.f32.mrf.mxu0 }
 0x82e   :  { %v4027_v46 = vpop.f32.mrf.mxu1 }
 0x830   :  { %v3957_v60 = vpop.f32.mrf.mxu3 }
 0x834   :  { %v4004_v40 = vpop.f32.mrf.mxu0 }
 0x836   :  { %v4033_v34 = vpop.f32.mrf.mxu1 }
 0x838   :  { %v3864_v59 = vpop.f32.mrf.mxu2  ;;  %v3961_v7 = vpop.f32.mrf.mxu3 }
 0x839   :  { %v3958_v58 = vadd.f32 %v3957_v60, %v3864_v59 }
 0x83b   :  { %v4000_v38 = vadd.f32 %v3999_v19, %v3958_v58 }
 0x83d   :  { %v4028_v9 = vadd.f32 %v4027_v46, %v4000_v38 }
 0x840   :  { %v3872_v63 = vpop.f32.mrf.mxu2  ;;  %v4111_v1 = vpop.f32.mrf.mxu3 }
 0x841   :  { %v3962_v51 = vadd.f32 %v3961_v7, %v3872_v63 }
 0x843   :  { %v4005_v45 = vadd.f32 %v4004_v40, %v3962_v51 }
 0x845   :  { %v4034_v57 = vadd.f32 %v4033_v34, %v4005_v45 }
 0x848   :  { %v4086_v16 = vpop.f32.mrf.mxu2  ;;  %v4115_v52 = vpop.f32.mrf.mxu3 }
 0x849   :  { %v4087_v50 = vadd.f32 %v4086_v16, %v4028_v9 }
 0x84b   :  { %v4112_v3 = vadd.f32 %v4111_v1, %v4087_v50 }
 0x84d   :  { %v4118_v0 = vmul.f32 %v4112_v3, %v4112_v3  ;;  %v4134_v12 = vsub.f32 %v8134_v4, %v4112_v3  ;;  %v4824_v4 = vld [vmem:[%s8388_s3 + $0x6] ss:$0 sm:$0xff] }
 0x850   :  { %v4090_v25 = vpop.f32.mrf.mxu2 }
 0x851   :  { %v4091_v13 = vadd.f32 %v4090_v25, %v4034_v57 }
 0x853   :  { %v4116_v23 = vadd.f32 %v4115_v52, %v4091_v13 }
 0x855   :  { %v4119_v61 = vsub.f32 %v4116_v23, %v4118_v0 }
 0x857   :  { %v4120_v31 = vmax.f32 %v4119_v61, 0.0 }
 0x859   :  { %v4121_v26 = vadd.f32 1e-05, %v4120_v31 }
 0x85b   :  { %4835 = vrsqrt.f32 %v4121_v26  ;;  %vm4128_vm11 = vweird.f32 %v4121_v26 }
 0x861   :  { %v4836_v27 = vpop.eup %4835 }
 0x862   :  { %v4123_v39 = vmul.f32 %v4836_v27, %v4121_v26  ;;  %vm4129_vm10 = vweird.f32 %v4836_v27 }
 0x863   :  { %vm4130_vm13 = vmor %vm4128_vm11, %vm4129_vm10 }
 0x864   :  { %v4124_v62 = vmul.f32 %v4836_v27, %v4123_v39 }
 0x866   :  { %v4125_v33 = vmul.f32 0.5, %v4124_v62 }
 0x868   :  { %v4126_v44 = vsub.f32 1.5, %v4125_v33 }
 0x86a   :  { %v4127_v24 = vmul.f32 %v4836_v27, %v4126_v44 }
 0x86c   :  { %v4131_v48 = vsel %vm4130_vm13, %v4836_v27, %v4127_v24 }
 0x86d   :  { %v4133_v47 = vmul.f32 %v4822_v36, %v4131_v48 }
 0x86f   :  { %v4135_v49 = vmul.f32 %v4134_v12, %v4133_v47 }
 0x871   :  { %v4137_v22 = vadd.f32 %v4823_v30, %v4135_v49 }
 0x873   :  { %v4138_v37 = vmax.f32 %v4137_v22, 0.0 }
 0x875   :  { %v4190_v54 = vand.u32 4294901760, %v4138_v37 }
 0x877   :  { %4296 = vmatmul.f32.vlgmr.msra.gmra.mxu1 %v4190_v54  ;;  %v4191_v55 = vsub.f32 %v4138_v37, %v4190_v54 }
 0x879   :  { %4350 = vmatmul.f32.vlgmr.msra.gmra.mxu2 %v4191_v55  ;;  %v4192_v11 = vand.u32 4294901760, %v4191_v55 }
 0x87b   :  { %4389 = vmatmul.f32.vlgmr.msra.gmra.mxu3 %v4192_v11  ;;  %v4193_v60 = vsub.f32 %v4191_v55, %v4192_v11 }
 0x87d   :  { %v4194_v8 = vand.u32 4294901760, %v4193_v60 }
 0x87f   :  { %4195 = vmatmul.f32.vlgmr.msra.gmra.mxu0 %v4194_v8  ;;  %4495 = vmatmul.f32.vlgmr.msrb.gmra.mxu1 %v4190_v54 }
 0x887   :  { %4458 = vmatmul.f32.vlgmr.msrb.gmra.mxu0 %v4190_v54 }
 0x8f4   :  { %v4297_v2 = vpop.f32.mrf.mxu1 }
 0x8fc   :  { %v4196_v15 = vpop.f32.mrf.mxu0  ;;  %v4351_v5 = vpop.f32.mrf.mxu2 }
 0x8fd   :  { %v4197_v17 = vadd.f32 %v4824_v4, %v4196_v15  ;;  %v4496_v29 = vpop.f32.mrf.mxu1 }
 0x8fe   :  { %v4390_v41 = vpop.f32.mrf.mxu3 }
 0x8ff   :  { %v4298_v20 = vadd.f32 %v4297_v2, %v4197_v17 }
 0x901   :  { %v4352_v28 = vadd.f32 %v4351_v5, %v4298_v20 }
 0x903   :  { %v4391_v42 = vadd.f32 %v4390_v41, %v4352_v28 }
 0x904   :  { %v4459_v21 = vpop.f32.mrf.mxu0 }
 0x905   :  { %v4460_v59 = vadd.f32 %v4459_v21, %v4391_v42 }
 0x907   :  { %v4497_v35 = vadd.f32 %v4496_v29, %v4460_v59 }
 0x909   :  { %4499 = vadd.xlane.f32.xlu0 %v4497_v35 }
 0x97c   :  { %v4500_v43 = vpop.xlane.xlu0 %4499 }
 0x97d   :  { %v4501_v53 = vmul.f32 0.33333334, %v4500_v43 }
 0x97f   :  { %4503 = vst.msk [vmem:[%s8389_s4] sm:$0xff] %vm4502_vm14, %v4501_v53 }
 0x980   :  { %4508 = vsyncpa [#allocation3], 1 }
 0x981   :  { %4509 = vsyncpa [#allocation5], 1 }

</bundles_post_ra>
